<compile_context>
chip_gen: v6e
topology: v6e:2x2x1
jax: 0.10.0
libtpu: 0.0.40
codegen_flags: <defaults>
</compile_context>

<pallas_src>
import jax
import jax.numpy as jnp
from jax.experimental import pallas as pl
from jax.experimental.pallas import tpu as pltpu


def pcn_cls_kernel(x_ref,
                   w1, b1, w2, b2, w3p, w3g, b3, w4, b4,   # encoder conv weights (w3 split)
                   fw1, fb1, fw2, fb2, fw3, fb3,           # head (BN folded into fc1/fc2)
                   o_ref):
    Bt, N, Cp = x_ref.shape
    x = x_ref[...].reshape(Bt * N, Cp)                                   # bf16 slab

    # conv1 + relu   (bf16 operands, f32 accumulation)
    h1 = jnp.maximum(
        jnp.dot(x, w1[...], preferred_element_type=jnp.float32) + b1[...], 0.0)   # (Bt*N,128)
    # conv2 -> pointfeat
    pf = jnp.dot(h1.astype(jnp.bfloat16), w2[...],
                 preferred_element_type=jnp.float32) + b2[...]                    # (Bt*N,256)

    # per-batch global max over points
    gmax = jnp.max(pf.reshape(Bt, N, 256), axis=1)                                # (Bt,256)

    # conv3 on the [pointfeat, tiled_global] concat, with the matmul split so the
    # broadcast half is computed once per batch element instead of once per point.
    p3 = jnp.dot(pf.astype(jnp.bfloat16), w3p[...],
                 preferred_element_type=jnp.float32)                              # (Bt*N,512)
    g3 = jnp.dot(gmax.astype(jnp.bfloat16), w3g[...],
                 preferred_element_type=jnp.float32)                              # (Bt,512)
    h3 = jnp.maximum(p3.reshape(Bt, N, 512) + g3[:, None, :] + b3[...], 0.0)      # (Bt,N,512)

    # conv4 + per-batch global max pool
    h4 = jnp.dot(h3.reshape(Bt * N, 512).astype(jnp.bfloat16), w4[...],
                 preferred_element_type=jnp.float32) + b4[...]                    # (Bt*N,1024)
    feat = jnp.max(h4.reshape(Bt, N, 1024), axis=1)                               # (Bt,1024)

    # classifier head, batched over the Bt rows (BN folded; dropout = identity in eval)
    f1 = jnp.maximum(jnp.dot(feat.astype(jnp.bfloat16), fw1[...],
                             preferred_element_type=jnp.float32) + fb1[...], 0.0)  # (Bt,512)
    f2 = jnp.maximum(jnp.dot(f1.astype(jnp.bfloat16), fw2[...],
                             preferred_element_type=jnp.float32) + fb2[...], 0.0)  # (Bt,256)
    logits = jnp.dot(f2.astype(jnp.bfloat16), fw3[...],
                     preferred_element_type=jnp.float32) + fb3[...]                # (Bt,nc)

    # log_softmax over classes (exact, in f32)
    m = jnp.max(logits, axis=1, keepdims=True)
    lse = jnp.log(jnp.sum(jnp.exp(logits - m), axis=1, keepdims=True)) + m
    o_ref[0] = logits - lse


def init_params(key, num_class=40, num_channel=3, dtype=jnp.float32):
    """Deterministic synthetic parameters with the module's shapes (weights as (C_in, C_out))."""
    dims = [
        ("w1", (num_channel, 128)), ("b1", (1, 128)),
        ("w2", (128, 256)),         ("b2", (1, 256)),
        ("w3", (512, 512)),         ("b3", (1, 512)),   # rows 0:256 -> pointfeat, 256:512 -> global
        ("w4", (512, 1024)),        ("b4", (1, 1024)),
        ("fw1", (1024, 512)),       ("fb1", (1, 512)),
        ("fw2", (512, 256)),        ("fb2", (1, 256)),
        ("fw3", (256, num_class)),  ("fb3", (1, num_class)),
    ]
    keys = jax.random.split(key, len(dims))
    p = {name: (0.05 * jax.random.normal(k, shape)).astype(dtype)
         for (name, shape), k in zip(dims, keys)}

    # BatchNorm1d default init: gamma=1, beta=0, running_mean=0, running_var=1, eps=1e-5.
    eps = 1e-5
    for name, dim in (("1", 512), ("2", 256)):
        gamma = jnp.ones((1, dim), dtype)
        beta = jnp.zeros((1, dim), dtype)
        rmean = jnp.zeros((1, dim), dtype)
        rvar = jnp.ones((1, dim), dtype)
        scale = gamma / jnp.sqrt(rvar + eps)
        shift = beta - rmean * scale
        p["s" + name] = scale
        p["sh" + name] = shift
    return p


def _fold_params(params):
    """Cast matmul weights to bf16, split w3, pad w1's K dim to >=8, fold BN into fc1/fc2."""
    bf = jnp.bfloat16
    f32 = jnp.float32

    w1 = params["w1"]
    C = w1.shape[0]
    Cp = max(8, C)
    if Cp > C:
        w1 = jnp.pad(w1, ((0, Cp - C), (0, 0)))

    fw1 = params["fw1"] * params["s1"]
    fb1 = params["fb1"] * params["s1"] + params["sh1"]
    fw2 = params["fw2"] * params["s2"]
    fb2 = params["fb2"] * params["s2"] + params["sh2"]

    weights = [
        w1.astype(bf),                    params["b1"].astype(f32),
        params["w2"].astype(bf),          params["b2"].astype(f32),
        params["w3"][:256].astype(bf),    params["w3"][256:].astype(bf),
        params["b3"].astype(f32),
        params["w4"].astype(bf),          params["b4"].astype(f32),
        fw1.astype(bf),                   fb1.astype(f32),
        fw2.astype(bf),                   fb2.astype(f32),
        params["fw3"].astype(bf),         params["fb3"].astype(f32),
    ]
    return weights, Cp


def _pick_batch_tile(B, N, target_rows=256, max_rows=2048):
    """Largest divisor of B keeping Bt*N <= max_rows; stop once Bt*N >= target_rows."""
    best = 1
    for bt in range(1, B + 1):
        if B % bt == 0 and bt * N <= max_rows:
            best = bt
            if bt * N >= target_rows:
                break
    return best


def pcn_cls_forward(x_bcn, params):
    """x_bcn: (B, C, N) float32 (PyTorch layout).  Returns (B, num_class) float32 log-probs."""
    B, C, N = x_bcn.shape
    assert N % 8 == 0, "point count must be a multiple of 8 (sublane tiling)"
    num_class = params["fb3"].shape[-1]

    weights, Cp = _fold_params(params)

    # (B, C, N) -> (B, N, Cp) bf16, zero-padding the channel dim (w1 rows are zero-padded too).
    x = jnp.transpose(x_bcn, (0, 2, 1)).astype(jnp.bfloat16)
    if Cp > C:
        x = jnp.pad(x, ((0, 0), (0, 0), (0, Cp - C)))

    Bt = _pick_batch_tile(B, N)
    grid = (B // Bt,)

    in_specs = [pl.BlockSpec((Bt, N, Cp), lambda b: (b, 0, 0))] + \
               [pl.BlockSpec(w.shape, lambda b: (0, 0)) for w in weights]
    # 3-D output so the last two block dims always equal the full array dims.
    out_shape = jax.ShapeDtypeStruct((B // Bt, Bt, num_class), jnp.float32)
    out_spec = pl.BlockSpec((1, Bt, num_class), lambda b: (b, 0, 0))

    macs_point = Cp * 128 + 128 * 256 + 256 * 512 + 512 * 1024
    macs_batch = 256 * 512 + 1024 * 512 + 512 * 256 + 256 * num_class
    cost = pl.CostEstimate(
        flops=int(2 * (B * N * macs_point + B * macs_batch)),
        transcendentals=int(B * (num_class + 1)),
        bytes_accessed=int(x.size * x.dtype.itemsize
                           + sum(w.size * w.dtype.itemsize for w in weights)
                           + B * num_class * 4),
    )

    out = pl.pallas_call(
        pcn_cls_kernel,
        out_shape=out_shape,
        grid=grid,
        in_specs=in_specs,
        out_specs=out_spec,
        compiler_params=pltpu.CompilerParams(
            dimension_semantics=("parallel",),
            vmem_limit_bytes=48 << 20),
        cost_estimate=cost,
    )(x, *weights)
    return out.reshape(B, num_class)


if __name__ == "__main__":
    key = jax.random.PRNGKey(0)
    k_param, k_x = jax.random.split(key)

    num_class = 40
    num_channel = 3
    B, N = 2, 64                                  # small batch / point count

    params = init_params(k_param, num_class=num_class, num_channel=num_channel)
    x = jax.random.normal(k_x, (B, num_channel, N), dtype=jnp.float32)  # PyTorch (B,C,N)

    logp = pcn_cls_forward(x, params)
    jax.block_until_ready(logp)

    assert logp.shape == (B, num_class)
    # log_softmax rows must sum to ~1 in prob space.
    assert jnp.allclose(jnp.exp(logp).sum(axis=1), 1.0, atol=1e-4)
    print("KERNEL_OK")
</pallas_src>

<mosaic_0001>
module attributes {stable_mosaic.version = 11 : i64} {
  func.func @pcn_cls_kernel(%arg0: i32, %arg1: memref<2x64x8xbf16, #tpu.memory_space<vmem>>, %arg2: memref<8x128xbf16, #tpu.memory_space<vmem>>, %arg3: memref<1x128xf32, #tpu.memory_space<vmem>>, %arg4: memref<128x256xbf16, #tpu.memory_space<vmem>>, %arg5: memref<1x256xf32, #tpu.memory_space<vmem>>, %arg6: memref<256x512xbf16, #tpu.memory_space<vmem>>, %arg7: memref<256x512xbf16, #tpu.memory_space<vmem>>, %arg8: memref<1x512xf32, #tpu.memory_space<vmem>>, %arg9: memref<512x1024xbf16, #tpu.memory_space<vmem>>, %arg10: memref<1x1024xf32, #tpu.memory_space<vmem>>, %arg11: memref<1024x512xbf16, #tpu.memory_space<vmem>>, %arg12: memref<1x512xf32, #tpu.memory_space<vmem>>, %arg13: memref<512x256xbf16, #tpu.memory_space<vmem>>, %arg14: memref<1x256xf32, #tpu.memory_space<vmem>>, %arg15: memref<256x40xbf16, #tpu.memory_space<vmem>>, %arg16: memref<1x40xf32, #tpu.memory_space<vmem>>, %arg17: memref<1x2x40xf32, #tpu.memory_space<vmem>>) attributes {dimension_semantics = [#tpu.dimension_semantics<parallel>], iteration_bounds = array<i64: 1>, scalar_prefetch = 0 : i64, scratch_operands = 0 : i64, tpu.core_type = #tpu.core_type<tc>, window_params = [{transform_indices = @transform_0, window_bounds = array<i64: 2, 64, 8>}, {pipeline_mode = #tpu.pipeline_mode<synchronous>, transform_indices = @transform_1, window_bounds = array<i64: 8, 128>}, {pipeline_mode = #tpu.pipeline_mode<synchronous>, transform_indices = @transform_2, window_bounds = array<i64: 1, 128>}, {pipeline_mode = #tpu.pipeline_mode<synchronous>, transform_indices = @transform_3, window_bounds = array<i64: 128, 256>}, {pipeline_mode = #tpu.pipeline_mode<synchronous>, transform_indices = @transform_4, window_bounds = array<i64: 1, 256>}, {pipeline_mode = #tpu.pipeline_mode<synchronous>, transform_indices = @transform_5, window_bounds = array<i64: 256, 512>}, {pipeline_mode = #tpu.pipeline_mode<synchronous>, transform_indices = @transform_6, window_bounds = array<i64: 256, 512>}, {pipeline_mode = #tpu.pipeline_mode<synchronous>, transform_indices = @transform_7, window_bounds = array<i64: 1, 512>}, {pipeline_mode = #tpu.pipeline_mode<synchronous>, transform_indices = @transform_8, window_bounds = array<i64: 512, 1024>}, {pipeline_mode = #tpu.pipeline_mode<synchronous>, transform_indices = @transform_9, window_bounds = array<i64: 1, 1024>}, {pipeline_mode = #tpu.pipeline_mode<synchronous>, transform_indices = @transform_10, window_bounds = array<i64: 1024, 512>}, {pipeline_mode = #tpu.pipeline_mode<synchronous>, transform_indices = @transform_11, window_bounds = array<i64: 1, 512>}, {pipeline_mode = #tpu.pipeline_mode<synchronous>, transform_indices = @transform_12, window_bounds = array<i64: 512, 256>}, {pipeline_mode = #tpu.pipeline_mode<synchronous>, transform_indices = @transform_13, window_bounds = array<i64: 1, 256>}, {pipeline_mode = #tpu.pipeline_mode<synchronous>, transform_indices = @transform_14, window_bounds = array<i64: 256, 40>}, {pipeline_mode = #tpu.pipeline_mode<synchronous>, transform_indices = @transform_15, window_bounds = array<i64: 1, 40>}, {transform_indices = @transform_16, window_bounds = array<i64: 1, 2, 40>}]} {
    %c0 = arith.constant 0 : index
    %c0_0 = arith.constant 0 : index
    %c0_1 = arith.constant 0 : index
    %0 = vector.load %arg1[%c0, %c0_0, %c0_1] : memref<2x64x8xbf16, #tpu.memory_space<vmem>>, vector<2x64x8xbf16>
    %1 = vector.shape_cast %0 : vector<2x64x8xbf16> to vector<128x8xbf16>
    %c0_2 = arith.constant 0 : index
    %c0_3 = arith.constant 0 : index
    %2 = vector.load %arg2[%c0_2, %c0_3] : memref<8x128xbf16, #tpu.memory_space<vmem>>, vector<8x128xbf16>
    %cst = arith.constant dense<0.000000e+00> : vector<128x128xf32>
    %3 = tpu.matmul %1, %2, %cst {dimension_numbers = #tpu.dot_dimension_numbers<[1], [0], [0], [1], [0, 0, 1, 1], [], []>} : vector<128x8xbf16>, vector<8x128xbf16>, vector<128x128xf32> -> vector<128x128xf32>
    %c0_4 = arith.constant 0 : index
    %c0_5 = arith.constant 0 : index
    %4 = vector.load %arg3[%c0_4, %c0_5] : memref<1x128xf32, #tpu.memory_space<vmem>>, vector<1x128xf32>
    %5 = vector.broadcast %4 : vector<1x128xf32> to vector<128x128xf32>
    %6 = arith.addf %3, %5 : vector<128x128xf32>
    %cst_6 = arith.constant 0.000000e+00 : f32
    %7 = vector.broadcast %cst_6 : f32 to vector<128x128xf32>
    %8 = arith.maximumf %6, %7 : vector<128x128xf32>
    %9 = arith.truncf %8 : vector<128x128xf32> to vector<128x128xbf16>
    %c0_7 = arith.constant 0 : index
    %c0_8 = arith.constant 0 : index
    %10 = vector.load %arg4[%c0_7, %c0_8] : memref<128x256xbf16, #tpu.memory_space<vmem>>, vector<128x256xbf16>
    %cst_9 = arith.constant dense<0.000000e+00> : vector<128x256xf32>
    %11 = tpu.matmul %9, %10, %cst_9 {dimension_numbers = #tpu.dot_dimension_numbers<[1], [0], [0], [1], [0, 0, 1, 1], [], []>} : vector<128x128xbf16>, vector<128x256xbf16>, vector<128x256xf32> -> vector<128x256xf32>
    %c0_10 = arith.constant 0 : index
    %c0_11 = arith.constant 0 : index
    %12 = vector.load %arg5[%c0_10, %c0_11] : memref<1x256xf32, #tpu.memory_space<vmem>>, vector<1x256xf32>
    %13 = vector.broadcast %12 : vector<1x256xf32> to vector<128x256xf32>
    %14 = arith.addf %11, %13 : vector<128x256xf32>
    %15 = vector.shape_cast %14 : vector<128x256xf32> to vector<2x64x256xf32>
    %cst_12 = arith.constant dense<0xFF800000> : vector<2x256xf32>
    %16 = vector.multi_reduction <maximumf>, %15, %cst_12 [1] : vector<2x64x256xf32> to vector<2x256xf32>
    %17 = arith.truncf %14 : vector<128x256xf32> to vector<128x256xbf16>
    %c0_13 = arith.constant 0 : index
    %c0_14 = arith.constant 0 : index
    %18 = vector.load %arg6[%c0_13, %c0_14] : memref<256x512xbf16, #tpu.memory_space<vmem>>, vector<256x512xbf16>
    %cst_15 = arith.constant dense<0.000000e+00> : vector<128x512xf32>
    %19 = tpu.matmul %17, %18, %cst_15 {dimension_numbers = #tpu.dot_dimension_numbers<[1], [0], [0], [1], [0, 0, 1, 1], [], []>} : vector<128x256xbf16>, vector<256x512xbf16>, vector<128x512xf32> -> vector<128x512xf32>
    %20 = arith.truncf %16 : vector<2x256xf32> to vector<2x256xbf16>
    %c0_16 = arith.constant 0 : index
    %c0_17 = arith.constant 0 : index
    %21 = vector.load %arg7[%c0_16, %c0_17] : memref<256x512xbf16, #tpu.memory_space<vmem>>, vector<256x512xbf16>
    %cst_18 = arith.constant dense<0.000000e+00> : vector<2x512xf32>
    %22 = tpu.matmul %20, %21, %cst_18 {dimension_numbers = #tpu.dot_dimension_numbers<[1], [0], [0], [1], [0, 0, 1, 1], [], []>} : vector<2x256xbf16>, vector<256x512xbf16>, vector<2x512xf32> -> vector<2x512xf32>
    %23 = vector.shape_cast %19 : vector<128x512xf32> to vector<2x64x512xf32>
    %24 = vector.shape_cast %22 : vector<2x512xf32> to vector<2x1x512xf32>
    %25 = vector.broadcast %24 : vector<2x1x512xf32> to vector<2x64x512xf32>
    %26 = arith.addf %23, %25 : vector<2x64x512xf32>
    %c0_19 = arith.constant 0 : index
    %c0_20 = arith.constant 0 : index
    %27 = vector.load %arg8[%c0_19, %c0_20] : memref<1x512xf32, #tpu.memory_space<vmem>>, vector<1x512xf32>
    %28 = vector.shape_cast %27 : vector<1x512xf32> to vector<1x1x512xf32>
    %29 = vector.broadcast %28 : vector<1x1x512xf32> to vector<2x64x512xf32>
    %30 = arith.addf %26, %29 : vector<2x64x512xf32>
    %cst_21 = arith.constant 0.000000e+00 : f32
    %31 = vector.broadcast %cst_21 : f32 to vector<2x64x512xf32>
    %32 = arith.maximumf %30, %31 : vector<2x64x512xf32>
    %33 = vector.shape_cast %32 : vector<2x64x512xf32> to vector<128x512xf32>
    %34 = arith.truncf %33 : vector<128x512xf32> to vector<128x512xbf16>
    %c0_22 = arith.constant 0 : index
    %c0_23 = arith.constant 0 : index
    %35 = vector.load %arg9[%c0_22, %c0_23] : memref<512x1024xbf16, #tpu.memory_space<vmem>>, vector<512x1024xbf16>
    %cst_24 = arith.constant dense<0.000000e+00> : vector<128x1024xf32>
    %36 = tpu.matmul %34, %35, %cst_24 {dimension_numbers = #tpu.dot_dimension_numbers<[1], [0], [0], [1], [0, 0, 1, 1], [], []>} : vector<128x512xbf16>, vector<512x1024xbf16>, vector<128x1024xf32> -> vector<128x1024xf32>
    %c0_25 = arith.constant 0 : index
    %c0_26 = arith.constant 0 : index
    %37 = vector.load %arg10[%c0_25, %c0_26] : memref<1x1024xf32, #tpu.memory_space<vmem>>, vector<1x1024xf32>
    %38 = vector.broadcast %37 : vector<1x1024xf32> to vector<128x1024xf32>
    %39 = arith.addf %36, %38 : vector<128x1024xf32>
    %40 = vector.shape_cast %39 : vector<128x1024xf32> to vector<2x64x1024xf32>
    %cst_27 = arith.constant dense<0xFF800000> : vector<2x1024xf32>
    %41 = vector.multi_reduction <maximumf>, %40, %cst_27 [1] : vector<2x64x1024xf32> to vector<2x1024xf32>
    %42 = arith.truncf %41 : vector<2x1024xf32> to vector<2x1024xbf16>
    %c0_28 = arith.constant 0 : index
    %c0_29 = arith.constant 0 : index
    %43 = vector.load %arg11[%c0_28, %c0_29] : memref<1024x512xbf16, #tpu.memory_space<vmem>>, vector<1024x512xbf16>
    %cst_30 = arith.constant dense<0.000000e+00> : vector<2x512xf32>
    %44 = tpu.matmul %42, %43, %cst_30 {dimension_numbers = #tpu.dot_dimension_numbers<[1], [0], [0], [1], [0, 0, 1, 1], [], []>} : vector<2x1024xbf16>, vector<1024x512xbf16>, vector<2x512xf32> -> vector<2x512xf32>
    %c0_31 = arith.constant 0 : index
    %c0_32 = arith.constant 0 : index
    %45 = vector.load %arg12[%c0_31, %c0_32] : memref<1x512xf32, #tpu.memory_space<vmem>>, vector<1x512xf32>
    %46 = vector.broadcast %45 : vector<1x512xf32> to vector<2x512xf32>
    %47 = arith.addf %44, %46 : vector<2x512xf32>
    %cst_33 = arith.constant 0.000000e+00 : f32
    %48 = vector.broadcast %cst_33 : f32 to vector<2x512xf32>
    %49 = arith.maximumf %47, %48 : vector<2x512xf32>
    %50 = arith.truncf %49 : vector<2x512xf32> to vector<2x512xbf16>
    %c0_34 = arith.constant 0 : index
    %c0_35 = arith.constant 0 : index
    %51 = vector.load %arg13[%c0_34, %c0_35] : memref<512x256xbf16, #tpu.memory_space<vmem>>, vector<512x256xbf16>
    %cst_36 = arith.constant dense<0.000000e+00> : vector<2x256xf32>
    %52 = tpu.matmul %50, %51, %cst_36 {dimension_numbers = #tpu.dot_dimension_numbers<[1], [0], [0], [1], [0, 0, 1, 1], [], []>} : vector<2x512xbf16>, vector<512x256xbf16>, vector<2x256xf32> -> vector<2x256xf32>
    %c0_37 = arith.constant 0 : index
    %c0_38 = arith.constant 0 : index
    %53 = vector.load %arg14[%c0_37, %c0_38] : memref<1x256xf32, #tpu.memory_space<vmem>>, vector<1x256xf32>
    %54 = vector.broadcast %53 : vector<1x256xf32> to vector<2x256xf32>
    %55 = arith.addf %52, %54 : vector<2x256xf32>
    %cst_39 = arith.constant 0.000000e+00 : f32
    %56 = vector.broadcast %cst_39 : f32 to vector<2x256xf32>
    %57 = arith.maximumf %55, %56 : vector<2x256xf32>
    %58 = arith.truncf %57 : vector<2x256xf32> to vector<2x256xbf16>
    %c0_40 = arith.constant 0 : index
    %c0_41 = arith.constant 0 : index
    %59 = vector.load %arg15[%c0_40, %c0_41] : memref<256x40xbf16, #tpu.memory_space<vmem>>, vector<256x40xbf16>
    %cst_42 = arith.constant dense<0.000000e+00> : vector<2x40xf32>
    %60 = tpu.matmul %58, %59, %cst_42 {dimension_numbers = #tpu.dot_dimension_numbers<[1], [0], [0], [1], [0, 0, 1, 1], [], []>} : vector<2x256xbf16>, vector<256x40xbf16>, vector<2x40xf32> -> vector<2x40xf32>
    %c0_43 = arith.constant 0 : index
    %c0_44 = arith.constant 0 : index
    %61 = vector.load %arg16[%c0_43, %c0_44] : memref<1x40xf32, #tpu.memory_space<vmem>>, vector<1x40xf32>
    %62 = vector.broadcast %61 : vector<1x40xf32> to vector<2x40xf32>
    %63 = arith.addf %60, %62 : vector<2x40xf32>
    %cst_45 = arith.constant dense<0xFF800000> : vector<2xf32>
    %64 = vector.multi_reduction <maximumf>, %63, %cst_45 [1] : vector<2x40xf32> to vector<2xf32>
    %65 = vector.shape_cast %64 : vector<2xf32> to vector<2x1xf32>
    %66 = vector.broadcast %65 : vector<2x1xf32> to vector<2x40xf32>
    %67 = arith.subf %63, %66 : vector<2x40xf32>
    %68 = math.exp %67 : vector<2x40xf32>
    %cst_46 = arith.constant dense<0.000000e+00> : vector<2xf32>
    %69 = vector.multi_reduction <add>, %68, %cst_46 [1] : vector<2x40xf32> to vector<2xf32>
    %70 = vector.shape_cast %69 : vector<2xf32> to vector<2x1xf32>
    %71 = math.log %70 : vector<2x1xf32>
    %72 = arith.addf %71, %65 : vector<2x1xf32>
    %73 = vector.broadcast %72 : vector<2x1xf32> to vector<2x40xf32>
    %74 = arith.subf %63, %73 : vector<2x40xf32>
    %c0_47 = arith.constant 0 : index
    %c0_48 = arith.constant 0 : index
    %c0_49 = arith.constant 0 : index
    %75 = vector.load %arg17[%c0_47, %c0_48, %c0_49] : memref<1x2x40xf32, #tpu.memory_space<vmem>>, vector<1x2x40xf32>
    %76 = vector.shape_cast %75 : vector<1x2x40xf32> to vector<2x40xf32>
    %77 = vector.shape_cast %74 : vector<2x40xf32> to vector<1x2x40xf32>
    tpu.vector_store %arg17[%c0_47, %c0_48, %c0_49], %77 {strides = array<i32>} : memref<1x2x40xf32, #tpu.memory_space<vmem>>, vector<1x2x40xf32>,
    return
  }
  func.func @transform_0(%arg0: i32) -> (i32, i32, i32) {
    %c0_i32 = arith.constant 0 : i32
    %c0_i32_0 = arith.constant 0 : i32
    %c0_i32_1 = arith.constant 0 : i32
    return %arg0, %c0_i32, %c0_i32_0 : i32, i32, i32
  }
  func.func @transform_1(%arg0: i32) -> (i32, i32) {
    %c0_i32 = arith.constant 0 : i32
    %c0_i32_0 = arith.constant 0 : i32
    %c0_i32_1 = arith.constant 0 : i32
    return %c0_i32, %c0_i32_0 : i32, i32
  }
  func.func @transform_2(%arg0: i32) -> (i32, i32) {
    %c0_i32 = arith.constant 0 : i32
    %c0_i32_0 = arith.constant 0 : i32
    %c0_i32_1 = arith.constant 0 : i32
    return %c0_i32, %c0_i32_0 : i32, i32
  }
  func.func @transform_3(%arg0: i32) -> (i32, i32) {
    %c0_i32 = arith.constant 0 : i32
    %c0_i32_0 = arith.constant 0 : i32
    %c0_i32_1 = arith.constant 0 : i32
    return %c0_i32, %c0_i32_0 : i32, i32
  }
  func.func @transform_4(%arg0: i32) -> (i32, i32) {
    %c0_i32 = arith.constant 0 : i32
    %c0_i32_0 = arith.constant 0 : i32
    %c0_i32_1 = arith.constant 0 : i32
    return %c0_i32, %c0_i32_0 : i32, i32
  }
  func.func @transform_5(%arg0: i32) -> (i32, i32) {
    %c0_i32 = arith.constant 0 : i32
    %c0_i32_0 = arith.constant 0 : i32
    %c0_i32_1 = arith.constant 0 : i32
    return %c0_i32, %c0_i32_0 : i32, i32
  }
  func.func @transform_6(%arg0: i32) -> (i32, i32) {
    %c0_i32 = arith.constant 0 : i32
    %c0_i32_0 = arith.constant 0 : i32
    %c0_i32_1 = arith.constant 0 : i32
    return %c0_i32, %c0_i32_0 : i32, i32
  }
  func.func @transform_7(%arg0: i32) -> (i32, i32) {
    %c0_i32 = arith.constant 0 : i32
    %c0_i32_0 = arith.constant 0 : i32
    %c0_i32_1 = arith.constant 0 : i32
    return %c0_i32, %c0_i32_0 : i32, i32
  }
  func.func @transform_8(%arg0: i32) -> (i32, i32) {
    %c0_i32 = arith.constant 0 : i32
    %c0_i32_0 = arith.constant 0 : i32
    %c0_i32_1 = arith.constant 0 : i32
    return %c0_i32, %c0_i32_0 : i32, i32
  }
  func.func @transform_9(%arg0: i32) -> (i32, i32) {
    %c0_i32 = arith.constant 0 : i32
    %c0_i32_0 = arith.constant 0 : i32
    %c0_i32_1 = arith.constant 0 : i32
    return %c0_i32, %c0_i32_0 : i32, i32
  }
  func.func @transform_10(%arg0: i32) -> (i32, i32) {
    %c0_i32 = arith.constant 0 : i32
    %c0_i32_0 = arith.constant 0 : i32
    %c0_i32_1 = arith.constant 0 : i32
    return %c0_i32, %c0_i32_0 : i32, i32
  }
  func.func @transform_11(%arg0: i32) -> (i32, i32) {
    %c0_i32 = arith.constant 0 : i32
    %c0_i32_0 = arith.constant 0 : i32
    %c0_i32_1 = arith.constant 0 : i32
    return %c0_i32, %c0_i32_0 : i32, i32
  }
  func.func @transform_12(%arg0: i32) -> (i32, i32) {
    %c0_i32 = arith.constant 0 : i32
    %c0_i32_0 = arith.constant 0 : i32
    %c0_i32_1 = arith.constant 0 : i32
    return %c0_i32, %c0_i32_0 : i32, i32
  }
  func.func @transform_13(%arg0: i32) -> (i32, i32) {
    %c0_i32 = arith.constant 0 : i32
    %c0_i32_0 = arith.constant 0 : i32
    %c0_i32_1 = arith.constant 0 : i32
    return %c0_i32, %c0_i32_0 : i32, i32
  }
  func.func @transform_14(%arg0: i32) -> (i32, i32) {
    %c0_i32 = arith.constant 0 : i32
    %c0_i32_0 = arith.constant 0 : i32
    %c0_i32_1 = arith.constant 0 : i32
    return %c0_i32, %c0_i32_0 : i32, i32
  }
  func.func @transform_15(%arg0: i32) -> (i32, i32) {
    %c0_i32 = arith.constant 0 : i32
    %c0_i32_0 = arith.constant 0 : i32
    %c0_i32_1 = arith.constant 0 : i32
    return %c0_i32, %c0_i32_0 : i32, i32
  }
  func.func @transform_16(%arg0: i32) -> (i32, i32, i32) {
    %c0_i32 = arith.constant 0 : i32
    %c0_i32_0 = arith.constant 0 : i32
    %c0_i32_1 = arith.constant 0 : i32
    return %arg0, %c0_i32, %c0_i32_0 : i32, i32, i32
  }
}

</mosaic_0001>

<bundles_post_ra>
// kernel: tpu_custom_call.1
= control target key start
LH: loop header
LB: loop body
LE: loop exit
PB: predicated region body
PF: predicated region fallthrough
CT: control target
= control target key end

     0   :  { %s10965_s0 = inlined_call_operand.vmem [shape: bf16[2,64,8], index: 0, kind: input, shape index: {}]   ;;  %s10966_s1 = inlined_call_operand.vmem [shape: bf16[8,128], index: 1, kind: input, shape index: {}]   ;;  %s10967_s2 = inlined_call_operand.vmem [shape: f32[1,128], index: 2, kind: input, shape index: {}]   ;;  %s10968_s3 = inlined_call_operand.vmem [shape: bf16[128,256], index: 3, kind: input, shape index: {}]   ;;  %s10969_s4 = inlined_call_operand.vmem [shape: f32[1,256], index: 4, kind: input, shape index: {}]   ;;  %s10970_s5 = inlined_call_operand.hbm [shape: bf16[256,512], index: 5, kind: input, shape index: {}]   ;;  %s10971_s6 = inlined_call_operand.hbm [shape: bf16[256,512], index: 6, kind: input, shape index: {}]   ;;  %s10972_s7 = inlined_call_operand.vmem [shape: f32[1,512], index: 7, kind: input, shape index: {}]   ;;  %s10973_s8 = inlined_call_operand.hbm [shape: bf16[512,1024], index: 8, kind: input, shape index: {}]   ;;  %s10974_s9 = inlined_call_operand.vmem [shape: f32[1,1024], index: 9, kind: input, shape index: {}]   ;;  %s10975_s10 = inlined_call_operand.hbm [shape: bf16[1024,512], index: 10, kind: input, shape index: {}]   ;;  %s10976_s11 = inlined_call_operand.vmem [shape: f32[1,512], index: 11, kind: input, shape index: {}]   ;;  %s10977_s12 = inlined_call_operand.hbm [shape: bf16[512,256], index: 12, kind: input, shape index: {}]   ;;  %s10978_s13 = inlined_call_operand.vmem [shape: f32[1,256], index: 13, kind: input, shape index: {}]   ;;  %s10979_s14 = inlined_call_operand.vmem [shape: bf16[256,40], index: 14, kind: input, shape index: {}]   ;;  %s10980_s15 = inlined_call_operand.vmem [shape: f32[1,40], index: 15, kind: input, shape index: {}]   ;;  %s10981_s16 = inlined_call_operand.hbm [shape: f32[1,2,40], index: 16, kind: output, shape index: {}]  }
   0x1   :  { %11053 = sst [smem:[#allocation94_spill]] %s10965_s0 }
   0x2   :  { %21 = vsyncpa [#allocation3], 0 }
   0x3   :  { %22 = vsyncpa [#allocation6], 0 }
   0x4   :  { %23 = vsyncpa [#allocation9], 0 }
   0x5   :  { %24 = vsyncpa [#allocation4], 0  ;;  %s9059_s21 = smov [#allocation5]   ;;  %s9060_s23 = smov [#allocation8]  }
   0x6   :  { %s52_s22 = sshll.u32 %s9059_s21, 4  ;;  %s80_s24 = sshll.u32 %s9060_s23, 4  ;;  %s53_s22 = int_to_ptr.vmem [resolvable:$true] %s52_s22  ;;  %s81_s24 = int_to_ptr.vmem [resolvable:$true] %s80_s24 }
   0x7   :  { %s8939_s25 = scalar_lea.vmem %s53_s22, 8192  ;;  %p8944_p1 = scmp.lt.s32.totalorder %s53_s22, %s53_s22 }
   0x8   :  { %p8940_p0 = scmp.ne.s32.totalorder %s53_s22, %s8939_s25  ;;  %p8945_p2 = scmp.lt.s32.totalorder %s8939_s25, %s8939_s25 }
   0xa   :  { %p8946_p3 = por %p8945_p2, %p8944_p1 }
   0xc   :  { %p8947_p4 = pnand %p8946_p3, %p8940_p0 }
   0xe   :  { %8950 = shalt.err (!%p8947_p4)
}
   0xf   :  { %s9061_s26 = smov 256   ;;  %s9062_s27 = smov 16  }
  0x10   :  { %58 = dma.hbm_to_vmem [thread:$0]  %s10971_s6, 8192, %s53_s22, [#allocation6], %s9061_s26, %s9061_s26, %s9062_s27  }
  0x11   :  { %s8959_s30 = scalar_lea.vmem %s81_s24, 32768  ;;  %p8964_p6 = scmp.lt.s32.totalorder %s81_s24, %s81_s24 }
  0x12   :  { %p8960_p5 = scmp.ne.s32.totalorder %s81_s24, %s8959_s30  ;;  %p8965_p7 = scmp.lt.s32.totalorder %s8959_s30, %s8959_s30 }
  0x14   :  { %p8966_p8 = por %p8965_p7, %p8964_p6 }
  0x16   :  { %p8967_p9 = pnand %p8966_p8, %p8960_p5 }
  0x18   :  { %8970 = shalt.err (!%p8967_p9)
}
  0x19   :  { %86 = dma.hbm_to_vmem [thread:$0]  %s10975_s10, 32768, %s81_s24, [#allocation9], %s9061_s26, %s9061_s26, %s9062_s27  }
  0x1a   :  { %s9063_s18 = smov [#allocation2]   ;;  %s9064_s20 = smov [#allocation7]  }
  0x1b   :  { %s40_s19 = sshll.u32 %s9063_s18, 4  ;;  %s66_s21 = sshll.u32 %s9064_s20, 4  ;;  %s41_s19 = int_to_ptr.vmem [resolvable:$true] %s40_s19  ;;  %s67_s21 = int_to_ptr.vmem [resolvable:$true] %s66_s21 }
  0x1c   :  { %s8979_s23 = scalar_lea.vmem %s41_s19, 8192  ;;  %p8984_p11 = scmp.lt.s32.totalorder %s41_s19, %s41_s19 }
  0x1d   :  { %p8980_p10 = scmp.ne.s32.totalorder %s41_s19, %s8979_s23  ;;  %p8985_p12 = scmp.lt.s32.totalorder %s8979_s23, %s8979_s23 }
  0x1f   :  { %p8986_p13 = por %p8985_p12, %p8984_p11 }
  0x21   :  { %p8987_p0 = pnand %p8986_p13, %p8980_p10 }
  0x23   :  { %8990 = shalt.err (!%p8987_p0)
}
  0x24   :  { %46 = dma.hbm_to_vmem [thread:$0]  %s10970_s5, 8192, %s41_s19, [#allocation3], %s9061_s26, %s9061_s26, %s9062_s27  }
  0x25   :  { %s8999_s25 = scalar_lea.vmem %s67_s21, 32768  ;;  %p9004_p2 = scmp.lt.s32.totalorder %s67_s21, %s67_s21 }
  0x26   :  { %p9000_p1 = scmp.ne.s32.totalorder %s67_s21, %s8999_s25  ;;  %p9005_p3 = scmp.lt.s32.totalorder %s8999_s25, %s8999_s25 }
  0x28   :  { %p9006_p4 = por %p9005_p3, %p9004_p2 }
  0x2a   :  { %p9007_p5 = pnand %p9006_p4, %p9000_p1 }
  0x2c   :  { %9010 = shalt.err (!%p9007_p5)
}
  0x2d   :  { %s9065_s10 = smov 512   ;;  %s9066_s24 = smov 32  }
  0x2e   :  { %72 = dma.hbm_to_vmem [thread:$0]  %s10973_s8, 32768, %s67_s21, [#allocation6], %s9065_s10, %s9065_s10, %s9066_s24  }
  0x2f   :  { %s9067_s30 = smov [#allocation10]  }
  0x30   :  { %s94_s0 = sshll.u32 %s9067_s30, 4  ;;  %s95_s0 = int_to_ptr.vmem [resolvable:$true] %s94_s0 }
  0x31   :  { %s9019_s17 = scalar_lea.vmem %s95_s0, 8192  ;;  %p9024_p7 = scmp.lt.s32.totalorder %s95_s0, %s95_s0 }
  0x32   :  { %p9020_p6 = scmp.ne.s32.totalorder %s95_s0, %s9019_s17  ;;  %p9025_p8 = scmp.lt.s32.totalorder %s9019_s17, %s9019_s17 }
  0x34   :  { %p9026_p9 = por %p9025_p8, %p9024_p7 }
  0x36   :  { %p9027_p10 = pnand %p9026_p9, %p9020_p6 }
  0x38   :  { %9030 = shalt.err (!%p9027_p10)
}
  0x39   :  { %s9068_s5 = smov 128   ;;  %s9069_s26 = smov 8  }
  0x3a   :  { %100 = dma.hbm_to_vmem [thread:$0]  %s10977_s12, 8192, %s95_s0, [#allocation9], %s9068_s5, %s9068_s5, %s9069_s26  }
  0x3b   :  { %9051 = dma.done.wait [#allocation3], 8192  }
  0x3c   :  { %9052 = vsyncadd [#allocation3], 4294959104 }
  0x3d   :  { %9053 = dma.done.wait [#allocation6], 40960  }
  0x3e   :  { %9054 = vsyncadd [#allocation6], 4294926336 }
  0x3f   :  { %9055 = dma.done.wait [#allocation9], 40960  }
  0x40   :  { %9056 = vsyncadd [#allocation9], 4294926336  ;;  %vm212_vm0 = vcmask 1043456   ;;  %vm187_vm1 = vcmask 64512   ;;  %v139_v0 = vld [vmem:[%s10966_s1] sm:$0xf] }
  0x41   :  { %8191 = vmatprep.subr.msk.bf16.mxu0 %vm212_vm0, %v139_v0  ;;  %v214_v1 = vsel %vm212_vm0, %v139_v0, 0  ;;  %s11054_s23 = sld [smem:[#allocation94_spill]]  ;;  %v8214_v6 = vld [vmem:[%s10968_s3 + $0x74] ss:$8 sps:$4 sm:$0xff]   ;;  %v8216_v7 = vld [vmem:[%s10968_s3 + $0x70] ss:$8 sps:$4 sm:$0xff]  }
  0x42   :  { %8174 = vmatpush3.bf16.msra.mxu0 %v214_v1  ;;  %v8217_v9 = vld [vmem:[%s10968_s3 + $0x64] ss:$8 sps:$4 sm:$0xff]   ;;  %445 = vmatprep.subr.bf16.mxu1 %v8214_v6  ;;  %v8219_v10 = vld [vmem:[%s10968_s3 + $0x60] ss:$8 sps:$4 sm:$0xff]   ;;  %v8220_v11 = vld [vmem:[%s10968_s3 + $0x54] ss:$8 sps:$4 sm:$0xff]  }
  0x43   :  { %446 = vmatpush1.bf16.msra.mxu1 %v8216_v7  ;;  %v8222_v12 = vld [vmem:[%s10968_s3 + $0x50] ss:$8 sps:$4 sm:$0xff]   ;;  %v8223_v14 = vld [vmem:[%s10968_s3 + $0x44] ss:$8 sps:$4 sm:$0xff]   ;;  %v8225_v16 = vld [vmem:[%s10968_s3 + $0x40] ss:$8 sps:$4 sm:$0xff]  }
  0x44   :  { %447 = vmatprep.subr.bf16.mxu1 %v8217_v9  ;;  %v8226_v17 = vld [vmem:[%s10968_s3 + $0x34] ss:$8 sps:$4 sm:$0xff]   ;;  %v8228_v18 = vld [vmem:[%s10968_s3 + $0x30] ss:$8 sps:$4 sm:$0xff]   ;;  %v8229_v20 = vld [vmem:[%s10968_s3 + $0x24] ss:$8 sps:$4 sm:$0xff]  }
  0x45   :  { %v8231_v21 = vld [vmem:[%s10968_s3 + $0x20] ss:$8 sps:$4 sm:$0xff]   ;;  %v8232_v22 = vld [vmem:[%s10968_s3 + $0x14] ss:$8 sps:$4 sm:$0xff]   ;;  %v8234_v23 = vld [vmem:[%s10968_s3 + $0x10] ss:$8 sps:$4 sm:$0xff]  }
  0x46   :  { %v8235_v24 = vld [vmem:[%s10968_s3 + $0x4] ss:$8 sps:$4 sm:$0xff]   ;;  %v8237_v25 = vld [vmem:[%s10968_s3] ss:$8 sps:$4 sm:$0xff]   ;;  %v9070_v26 = vmov 0   ;;  %vm1312_vm2 = vcmask 1041409  }
  0x47   :  { %v8206_v2 = vld [vmem:[%s11054_s23] sm:$0xff]   ;;  %v8207_v3 = vld [vmem:[%s11054_s23 + $0x8] sm:$0xff]   ;;  %v8208_v4 = vld [vmem:[%s11054_s23 + $0x10] sm:$0xff]   ;;  %448 = vmatpush1.bf16.msra.mxu1 %v8219_v10  ;;  %477 = vmatprep.mubr.bf16.mxu1 %v9070_v26  ;;  %vm7356_vm3 = vcmask 320512  }
  0x48   :  { %8175 = vmatprep.mubr.msk.bf16.mxu0 %vm187_vm1, %v8206_v2  ;;  %v8209_v5 = vld [vmem:[%s11054_s23 + $0x18] sm:$0xff]   ;;  %v8210_v8 = vld [vmem:[%s11054_s23 + $0x20] sm:$0xff]   ;;  %v8211_v13 = vld [vmem:[%s11054_s23 + $0x28] sm:$0xff]   ;;  %449 = vmatprep.subr.bf16.mxu1 %v8220_v11 }
  0x49   :  { %8176 = vmatmul.mubr.msk.bf16.vlgmr.msra.gmra.mxu0 %vm187_vm1, %v8207_v3  ;;  %v8212_v15 = vld [vmem:[%s11054_s23 + $0x30] sm:$0xff]   ;;  %v8213_v19 = vld [vmem:[%s11054_s23 + $0x38] sm:$0xff]   ;;  %v9260_v56 = vld [vmem:[%s10967_s2] ss:$0 sm:$0xff] }
  0x4a   :  { %8179 = vmatprep.mubr.msk.bf16.mxu0 %vm187_vm1, %v8208_v4  ;;  %v8238_v27 = vld [vmem:[#allocation2 + $0xe0] ss:$16 sps:$4 sm:$0xff]   ;;  %v8240_v28 = vld [vmem:[#allocation2 + $0xe4] ss:$16 sps:$4 sm:$0xff]   ;;  %v8243_v29 = vld [vmem:[#allocation2 + $0xec] ss:$16 sps:$4 sm:$0xff]  }
  0x4b   :  { %450 = vmatpush1.bf16.msra.mxu1 %v8222_v12  ;;  %v8246_v30 = vld [vmem:[#allocation2 + $0xc4] ss:$16 sps:$4 sm:$0xff]   ;;  %1010 = vmatprep.subr.bf16.mxu0 %v8240_v28  ;;  %v8244_v31 = vld [vmem:[#allocation2 + $0xc0] ss:$16 sps:$4 sm:$0xff]   ;;  %v8241_v1 = vld [vmem:[#allocation2 + $0xe8] ss:$16 sps:$4 sm:$0xff]  }
  0x4c   :  { %451 = vmatprep.subr.bf16.mxu1 %v8223_v14  ;;  %1011 = vmatpush1.bf16.msra.mxu0 %v8238_v27  ;;  %v8252_v32 = vld [vmem:[#allocation2 + $0xa4] ss:$16 sps:$4 sm:$0xff]   ;;  %v8250_v33 = vld [vmem:[#allocation2 + $0xa0] ss:$16 sps:$4 sm:$0xff]   ;;  %v8249_v4 = vld [vmem:[#allocation2 + $0xcc] ss:$16 sps:$4 sm:$0xff]  }
  0x4d   :  { %1012 = vmatprep.subr.bf16.mxu0 %v8246_v30  ;;  %v8258_v34 = vld [vmem:[#allocation2 + $0x84] ss:$16 sps:$4 sm:$0xff]   ;;  %v8256_v35 = vld [vmem:[#allocation2 + $0x80] ss:$16 sps:$4 sm:$0xff]   ;;  %v8247_v7 = vld [vmem:[#allocation2 + $0xc8] ss:$16 sps:$4 sm:$0xff]  }
  0x4e   :  { %v8264_v36 = vld [vmem:[#allocation2 + $0x64] ss:$16 sps:$4 sm:$0xff]   ;;  %v8262_v37 = vld [vmem:[#allocation2 + $0x60] ss:$16 sps:$4 sm:$0xff]   ;;  %v8255_v9 = vld [vmem:[#allocation2 + $0xac] ss:$16 sps:$4 sm:$0xff]  }
  0x4f   :  { %452 = vmatpush1.bf16.msra.mxu1 %v8225_v16  ;;  %v8270_v38 = vld [vmem:[#allocation2 + $0x44] ss:$16 sps:$4 sm:$0xff]   ;;  %v8268_v39 = vld [vmem:[#allocation2 + $0x40] ss:$16 sps:$4 sm:$0xff]   ;;  %v8253_v12 = vld [vmem:[#allocation2 + $0xa8] ss:$16 sps:$4 sm:$0xff]  }
  0x50   :  { %453 = vmatprep.subr.bf16.mxu1 %v8226_v17  ;;  %1013 = vmatpush1.bf16.msra.mxu0 %v8244_v31  ;;  %v8276_v40 = vld [vmem:[#allocation2 + $0x24] ss:$16 sps:$4 sm:$0xff]   ;;  %v8274_v41 = vld [vmem:[#allocation2 + $0x20] ss:$16 sps:$4 sm:$0xff]   ;;  %v8261_v16 = vld [vmem:[#allocation2 + $0x8c] ss:$16 sps:$4 sm:$0xff]  }
  0x51   :  { %8180 = vmatmul.mubr.msk.bf16.gmra.mxu0 %vm187_vm1, %v8209_v5  ;;  %1014 = vmatprep.subr.bf16.mxu0 %v8252_v32  ;;  %v8282_v42 = vld [vmem:[#allocation2 + $0x4] ss:$16 sps:$4 sm:$0xff]   ;;  %v8280_v43 = vld [vmem:[#allocation2] ss:$16 sps:$4 sm:$0xff]   ;;  %v8273_v28 = vld [vmem:[#allocation2 + $0x4c] ss:$16 sps:$4 sm:$0xff]  }
  0x52   :  { %8183 = vmatprep.mubr.msk.bf16.mxu0 %vm187_vm1, %v8210_v8  ;;  %v8288_v44 = vld [vmem:[#allocation2 + $0x1e4] ss:$16 sps:$4 sm:$0xff]   ;;  %v8286_v45 = vld [vmem:[#allocation2 + $0x1e0] ss:$16 sps:$4 sm:$0xff]   ;;  %v8271_v30 = vld [vmem:[#allocation2 + $0x48] ss:$16 sps:$4 sm:$0xff]  }
  0x53   :  { %454 = vmatpush1.bf16.msra.mxu1 %v8228_v18  ;;  %v8294_v46 = vld [vmem:[#allocation2 + $0x1c4] ss:$16 sps:$4 sm:$0xff]   ;;  %v8292_v47 = vld [vmem:[#allocation2 + $0x1c0] ss:$16 sps:$4 sm:$0xff]   ;;  %v8259_v18 = vld [vmem:[#allocation2 + $0x88] ss:$16 sps:$4 sm:$0xff]  }
  0x54   :  { %455 = vmatprep.subr.bf16.mxu1 %v8229_v20  ;;  %1015 = vmatpush1.bf16.msra.mxu0 %v8250_v33  ;;  %v8300_v48 = vld [vmem:[#allocation2 + $0x1a4] ss:$16 sps:$4 sm:$0xff]   ;;  %v8298_v49 = vld [vmem:[#allocation2 + $0x1a0] ss:$16 sps:$4 sm:$0xff]   ;;  %v8279_v33 = vld [vmem:[#allocation2 + $0x2c] ss:$16 sps:$4 sm:$0xff]  }
  0x55   :  { %1016 = vmatprep.subr.bf16.mxu0 %v8258_v34  ;;  %v8306_v50 = vld [vmem:[#allocation2 + $0x184] ss:$16 sps:$4 sm:$0xff]   ;;  %v8304_v51 = vld [vmem:[#allocation2 + $0x180] ss:$16 sps:$4 sm:$0xff]  }
  0x56   :  { %v8312_v52 = vld [vmem:[#allocation2 + $0x164] ss:$16 sps:$4 sm:$0xff]   ;;  %v8310_v53 = vld [vmem:[#allocation2 + $0x160] ss:$16 sps:$4 sm:$0xff]  }
  0x57   :  { %456 = vmatpush1.bf16.msra.mxu1 %v8231_v21  ;;  %v8267_v21 = vld [vmem:[#allocation2 + $0x6c] ss:$16 sps:$4 sm:$0xff]  }
  0x58   :  { %457 = vmatprep.subr.bf16.mxu1 %v8232_v22  ;;  %1017 = vmatpush1.bf16.msra.mxu0 %v8256_v35  ;;  %v8277_v35 = vld [vmem:[#allocation2 + $0x28] ss:$16 sps:$4 sm:$0xff]  }
  0x59   :  { %8184 = vmatmul.mubr.msk.bf16.gmra.mxu0 %vm187_vm1, %v8211_v13  ;;  %1018 = vmatprep.subr.bf16.mxu0 %v8264_v36 }
  0x5a   :  { %8187 = vmatprep.mubr.msk.bf16.mxu0 %vm187_vm1, %v8212_v15 }
  0x5b   :  { %458 = vmatpush1.bf16.msra.mxu1 %v8234_v23  ;;  %v8265_v23 = vld [vmem:[#allocation2 + $0x68] ss:$16 sps:$4 sm:$0xff]  }
  0x5c   :  { %459 = vmatprep.subr.bf16.mxu1 %v8235_v24  ;;  %1019 = vmatpush1.bf16.msra.mxu0 %v8262_v37 }
  0x5d   :  { %1020 = vmatprep.subr.bf16.mxu0 %v8270_v38 }
  0x5f   :  { %460 = vmatpush1.bf16.msra.mxu1 %v8237_v25 }
  0x60   :  { %1123 = vmatprep.subr.bf16.mxu1 %v8243_v29  ;;  %1021 = vmatpush1.bf16.msra.mxu0 %v8268_v39  ;;  %v8285_v39 = vld [vmem:[#allocation2 + $0xc] ss:$16 sps:$4 sm:$0xff]  }
  0x61   :  { %8188 = vmatmul.mubr.msk.bf16.gmra.mxu0 %vm187_vm1, %v8213_v19  ;;  %1022 = vmatprep.subr.bf16.mxu0 %v8276_v40 }
  0x64   :  { %1023 = vmatpush1.bf16.msra.mxu0 %v8274_v41  ;;  %v8283_v41 = vld [vmem:[#allocation2 + $0x8] ss:$16 sps:$4 sm:$0xff]  }
  0x65   :  { %1024 = vmatprep.subr.bf16.mxu0 %v8282_v42 }
  0x68   :  { %1025 = vmatpush1.bf16.msra.mxu0 %v8280_v43 }
  0x69   :  { %1026 = vmatprep.subr.bf16.mxu0 %v8288_v44  ;;  %v8291_v44 = vld [vmem:[#allocation2 + $0x1ec] ss:$16 sps:$4 sm:$0xff]  }
  0x6c   :  { %1027 = vmatpush2.bf16.msra.mxu0 %v8286_v45 }
  0x6d   :  { %1028 = vmatprep.subr.bf16.mxu0 %v8294_v46  ;;  %v8289_v46 = vld [vmem:[#allocation2 + $0x1e8] ss:$16 sps:$4 sm:$0xff]  }
  0x70   :  { %1029 = vmatpush2.bf16.msra.mxu0 %v8292_v47 }
  0x71   :  { %1030 = vmatprep.subr.bf16.mxu0 %v8300_v48 }
  0x74   :  { %1031 = vmatpush2.bf16.msra.mxu0 %v8298_v49 }
  0x75   :  { %1032 = vmatprep.subr.bf16.mxu0 %v8306_v50  ;;  %v8297_v50 = vld [vmem:[#allocation2 + $0x1cc] ss:$16 sps:$4 sm:$0xff]  }
  0x78   :  { %1033 = vmatpush2.bf16.msra.mxu0 %v8304_v51 }
  0x79   :  { %1034 = vmatprep.subr.bf16.mxu0 %v8312_v52  ;;  %v8295_v52 = vld [vmem:[#allocation2 + $0x1c8] ss:$16 sps:$4 sm:$0xff]  }
  0x7c   :  { %1035 = vmatpush2.bf16.msra.mxu0 %v8310_v53 }
 0x109   :  { %v8177_v54 = vpop.f32.mrf.mxu0 }
 0x10a   :  { %v259_v6 = vadd.f32 %v8177_v54, %v9260_v56 }
 0x10b   :  { %v250_v55 = vpop.f32.mrf.mxu0 }
 0x10c   :  { %v251_v58 = vadd.f32 %v9260_v56, %v250_v55  ;;  %v315_v11 = vmax.f32 %v259_v6, 0.0  ;;  %v8303_v55 = vld [vmem:[#allocation2 + $0x1ac] ss:$16 sps:$4 sm:$0xff]  }
 0x10d   :  { %v8178_v57 = vpop.f32.mrf.mxu0 }
 0x10e   :  { %v313_v62 = vmax.f32 %v251_v58, 0.0  ;;  %v262_v2 = vadd.f32 %v8178_v57, %v9260_v56  ;;  %v8301_v58 = vld [vmem:[#allocation2 + $0x1a8] ss:$16 sps:$4 sm:$0xff]  }
 0x10f   :  { %v253_v59 = vpop.f32.mrf.mxu0 }
 0x110   :  { %v254_v60 = vadd.f32 %v9260_v56, %v253_v59  ;;  %v316_v8 = vmax.f32 %v262_v2, 0.0  ;;  %v8315_v2 = vld [vmem:[#allocation2 + $0x16c] ss:$16 sps:$4 sm:$0xff]  }
 0x111   :  { %v8181_v61 = vpop.f32.mrf.mxu0 }
 0x112   :  { %v314_v63 = vmax.f32 %v254_v60, 0.0  ;;  %v330_v13 = vpack.c.bf16 %v316_v8, %v315_v11  ;;  %v275_v24 = vadd.f32 %v8181_v61, %v9260_v56  ;;  %v8321_v11 = vld [vmem:[#allocation2 + $0x14c] ss:$16 sps:$4 sm:$0xff]  }
 0x113   :  { %v266_v0 = vpop.f32.mrf.mxu0 }
 0x114   :  { %v329_v3 = vpack.c.bf16 %v314_v63, %v313_v62  ;;  %v267_v14 = vadd.f32 %v9260_v56, %v266_v0  ;;  %v319_v31 = vmax.f32 %v275_v24, 0.0  ;;  %v8309_v62 = vld [vmem:[#allocation2 + $0x18c] ss:$16 sps:$4 sm:$0xff]   ;;  %v8307_v63 = vld [vmem:[#allocation2 + $0x188] ss:$16 sps:$4 sm:$0xff]  }
 0x115   :  { %v8182_v5 = vpop.f32.mrf.mxu0 }
 0x116   :  { %478 = vmatmul.mubr.bf16.vlgmr.msra.gmra.mxu1 %v329_v3  ;;  %v317_v19 = vmax.f32 %v267_v14, 0.0  ;;  %v278_v25 = vadd.f32 %v8182_v5, %v9260_v56  ;;  %v8313_v3 = vld [vmem:[#allocation2 + $0x168] ss:$16 sps:$4 sm:$0xff]   ;;  %v8324_v14 = vld [vmem:[#allocation2 + $0x124] ss:$16 sps:$4 sm:$0xff]  }
 0x117   :  { %487 = vmatprep.mubr.bf16.mxu1 %v9070_v26  ;;  %1124 = vmatpush1.bf16.msra.mxu1 %v8241_v1  ;;  %v269_v10 = vpop.f32.mrf.mxu0 }
 0x118   :  { %1125 = vmatprep.subr.bf16.mxu1 %v8249_v4  ;;  %v270_v15 = vadd.f32 %v9260_v56, %v269_v10  ;;  %v320_v32 = vmax.f32 %v278_v25, 0.0  ;;  %v8318_v10 = vld [vmem:[#allocation2 + $0x144] ss:$16 sps:$4 sm:$0xff]  }
 0x119   :  { %v8185_v17 = vpop.f32.mrf.mxu0  ;;  %1036 = vmatprep.subr.bf16.mxu0 %v8318_v10 }
 0x11a   :  { %v318_v20 = vmax.f32 %v270_v15, 0.0  ;;  %v332_v36 = vpack.c.bf16 %v320_v32, %v319_v31  ;;  %v291_v47 = vadd.f32 %v8185_v17, %v9260_v56  ;;  %v8322_v15 = vld [vmem:[#allocation2 + $0x120] ss:$16 sps:$4 sm:$0xff]   ;;  %v8333_v17 = vld [vmem:[#allocation2 + $0x10c] ss:$16 sps:$4 sm:$0xff]  }
 0x11b   :  { %1126 = vmatpush1.bf16.msra.mxu1 %v8247_v7  ;;  %v282_v22 = vpop.f32.mrf.mxu0 }
 0x11c   :  { %1127 = vmatprep.subr.bf16.mxu1 %v8255_v9  ;;  %v331_v27 = vpack.c.bf16 %v318_v20, %v317_v19  ;;  %v283_v37 = vadd.f32 %v9260_v56, %v282_v22  ;;  %v323_v53 = vmax.f32 %v291_v47, 0.0  ;;  %v8331_v19 = vld [vmem:[#allocation2 + $0x108] ss:$16 sps:$4 sm:$0xff]   ;;  %v8336_v20 = vld [vmem:[#allocation5 + $0xe4] ss:$16 sps:$4 sm:$0xff]   ;;  %v355_v22 = vlaneseq }
 0x11d   :  { %v8186_v29 = vpop.f32.mrf.mxu0  ;;  %v8340_v47 = vld [vmem:[#allocation5 + $0xc0] ss:$16 sps:$4 sm:$0xff]  }
 0x11e   :  { %488 = vmatmul.mubr.bf16.gmra.mxu1 %v330_v13  ;;  %v321_v42 = vmax.f32 %v283_v37, 0.0  ;;  %v294_v48 = vadd.f32 %v8186_v29, %v9260_v56  ;;  %v8319_v13 = vld [vmem:[#allocation2 + $0x148] ss:$16 sps:$4 sm:$0xff]  }
 0x11f   :  { %497 = vmatprep.mubr.bf16.mxu1 %v9070_v26  ;;  %1128 = vmatpush1.bf16.msra.mxu1 %v8253_v12  ;;  %v285_v34 = vpop.f32.mrf.mxu0  ;;  %v8316_v12 = vld [vmem:[#allocation2 + $0x140] ss:$16 sps:$4 sm:$0xff]  }
 0x120   :  { %1129 = vmatprep.subr.bf16.mxu1 %v8261_v16  ;;  %v286_v38 = vadd.f32 %v9260_v56, %v285_v34  ;;  %v324_v54 = vmax.f32 %v294_v48, 0.0  ;;  %1037 = vmatpush2.bf16.msra.mxu0 %v8316_v12  ;;  %v8325_v16 = vld [vmem:[#allocation2 + $0x128] ss:$16 sps:$4 sm:$0xff]  }
 0x121   :  { %v8189_v40 = vpop.f32.mrf.mxu0  ;;  %1038 = vmatprep.subr.bf16.mxu0 %v8324_v14  ;;  %v8343_v48 = vld [vmem:[#allocation5 + $0xc8] ss:$16 sps:$4 sm:$0xff]  }
 0x122   :  { %v322_v43 = vmax.f32 %v286_v38, 0.0  ;;  %v334_v59 = vpack.c.bf16 %v324_v54, %v323_v53  ;;  %v307_v4 = vadd.f32 %v8189_v40, %v9260_v56  ;;  %v8334_v40 = vld [vmem:[#allocation5 + $0xe0] ss:$16 sps:$4 sm:$0xff]   ;;  %v8361_v14 = vld [vmem:[#allocation5 + $0x68] ss:$16 sps:$4 sm:$0xff]  }
 0x123   :  { %1130 = vmatpush1.bf16.msra.mxu1 %v8259_v18  ;;  %v298_v45 = vpop.f32.mrf.mxu0  ;;  %v8328_v18 = vld [vmem:[#allocation2 + $0x100] ss:$16 sps:$4 sm:$0xff]  }
 0x124   :  { %1131 = vmatprep.subr.bf16.mxu1 %v8267_v21  ;;  %v333_v49 = vpack.c.bf16 %v322_v43, %v321_v42  ;;  %v299_v60 = vadd.f32 %v9260_v56, %v298_v45  ;;  %v327_v7 = vmax.f32 %v307_v4, 0.0  ;;  %1039 = vmatpush2.bf16.msra.mxu0 %v8322_v15  ;;  %v8339_v21 = vld [vmem:[#allocation5 + $0xec] ss:$16 sps:$4 sm:$0xff]  }
 0x125   :  { %v8190_v51 = vpop.f32.mrf.mxu0  ;;  %v8345_v45 = vld [vmem:[#allocation5 + $0xcc] ss:$16 sps:$4 sm:$0xff]  }
 0x126   :  { %498 = vmatmul.mubr.bf16.gmra.mxu1 %v331_v27  ;;  %v325_v0 = vmax.f32 %v299_v60, 0.0  ;;  %v310_v5 = vadd.f32 %v8190_v51, %v9260_v56  ;;  %v8348_v51 = vld [vmem:[#allocation5 + $0xa4] ss:$16 sps:$4 sm:$0xff]   ;;  %v8349_v60 = vld [vmem:[#allocation5 + $0xa8] ss:$16 sps:$4 sm:$0xff]  }
 0x127   :  { %507 = vmatprep.mubr.bf16.mxu1 %v9070_v26  ;;  %1132 = vmatpush1.bf16.msra.mxu1 %v8265_v23  ;;  %v301_v57 = vpop.f32.mrf.mxu0  ;;  %v9285_v23 = vshrl.u32 %v355_v22, 7  ;;  %v8372_v22 = vld [vmem:[#allocation5 + $0x24] ss:$16 sps:$4 sm:$0xff]  }
 0x128   :  { %1133 = vmatprep.subr.bf16.mxu1 %v8273_v28  ;;  %v302_v61 = vadd.f32 %v9260_v56, %v301_v57  ;;  %v328_v8 = vmax.f32 %v310_v5, 0.0  ;;  %v8327_v56 = vld [vmem:[#allocation2 + $0x12c] ss:$16 sps:$4 sm:$0xff]   ;;  %v353_v28 = vld [vmem:[%s10969_s4] sm:$0x3] }
 0x129   :  { %11055 = vst [vmem:[#allocation16_spill] sm:$0xff] %v9285_v23  ;;  %v9288_v24 = vsub.s32 1, %v9285_v23  ;;  %v9291_v25 = vsub.s32 0, %v9285_v23 }
 0x12a   :  { %v326_v1 = vmax.f32 %v302_v61, 0.0  ;;  %v336_v9 = vpack.c.bf16 %v328_v8, %v327_v7  ;;  %v8363_v7 = vld [vmem:[#allocation5 + $0x6c] ss:$16 sps:$4 sm:$0xff]  }
 0x12b   :  { %1134 = vmatpush1.bf16.msra.mxu1 %v8271_v30  ;;  %11056 = vst [vmem:[#allocation17_spill] sm:$0xff] %v9288_v24  ;;  %11057 = vst [vmem:[#allocation18_spill] sm:$0xff] %v9291_v25  ;;  %v9297_v30 = vrot.slane %v353_v28, %v9288_v24  ;;  %v9300_v31 = vrot.slane %v353_v28, %v9291_v25 }
 0x12c   :  { %1135 = vmatprep.subr.bf16.mxu1 %v8279_v33  ;;  %v335_v6 = vpack.c.bf16 %v326_v1, %v325_v0  ;;  %v8357_v0 = vld [vmem:[#allocation5 + $0x8c] ss:$16 sps:$4 sm:$0xff]  }
 0x12e   :  { %508 = vmatmul.mubr.bf16.gmra.mxu1 %v332_v36 }
 0x12f   :  { %517 = vmatprep.mubr.bf16.mxu1 %v9070_v26  ;;  %1136 = vmatpush1.bf16.msra.mxu1 %v8277_v35 }
 0x130   :  { %1137 = vmatprep.subr.bf16.mxu1 %v8285_v39 }
 0x133   :  { %1138 = vmatpush1.bf16.msra.mxu1 %v8283_v41  ;;  %v8337_v41 = vld [vmem:[#allocation5 + $0xe8] ss:$16 sps:$4 sm:$0xff]  }
 0x134   :  { %1139 = vmatprep.subr.bf16.mxu1 %v8291_v44  ;;  %v8342_v44 = vld [vmem:[#allocation5 + $0xc4] ss:$16 sps:$4 sm:$0xff]  }
 0x136   :  { %518 = vmatmul.mubr.bf16.gmra.mxu1 %v333_v49 }
 0x137   :  { %527 = vmatprep.mubr.bf16.mxu1 %v9070_v26  ;;  %1140 = vmatpush2.bf16.msra.mxu1 %v8289_v46 }
 0x138   :  { %1141 = vmatprep.subr.bf16.mxu1 %v8297_v50 }
 0x13b   :  { %1142 = vmatpush2.bf16.msra.mxu1 %v8295_v52  ;;  %v8351_v52 = vld [vmem:[#allocation5 + $0xac] ss:$16 sps:$4 sm:$0xff]  }
 0x13c   :  { %1143 = vmatprep.subr.bf16.mxu1 %v8303_v55 }
 0x13e   :  { %528 = vmatmul.mubr.bf16.gmra.mxu1 %v334_v59  ;;  %v8346_v59 = vld [vmem:[#allocation5 + $0xa0] ss:$16 sps:$4 sm:$0xff]  }
 0x13f   :  { %537 = vmatprep.mubr.bf16.mxu1 %v9070_v26  ;;  %1144 = vmatpush2.bf16.msra.mxu1 %v8301_v58 }
 0x140   :  { %1145 = vmatprep.subr.bf16.mxu1 %v8309_v62 }
 0x143   :  { %1146 = vmatpush2.bf16.msra.mxu1 %v8307_v63  ;;  %v8354_v63 = vld [vmem:[#allocation5 + $0x84] ss:$16 sps:$4 sm:$0xff]  }
 0x144   :  { %1147 = vmatprep.subr.bf16.mxu1 %v8315_v2  ;;  %v8352_v2 = vld [vmem:[#allocation5 + $0x80] ss:$16 sps:$4 sm:$0xff]  }
 0x146   :  { %538 = vmatmul.mubr.bf16.gmra.mxu1 %v335_v6  ;;  %v8360_v6 = vld [vmem:[#allocation5 + $0x64] ss:$16 sps:$4 sm:$0xff]  }
 0x147   :  { %547 = vmatprep.mubr.bf16.mxu1 %v9070_v26  ;;  %1148 = vmatpush2.bf16.msra.mxu1 %v8313_v3  ;;  %v8330_v26 = vld [vmem:[#allocation2 + $0x104] ss:$16 sps:$4 sm:$0xff]   ;;  %v8355_v3 = vld [vmem:[#allocation5 + $0x88] ss:$16 sps:$4 sm:$0xff]  }
 0x148   :  { %1149 = vmatprep.subr.bf16.mxu1 %v8321_v11  ;;  %1040 = vmatprep.subr.bf16.mxu0 %v8330_v26  ;;  %v8369_v26 = vld [vmem:[#allocation5 + $0x4c] ss:$16 sps:$4 sm:$0xff]  }
 0x149   :  { %1041 = vmatpush2.bf16.msra.mxu0 %v8328_v18  ;;  %v8364_v18 = vld [vmem:[#allocation5 + $0x40] ss:$16 sps:$4 sm:$0xff]  }
 0x14a   :  { %1639 = vmatprep.subr.bf16.mxu0 %v8336_v20 }
 0x14b   :  { %1150 = vmatpush2.bf16.msra.mxu1 %v8319_v13  ;;  %v8358_v13 = vld [vmem:[#allocation5 + $0x60] ss:$16 sps:$4 sm:$0xff]  }
 0x14c   :  { %1151 = vmatprep.subr.bf16.mxu1 %v8327_v56 }
 0x14e   :  { %548 = vmatmul.mubr.bf16.gmra.mxu1 %v336_v9 }
 0x14f   :  { %1152 = vmatpush2.bf16.msra.mxu1 %v8325_v16  ;;  %v8366_v16 = vld [vmem:[#allocation5 + $0x44] ss:$16 sps:$4 sm:$0xff]  }
 0x150   :  { %1153 = vmatprep.subr.bf16.mxu1 %v8333_v17 }
 0x153   :  { %1154 = vmatpush2.bf16.msra.mxu1 %v8331_v19  ;;  %v8367_v19 = vld [vmem:[#allocation5 + $0x48] ss:$16 sps:$4 sm:$0xff]  }
 0x154   :  { %1680 = vmatprep.subr.bf16.mxu1 %v8339_v21 }
 0x1d6   :  { %v479_v27 = vpop.f32.mrf.mxu1 }
 0x1d7   :  { %v9312_v37 = vadd.f32 %v479_v27, %v9300_v31  ;;  %v8375_v27 = vld [vmem:[#allocation5 + $0x2c] ss:$16 sps:$4 sm:$0xff]  }
 0x1d8   :  { %v481_v29 = vpop.f32.mrf.mxu1 }
 0x1d9   :  { %v9306_v35 = vadd.f32 %v481_v29, %v9297_v30 }
 0x1da   :  { %v483_v32 = vpop.f32.mrf.mxu1 }
 0x1db   :  { %v9303_v33 = vadd.f32 %v483_v32, %v9300_v31 }
 0x1dc   :  { %v485_v34 = vpop.f32.mrf.mxu1 }
 0x1dd   :  { %v9309_v36 = vadd.f32 %v485_v34, %v9297_v30  ;;  %v610_v42 = vpack.c.bf16 %v9303_v33, %v9312_v37 }
 0x1de   :  { %v489_v38 = vpop.f32.mrf.mxu1 }
 0x1df   :  { %v611_v39 = vpack.c.bf16 %v9309_v36, %v9306_v35  ;;  %v9328_v55 = vadd.f32 %v489_v38, %v9300_v31 }
 0x1e0   :  { %v491_v43 = vpop.f32.mrf.mxu1 }
 0x1e1   :  { %1042 = vmatprep.mubr.bf16.mxu0 %v611_v39  ;;  %1155 = vmatprep.mubr.bf16.mxu1 %v611_v39  ;;  %v9322_v53 = vadd.f32 %v491_v43, %v9297_v30  ;;  %v8370_v39 = vld [vmem:[#allocation5 + $0x20] ss:$16 sps:$4 sm:$0xff]   ;;  %v8378_v43 = vld [vmem:[#allocation5 + $0x4] ss:$16 sps:$4 sm:$0xff]  }
 0x1e2   :  { %v493_v46 = vpop.f32.mrf.mxu1  ;;  %1043 = vmatmul.mubr.bf16.vlgmr.msra.gmra.mxu0 %v610_v42  ;;  %1156 = vmatmul.mubr.bf16.vlgmr.msra.gmra.mxu1 %v610_v42 }
 0x1e3   :  { %1640 = vmatpush1.bf16.msra.mxu0 %v8334_v40  ;;  %1681 = vmatpush1.bf16.msra.mxu1 %v8337_v41  ;;  %v9319_v49 = vadd.f32 %v493_v46, %v9300_v31  ;;  %v8373_v40 = vld [vmem:[#allocation5 + $0x28] ss:$16 sps:$4 sm:$0xff]   ;;  %v571_v46 = vmax.f32 %v9306_v35, %v9309_v36 }
 0x1e4   :  { %v495_v50 = vpop.f32.mrf.mxu1  ;;  %1641 = vmatprep.subr.bf16.mxu0 %v8342_v44  ;;  %1682 = vmatprep.subr.bf16.mxu1 %v8345_v45  ;;  %v8381_v44 = vld [vmem:[#allocation5 + $0xc] ss:$16 sps:$4 sm:$0xff]   ;;  %v558_v45 = vmax.f32 %v9312_v37, %v9303_v33 }
 0x1e5   :  { %v9325_v54 = vadd.f32 %v495_v50, %v9297_v30  ;;  %v612_v61 = vpack.c.bf16 %v9319_v49, %v9328_v55  ;;  %v8379_v50 = vld [vmem:[#allocation5 + $0x8] ss:$16 sps:$4 sm:$0xff]  }
 0x1e6   :  { %v499_v57 = vpop.f32.mrf.mxu1 }
 0x1e7   :  { %v613_v58 = vpack.c.bf16 %v9325_v54, %v9322_v53  ;;  %1642 = vmatpush1.bf16.msra.mxu0 %v8340_v47  ;;  %1683 = vmatpush1.bf16.msra.mxu1 %v8343_v48  ;;  %v9344_v10 = vadd.f32 %v499_v57, %v9300_v31  ;;  %v8376_v48 = vld [vmem:[#allocation5] ss:$16 sps:$4 sm:$0xff]  }
 0x1e8   :  { %v501_v62 = vpop.f32.mrf.mxu1  ;;  %1643 = vmatprep.subr.bf16.mxu0 %v8348_v51  ;;  %1684 = vmatprep.subr.bf16.mxu1 %v8351_v52  ;;  %v559_v51 = vmax.f32 %v558_v45, %v9328_v55  ;;  %v572_v52 = vmax.f32 %v571_v46, %v9322_v53  ;;  %v8400_v46 = vld [vmem:[#allocation5 + $0x180] ss:$16 sps:$4 sm:$0xff]  }
 0x1e9   :  { %1052 = vmatprep.mubr.bf16.mxu0 %v613_v58  ;;  %1165 = vmatprep.mubr.bf16.mxu1 %v613_v58  ;;  %v9338_v8 = vadd.f32 %v501_v62, %v9297_v30  ;;  %v8384_v58 = vld [vmem:[#allocation5 + $0x1e4] ss:$16 sps:$4 sm:$0xff]  }
 0x1ea   :  { %v503_v1 = vpop.f32.mrf.mxu1  ;;  %1053 = vmatmul.mubr.bf16.gmra.mxu0 %v612_v61  ;;  %1166 = vmatmul.mubr.bf16.gmra.mxu1 %v612_v61  ;;  %v560_v35 = vmax.f32 %v559_v51, %v9319_v49  ;;  %v573_v36 = vmax.f32 %v572_v52, %v9325_v54  ;;  %v8382_v54 = vld [vmem:[#allocation5 + $0x1e0] ss:$16 sps:$4 sm:$0xff]  }
 0x1eb   :  { %1644 = vmatpush1.bf16.msra.mxu0 %v8346_v59  ;;  %1685 = vmatpush1.bf16.msra.mxu1 %v8349_v60  ;;  %v9335_v4 = vadd.f32 %v503_v1, %v9300_v31  ;;  %v8387_v59 = vld [vmem:[#allocation5 + $0x1ec] ss:$16 sps:$4 sm:$0xff]  }
 0x1ec   :  { %v505_v5 = vpop.f32.mrf.mxu1  ;;  %1645 = vmatprep.subr.bf16.mxu0 %v8354_v63  ;;  %1686 = vmatprep.subr.bf16.mxu1 %v8357_v0  ;;  %v561_v61 = vmax.f32 %v560_v35, %v9344_v10  ;;  %v574_v62 = vmax.f32 %v573_v36, %v9338_v8  ;;  %v8385_v0 = vld [vmem:[#allocation5 + $0x1e8] ss:$16 sps:$4 sm:$0xff]  }
 0x1ed   :  { %v9341_v9 = vadd.f32 %v505_v5, %v9297_v30  ;;  %v614_v56 = vpack.c.bf16 %v9335_v4, %v9344_v10 }
 0x1ee   :  { %v509_v11 = vpop.f32.mrf.mxu1  ;;  %v562_v5 = vmax.f32 %v561_v61, %v9335_v4  ;;  %v8406_v61 = vld [vmem:[#allocation5 + $0x160] ss:$16 sps:$4 sm:$0xff]  }
 0x1ef   :  { %v615_v12 = vpack.c.bf16 %v9341_v9, %v9338_v8  ;;  %1646 = vmatpush1.bf16.msra.mxu0 %v8352_v2  ;;  %1687 = vmatpush1.bf16.msra.mxu1 %v8355_v3  ;;  %v510_v32 = vadd.f32 %v509_v11, %v9300_v31  ;;  %v8390_v2 = vld [vmem:[#allocation5 + $0x1c4] ss:$16 sps:$4 sm:$0xff]   ;;  %v8393_v3 = vld [vmem:[#allocation5 + $0x1cc] ss:$16 sps:$4 sm:$0xff]  }
 0x1f0   :  { %v511_v15 = vpop.f32.mrf.mxu1  ;;  %1647 = vmatprep.subr.bf16.mxu0 %v8360_v6  ;;  %1688 = vmatprep.subr.bf16.mxu1 %v8363_v7  ;;  %v575_v6 = vmax.f32 %v574_v62, %v9341_v9  ;;  %v8409_v62 = vld [vmem:[#allocation5 + $0x168] ss:$16 sps:$4 sm:$0xff]  }
 0x1f1   :  { %1062 = vmatprep.mubr.bf16.mxu0 %v615_v12  ;;  %1175 = vmatprep.mubr.bf16.mxu1 %v615_v12  ;;  %v512_v28 = vadd.f32 %v511_v15, %v9297_v30  ;;  %v563_v8 = vmax.f32 %v562_v5, %v510_v32  ;;  %v8388_v12 = vld [vmem:[#allocation5 + $0x1c0] ss:$16 sps:$4 sm:$0xff]  }
 0x1f2   :  { %v513_v17 = vpop.f32.mrf.mxu1  ;;  %1063 = vmatmul.mubr.bf16.gmra.mxu0 %v614_v56  ;;  %1176 = vmatmul.mubr.bf16.gmra.mxu1 %v614_v56 }
 0x1f3   :  { %1648 = vmatpush1.bf16.msra.mxu0 %v8358_v13  ;;  %1689 = vmatpush1.bf16.msra.mxu1 %v8361_v14  ;;  %v9351_v20 = vadd.f32 %v513_v17, %v9300_v31  ;;  %v576_v10 = vmax.f32 %v575_v6, %v512_v28  ;;  %v8391_v13 = vld [vmem:[#allocation5 + $0x1c8] ss:$16 sps:$4 sm:$0xff]  }
 0x1f4   :  { %v515_v21 = vpop.f32.mrf.mxu1  ;;  %1649 = vmatprep.subr.bf16.mxu0 %v8366_v16  ;;  %1690 = vmatprep.subr.bf16.mxu1 %v8369_v26  ;;  %v8396_v16 = vld [vmem:[#allocation5 + $0x1a4] ss:$16 sps:$4 sm:$0xff]   ;;  %v8399_v26 = vld [vmem:[#allocation5 + $0x1ac] ss:$16 sps:$4 sm:$0xff]  }
 0x1f5   :  { %v9355_v29 = vadd.f32 %v515_v21, %v9297_v30  ;;  %v616_v41 = vpack.c.bf16 %v9351_v20, %v510_v32  ;;  %v564_v9 = vmax.f32 %v563_v8, %v9351_v20  ;;  %v8405_v20 = vld [vmem:[#allocation5 + $0x18c] ss:$16 sps:$4 sm:$0xff]  }
 0x1f6   :  { %v519_v34 = vpop.f32.mrf.mxu1 }
 0x1f7   :  { %v617_v38 = vpack.c.bf16 %v9355_v29, %v512_v28  ;;  %1650 = vmatpush1.bf16.msra.mxu0 %v8364_v18  ;;  %1691 = vmatpush1.bf16.msra.mxu1 %v8367_v19  ;;  %v520_v53 = vadd.f32 %v519_v34, %v9300_v31  ;;  %v577_v17 = vmax.f32 %v576_v10, %v9355_v29  ;;  %v8402_v34 = vld [vmem:[#allocation5 + $0x184] ss:$16 sps:$4 sm:$0xff]  }
 0x1f8   :  { %v521_v42 = vpop.f32.mrf.mxu1  ;;  %1651 = vmatprep.subr.bf16.mxu0 %v8372_v22  ;;  %1692 = vmatprep.subr.bf16.mxu1 %v8375_v27  ;;  %v8394_v22 = vld [vmem:[#allocation5 + $0x1a0] ss:$16 sps:$4 sm:$0xff]   ;;  %v8397_v27 = vld [vmem:[#allocation5 + $0x1a8] ss:$16 sps:$4 sm:$0xff]  }
 0x1f9   :  { %1072 = vmatprep.mubr.bf16.mxu0 %v617_v38  ;;  %1185 = vmatprep.mubr.bf16.mxu1 %v617_v38  ;;  %v9372_v37 = vadd.f32 %v521_v42, %v9297_v30  ;;  %v565_v38 = vrot.slane %v564_v9, 4 }
 0x1fa   :  { %v523_v47 = vpop.f32.mrf.mxu1  ;;  %1073 = vmatmul.mubr.bf16.gmra.mxu0 %v616_v41  ;;  %1186 = vmatmul.mubr.bf16.gmra.mxu1 %v616_v41 }
 0x1fb   :  { %1652 = vmatpush1.bf16.msra.mxu0 %v8370_v39  ;;  %1693 = vmatpush1.bf16.msra.mxu1 %v8373_v40  ;;  %v9367_v33 = vadd.f32 %v523_v47, %v9300_v31  ;;  %v578_v40 = vrot.slane %v577_v17, 4  ;;  %v8403_v47 = vld [vmem:[#allocation5 + $0x188] ss:$16 sps:$4 sm:$0xff]   ;;  %v566_v52 = vmax.f32 %v564_v9, %v565_v38  ;;  %v8420_v9 = vld [vmem:[#allocation5 + $0x124] ss:$16 sps:$4 sm:$0xff]  }
 0x1fc   :  { %v525_v57 = vpop.f32.mrf.mxu1  ;;  %1653 = vmatprep.subr.bf16.mxu0 %v8378_v43  ;;  %1694 = vmatprep.subr.bf16.mxu1 %v8381_v44 }
 0x1fd   :  { %v9375_v60 = vadd.f32 %v525_v57, %v9297_v30  ;;  %v618_v1 = vpack.c.bf16 %v9367_v33, %v520_v53  ;;  %v584_v28 = vmax.f32 %v520_v53, %v9367_v33  ;;  %v8411_v33 = vld [vmem:[#allocation5 + $0x16c] ss:$16 sps:$4 sm:$0xff]   ;;  %v579_v35 = vmax.f32 %v577_v17, %v578_v40 }
 0x1fe   :  { %v529_v55 = vpop.f32.mrf.mxu1 }
 0x1ff   :  { %1654 = vmatpush1.bf16.msra.mxu0 %v8376_v48  ;;  %1695 = vmatpush1.bf16.msra.mxu1 %v8379_v50  ;;  %v619_v49 = vpack.c.bf16 %v9375_v60, %v9372_v37  ;;  %v530_v18 = vadd.f32 %v529_v55, %v9300_v31  ;;  %v597_v39 = vmax.f32 %v9372_v37, %v9375_v60  ;;  %v580_v5 = vrot.slane %v579_v35, 2 }
 0x200   :  { %v531_v63 = vpop.f32.mrf.mxu1  ;;  %1655 = vmatprep.subr.bf16.mxu0 %v8384_v58  ;;  %1696 = vmatprep.subr.bf16.mxu1 %v8387_v59  ;;  %v8408_v59 = vld [vmem:[#allocation5 + $0x164] ss:$16 sps:$4 sm:$0xff]  }
 0x201   :  { %1082 = vmatprep.mubr.bf16.mxu0 %v619_v49  ;;  %1195 = vmatprep.mubr.bf16.mxu1 %v619_v49  ;;  %v532_v14 = vadd.f32 %v531_v63, %v9297_v30  ;;  %v585_v41 = vmax.f32 %v584_v28, %v530_v18  ;;  %v8426_v28 = vld [vmem:[#allocation5 + $0x104] ss:$16 sps:$4 sm:$0xff]  }
 0x202   :  { %v533_v7 = vpop.f32.mrf.mxu1  ;;  %1083 = vmatmul.mubr.bf16.gmra.mxu0 %v618_v1  ;;  %1196 = vmatmul.mubr.bf16.gmra.mxu1 %v618_v1  ;;  %v8417_v1 = vld [vmem:[#allocation5 + $0x14c] ss:$16 sps:$4 sm:$0xff]  }
 0x203   :  { %1656 = vmatpush2.bf16.msra.mxu0 %v8382_v54  ;;  %1697 = vmatpush2.bf16.msra.mxu1 %v8385_v0  ;;  %v534_v56 = vadd.f32 %v533_v7, %v9300_v31  ;;  %v598_v43 = vmax.f32 %v597_v39, %v532_v14  ;;  %v8414_v0 = vld [vmem:[#allocation5 + $0x144] ss:$16 sps:$4 sm:$0xff]   ;;  %v8424_v39 = vld [vmem:[#allocation5 + $0x100] ss:$16 sps:$4 sm:$0xff]  }
 0x204   :  { %v535_v11 = vpop.f32.mrf.mxu1  ;;  %1657 = vmatprep.subr.bf16.mxu0 %v8390_v2  ;;  %1698 = vmatprep.subr.bf16.mxu1 %v8393_v3  ;;  %v567_v2 = vrot.slane %v566_v52, 2 }
 0x205   :  { %v536_v4 = vadd.f32 %v535_v11, %v9297_v30  ;;  %v620_v32 = vpack.c.bf16 %v534_v56, %v530_v18  ;;  %v586_v48 = vmax.f32 %v585_v41, %v534_v56  ;;  %v8412_v11 = vld [vmem:[#allocation5 + $0x140] ss:$16 sps:$4 sm:$0xff]  }
 0x206   :  { %v539_v15 = vpop.f32.mrf.mxu1  ;;  %v8418_v18 = vld [vmem:[#allocation5 + $0x120] ss:$16 sps:$4 sm:$0xff]  }
 0x207   :  { %v621_v19 = vpack.c.bf16 %v536_v4, %v532_v14  ;;  %1658 = vmatpush2.bf16.msra.mxu0 %v8388_v12  ;;  %1699 = vmatpush2.bf16.msra.mxu1 %v8391_v13  ;;  %v540_v42 = vadd.f32 %v539_v15, %v9300_v31  ;;  %v599_v57 = vmax.f32 %v598_v43, %v536_v4  ;;  %v8415_v12 = vld [vmem:[#allocation5 + $0x148] ss:$16 sps:$4 sm:$0xff]   ;;  %v8423_v15 = vld [vmem:[#allocation5 + $0x12c] ss:$16 sps:$4 sm:$0xff]  }
 0x208   :  { %v541_v21 = vpop.f32.mrf.mxu1  ;;  %1659 = vmatprep.subr.bf16.mxu0 %v8396_v16  ;;  %1700 = vmatprep.subr.bf16.mxu1 %v8399_v26  ;;  %v568_v4 = vmax.f32 %v566_v52, %v567_v2  ;;  %v581_v16 = vmax.f32 %v579_v35, %v580_v5  ;;  %v2091_v2 = vld [vmem:[#allocation7 + $0x180] sm:$0xff] }
 0x209   :  { %1092 = vmatprep.mubr.bf16.mxu0 %v621_v19  ;;  %1205 = vmatprep.mubr.bf16.mxu1 %v621_v19  ;;  %v542_v44 = vadd.f32 %v541_v21, %v9297_v30  ;;  %v587_v36 = vmax.f32 %v586_v48, %v540_v42  ;;  %v8421_v19 = vld [vmem:[#allocation5 + $0x128] ss:$16 sps:$4 sm:$0xff]   ;;  %v2219_v5 = vld [vmem:[#allocation7 + $0x580] sm:$0xff] }
 0x20a   :  { %v543_v29 = vpop.f32.mrf.mxu1  ;;  %1093 = vmatmul.mubr.bf16.gmra.mxu0 %v620_v32  ;;  %1206 = vmatmul.mubr.bf16.gmra.mxu1 %v620_v32  ;;  %v569_v32 = vrot.slane %v568_v4, 1 }
 0x20b   :  { %1660 = vmatpush2.bf16.msra.mxu0 %v8394_v22  ;;  %1701 = vmatpush2.bf16.msra.mxu1 %v8397_v27  ;;  %v544_v50 = vadd.f32 %v543_v29, %v9300_v31  ;;  %v600_v55 = vmax.f32 %v599_v57, %v542_v44  ;;  %v8427_v29 = vld [vmem:[#allocation5 + $0x108] ss:$16 sps:$4 sm:$0xff]  }
 0x20c   :  { %v545_v45 = vpop.f32.mrf.mxu1  ;;  %1661 = vmatprep.subr.bf16.mxu0 %v8402_v34  ;;  %1702 = vmatprep.subr.bf16.mxu1 %v8405_v20  ;;  %v582_v34 = vrot.slane %v581_v16, 1 }
 0x20d   :  { %v546_v51 = vadd.f32 %v545_v45, %v9297_v30  ;;  %v588_v49 = vmax.f32 %v587_v36, %v544_v50  ;;  %v622_v63 = vpack.c.bf16 %v544_v50, %v540_v42  ;;  %v570_v42 = vmax.f32 %v568_v4, %v569_v32  ;;  %v2215_v4 = vld [vmem:[#allocation7 + $0x560] sm:$0xff] }
 0x20e   :  { %v549_v58 = vpop.f32.mrf.mxu1  ;;  %v583_v45 = vmax.f32 %v581_v16, %v582_v34  ;;  %v2195_v32 = vld [vmem:[#allocation7 + $0x4c0] sm:$0xff] }
 0x20f   :  { %v623_v37 = vpack.c.bf16 %v546_v51, %v542_v44  ;;  %v550_v60 = vadd.f32 %v549_v58, %v9300_v31  ;;  %1662 = vmatpush2.bf16.msra.mxu0 %v8400_v46  ;;  %1703 = vmatpush2.bf16.msra.mxu1 %v8403_v47  ;;  %v601_v6 = vmax.f32 %v600_v55, %v546_v51 }
 0x210   :  { %v551_v53 = vpop.f32.mrf.mxu1  ;;  %1663 = vmatprep.subr.bf16.mxu0 %v8408_v59  ;;  %1704 = vmatprep.subr.bf16.mxu1 %v8411_v33  ;;  %v1236_v48 = vpack.c.bf16 %v570_v42, %v570_v42  ;;  %v1237_v52 = vpack.c.bf16 %v583_v45, %v583_v45  ;;  %v2187_v42 = vld [vmem:[#allocation7 + $0x480] sm:$0xff] }
 0x211   :  { %v552_v54 = vadd.f32 %v551_v53, %v9297_v30  ;;  %1102 = vmatprep.mubr.bf16.mxu0 %v623_v37  ;;  %1215 = vmatprep.mubr.bf16.mxu1 %v623_v37  ;;  %v589_v7 = vmax.f32 %v588_v49, %v550_v60  ;;  %v2099_v53 = vld [vmem:[#allocation7 + $0x1c0] sm:$0xff] }
 0x212   :  { %v553_v3 = vpop.f32.mrf.mxu1  ;;  %1103 = vmatmul.mubr.bf16.gmra.mxu0 %v622_v63  ;;  %1216 = vmatmul.mubr.bf16.gmra.mxu1 %v622_v63  ;;  %v1308_v59 = vunpack.c.l.b16 %v1236_v48  ;;  %v1309_v33 = vunpack.c.l.b16 %v1237_v52  ;;  %v2231_v63 = vld [vmem:[#allocation7 + $0x5e0] sm:$0xff] }
 0x213   :  { %v554_v8 = vadd.f32 %v553_v3, %v9300_v31  ;;  %1664 = vmatpush2.bf16.msra.mxu0 %v8406_v61  ;;  %1705 = vmatpush2.bf16.msra.mxu1 %v8409_v62  ;;  %v602_v13 = vmax.f32 %v601_v6, %v552_v54  ;;  %v2103_v61 = vld [vmem:[#allocation7 + $0x1e0] sm:$0xff] }
 0x214   :  { %v555_v10 = vpop.f32.mrf.mxu1  ;;  %1665 = vmatprep.subr.bf16.mxu0 %v8414_v0  ;;  %1706 = vmatprep.subr.bf16.mxu1 %v8417_v1  ;;  %v2227_v62 = vld [vmem:[#allocation7 + $0x5c0] sm:$0xff]  ;;  %v7606_v49 = vcombine.high %v2099_v53, %v2103_v61 }
 0x215   :  { %v590_v14 = vmax.f32 %v589_v7, %v554_v8  ;;  %v556_v56 = vadd.f32 %v555_v10, %v9297_v30  ;;  %v624_v22 = vpack.c.bf16 %v554_v8, %v550_v60  ;;  %v8429_v30 = vld [vmem:[#allocation5 + $0x10c] ss:$16 sps:$4 sm:$0xff]   ;;  %v7733_v0 = vcombine.low %v2227_v62, %v2231_v63  ;;  %v2095_v3 = vld [vmem:[#allocation7 + $0x1a0] sm:$0xff] }
 0x216   :  { %v7734_v1 = vcombine.high %v2227_v62, %v2231_v63  ;;  %v7598_v6 = vcombine.high %v2091_v2, %v2095_v3  ;;  %v2223_v7 = vld [vmem:[#allocation7 + $0x5a0] sm:$0xff]  ;;  %v7597_v8 = vcombine.low %v2091_v2, %v2095_v3 }
 0x217   :  { %v591_v26 = vrot.slane %v590_v14, 4  ;;  %v603_v17 = vmax.f32 %v602_v13, %v556_v56  ;;  %v625_v31 = vpack.c.bf16 %v556_v56, %v552_v54  ;;  %1666 = vmatpush2.bf16.msra.mxu0 %v8412_v11  ;;  %1707 = vmatpush2.bf16.msra.mxu1 %v8415_v12  ;;  %v7605_v54 = vcombine.low %v2099_v53, %v2103_v61  ;;  %v2083_v12 = vld [vmem:[#allocation7 + $0x140] sm:$0xff] }
 0x218   :  { %1667 = vmatprep.subr.bf16.mxu0 %v8420_v9  ;;  %1708 = vmatprep.subr.bf16.mxu1 %v8423_v15  ;;  %v7725_v10 = vcombine.low %v2219_v5, %v2223_v7  ;;  %v7726_v11 = vcombine.high %v2219_v5, %v2223_v7  ;;  %v2087_v13 = vld [vmem:[#allocation7 + $0x160] sm:$0xff] }
 0x219   :  { %v592_v21 = vmax.f32 %v590_v14, %v591_v26  ;;  %v604_v27 = vrot.slane %v603_v17, 4  ;;  %1112 = vmatprep.mubr.bf16.mxu0 %v625_v31  ;;  %1225 = vmatprep.mubr.bf16.mxu1 %v625_v31  ;;  %v2211_v14 = vld [vmem:[#allocation7 + $0x540] sm:$0xff]  ;;  %v7590_v56 = vcombine.high %v2083_v12, %v2087_v13  ;;  %v7589_v9 = vcombine.low %v2083_v12, %v2087_v13 }
 0x21a   :  { %1113 = vmatmul.mubr.bf16.gmra.mxu0 %v624_v22  ;;  %1226 = vmatmul.mubr.bf16.gmra.mxu1 %v624_v22  ;;  %v7717_v15 = vcombine.low %v2211_v14, %v2215_v4  ;;  %v7718_v16 = vcombine.high %v2211_v14, %v2215_v4  ;;  %v2075_v26 = vld [vmem:[#allocation7 + $0x100] sm:$0xff] }
 0x21b   :  { %v593_v20 = vrot.slane %v592_v21, 2  ;;  %v605_v38 = vmax.f32 %v603_v17, %v604_v27  ;;  %1668 = vmatpush2.bf16.msra.mxu0 %v8418_v18  ;;  %1709 = vmatpush2.bf16.msra.mxu1 %v8421_v19  ;;  %v2079_v17 = vld [vmem:[#allocation7 + $0x120] sm:$0xff] }
 0x21c   :  { %1669 = vmatprep.subr.bf16.mxu0 %v8426_v28  ;;  %1710 = vmatprep.subr.bf16.mxu1 %v8429_v30  ;;  %v2203_v31 = vld [vmem:[#allocation7 + $0x500] sm:$0xff]  ;;  %v7582_v18 = vcombine.high %v2075_v26, %v2079_v17 }
 0x21d   :  { %v594_v40 = vmax.f32 %v592_v21, %v593_v20  ;;  %v606_v41 = vrot.slane %v605_v38, 2  ;;  %v2207_v19 = vld [vmem:[#allocation7 + $0x520] sm:$0xff]  ;;  %v7581_v21 = vcombine.low %v2075_v26, %v2079_v17 }
 0x21e   :  { %v7709_v22 = vcombine.low %v2203_v31, %v2207_v19  ;;  %v7710_v27 = vcombine.high %v2203_v31, %v2207_v19  ;;  %v2067_v28 = vld [vmem:[#allocation7 + $0xc0] sm:$0xff] }
 0x21f   :  { %v595_v43 = vrot.slane %v594_v40, 1  ;;  %v607_v44 = vmax.f32 %v605_v38, %v606_v41  ;;  %1670 = vmatpush2.bf16.msra.mxu0 %v8424_v39  ;;  %1711 = vmatpush2.bf16.msra.mxu1 %v8427_v29  ;;  %v2071_v30 = vld [vmem:[#allocation7 + $0xe0] sm:$0xff] }
 0x220   :  { %3621 = vmatprep.subr.bf16.mxu0 %v7606_v49  ;;  %3734 = vmatprep.subr.bf16.mxu1 %v7734_v1  ;;  %v7574_v34 = vcombine.high %v2067_v28, %v2071_v30  ;;  %v2199_v20 = vld [vmem:[#allocation7 + $0x4e0] sm:$0xff]  ;;  %v7573_v38 = vcombine.low %v2067_v28, %v2071_v30 }
 0x221   :  { %v596_v46 = vmax.f32 %v594_v40, %v595_v43  ;;  %v608_v47 = vrot.slane %v607_v44, 1  ;;  %v7701_v39 = vcombine.low %v2195_v32, %v2199_v20  ;;  %v7702_v29 = vcombine.high %v2195_v32, %v2199_v20  ;;  %v2059_v40 = vld [vmem:[#allocation7 + $0x80] sm:$0xff] }
 0x222   :  { %v2063_v41 = vld [vmem:[#allocation7 + $0xa0] sm:$0xff] }
 0x223   :  { %v1238_v50 = vpack.c.bf16 %v596_v46, %v596_v46  ;;  %v609_v51 = vmax.f32 %v607_v44, %v608_v47  ;;  %v7566_v43 = vcombine.high %v2059_v40, %v2063_v41  ;;  %v2191_v44 = vld [vmem:[#allocation7 + $0x4a0] sm:$0xff]  ;;  %v7565_v45 = vcombine.low %v2059_v40, %v2063_v41 }
 0x224   :  { %v7693_v46 = vcombine.low %v2187_v42, %v2191_v44  ;;  %v7694_v47 = vcombine.high %v2187_v42, %v2191_v44  ;;  %v2051_v48 = vld [vmem:[#allocation7 + $0x40] sm:$0xff] }
 0x225   :  { %v1310_v57 = vunpack.c.l.b16 %v1238_v50  ;;  %v1239_v58 = vpack.c.bf16 %v609_v51, %v609_v51  ;;  %v2055_v50 = vld [vmem:[#allocation7 + $0x60] sm:$0xff] }
 0x226   :  { %v2179_v51 = vld [vmem:[#allocation7 + $0x440] sm:$0xff]  ;;  %v7558_v52 = vcombine.high %v2051_v48, %v2055_v50 }
 0x227   :  { %v1311_v35 = vunpack.c.l.b16 %v1239_v58  ;;  %v1313_v36 = vsel %vm1312_vm2, %v1310_v57, %v1308_v59  ;;  %v2183_v57 = vld [vmem:[#allocation7 + $0x460] sm:$0xff]  ;;  %v7557_v58 = vcombine.low %v2051_v48, %v2055_v50 }
 0x228   :  { %v1315_v55 = vpack.c.b16 %v1313_v36, %v1313_v36  ;;  %v7685_v59 = vcombine.low %v2179_v51, %v2183_v57  ;;  %v2047_v36 = vld [vmem:[#allocation7 + $0x20] sm:$0xff] }
 0x229   :  { %v1314_v37 = vsel %vm1312_vm2, %v1311_v35, %v1309_v33  ;;  %v7686_v33 = vcombine.high %v2179_v51, %v2183_v57  ;;  %v2043_v35 = vld [vmem:[#allocation7] sm:$0xff] }
 0x22a   :  { %v1316_v60 = vpack.c.b16 %v1314_v37, %v1314_v37  ;;  %v2171_v37 = vld [vmem:[#allocation7 + $0x400] sm:$0xff]  ;;  %v7549_v53 = vcombine.low %v2043_v35, %v2047_v36 }
 0x22b   :  { %v2163_v49 = vld [vmem:[#allocation7 + $0x3c0] sm:$0xff] }
 0x22c   :  { %1671 = vmatprep.mubr.bf16.mxu0 %v1316_v60  ;;  %1712 = vmatprep.mubr.bf16.mxu1 %v1316_v60  ;;  %v7550_v60 = vcombine.high %v2043_v35, %v2047_v36  ;;  %v2167_v63 = vld [vmem:[#allocation7 + $0x3e0] sm:$0xff] }
 0x22d   :  { %1672 = vmatmul.mubr.bf16.vlgmr.msra.gmra.mxu0 %v1315_v55  ;;  %1713 = vmatmul.mubr.bf16.vlgmr.msra.gmra.mxu1 %v1315_v55  ;;  %v2175_v55 = vld [vmem:[#allocation7 + $0x420] sm:$0xff]  ;;  %v7670_v1 = vcombine.high %v2163_v49, %v2167_v63 }
 0x22e   :  { %3622 = vmatpush1.bf16.msra.mxu0 %v7605_v54  ;;  %3735 = vmatpush1.bf16.msra.mxu1 %v7733_v0  ;;  %v7677_v61 = vcombine.low %v2171_v37, %v2175_v55  ;;  %v7678_v62 = vcombine.high %v2171_v37, %v2175_v55  ;;  %v2291_v54 = vld [vmem:[#allocation7 + $0x7c0] sm:$0xff]  ;;  %v7669_v0 = vcombine.low %v2163_v49, %v2167_v63 }
 0x22f   :  { %3623 = vmatprep.subr.bf16.mxu0 %v7598_v6  ;;  %3736 = vmatprep.subr.bf16.mxu1 %v7726_v11  ;;  %v2295_v2 = vld [vmem:[#allocation7 + $0x7e0] sm:$0xff] }
 0x230   :  { %v2155_v3 = vld [vmem:[#allocation7 + $0x380] sm:$0xff]  ;;  %v7797_v6 = vcombine.low %v2291_v54, %v2295_v2  ;;  %v7798_v7 = vcombine.high %v2291_v54, %v2295_v2  ;;  %v9408_v2 = vld [vmem:[#allocation7 + $0x5c8] sm:$0xff] }
 0x231   :  { %v2159_v5 = vld [vmem:[#allocation7 + $0x3a0] sm:$0xff] }
 0x232   :  { %3624 = vmatpush1.bf16.msra.mxu0 %v7597_v8  ;;  %3737 = vmatpush1.bf16.msra.mxu1 %v7725_v10  ;;  %v7662_v8 = vcombine.high %v2155_v3, %v2159_v5  ;;  %v2283_v10 = vld [vmem:[#allocation7 + $0x780] sm:$0xff] }
 0x233   :  { %3625 = vmatprep.subr.bf16.mxu0 %v7590_v56  ;;  %3738 = vmatprep.subr.bf16.mxu1 %v7718_v16  ;;  %v2287_v11 = vld [vmem:[#allocation7 + $0x7a0] sm:$0xff] }
 0x234   :  { %v2147_v12 = vld [vmem:[#allocation7 + $0x340] sm:$0xff]  ;;  %v7790_v13 = vcombine.high %v2283_v10, %v2287_v11 }
 0x235   :  { %v2151_v14 = vld [vmem:[#allocation7 + $0x360] sm:$0xff] }
 0x236   :  { %3626 = vmatpush1.bf16.msra.mxu0 %v7589_v9  ;;  %3739 = vmatpush1.bf16.msra.mxu1 %v7717_v15  ;;  %v2275_v56 = vld [vmem:[#allocation7 + $0x740] sm:$0xff]  ;;  %v7661_v9 = vcombine.low %v2155_v3, %v2159_v5  ;;  %v7789_v15 = vcombine.low %v2283_v10, %v2287_v11  ;;  %v7654_v16 = vcombine.high %v2147_v12, %v2151_v14 }
 0x237   :  { %3627 = vmatprep.subr.bf16.mxu0 %v7582_v18  ;;  %3740 = vmatprep.subr.bf16.mxu1 %v7710_v27  ;;  %v2279_v4 = vld [vmem:[#allocation7 + $0x760] sm:$0xff]  ;;  %v7653_v17 = vcombine.low %v2147_v12, %v2151_v14 }
 0x238   :  { %v7782_v26 = vcombine.high %v2275_v56, %v2279_v4  ;;  %v7781_v31 = vcombine.low %v2275_v56, %v2279_v4  ;;  %v2139_v18 = vld [vmem:[#allocation7 + $0x300] sm:$0xff] }
 0x239   :  { %v2143_v19 = vld [vmem:[#allocation7 + $0x320] sm:$0xff] }
 0x23a   :  { %3628 = vmatpush1.bf16.msra.mxu0 %v7581_v21  ;;  %3741 = vmatpush1.bf16.msra.mxu1 %v7709_v22  ;;  %v2267_v21 = vld [vmem:[#allocation7 + $0x700] sm:$0xff]  ;;  %v7645_v22 = vcombine.low %v2139_v18, %v2143_v19  ;;  %v7646_v27 = vcombine.high %v2139_v18, %v2143_v19 }
 0x23b   :  { %3629 = vmatprep.subr.bf16.mxu0 %v7574_v34  ;;  %3742 = vmatprep.subr.bf16.mxu1 %v7702_v29  ;;  %v2271_v28 = vld [vmem:[#allocation7 + $0x720] sm:$0xff] }
 0x23c   :  { %v7773_v30 = vcombine.low %v2267_v21, %v2271_v28  ;;  %v7774_v32 = vcombine.high %v2267_v21, %v2271_v28  ;;  %v2131_v34 = vld [vmem:[#allocation7 + $0x2c0] sm:$0xff] }
 0x23d   :  { %v2135_v20 = vld [vmem:[#allocation7 + $0x2e0] sm:$0xff] }
 0x23e   :  { %3630 = vmatpush1.bf16.msra.mxu0 %v7573_v38  ;;  %3743 = vmatpush1.bf16.msra.mxu1 %v7701_v39  ;;  %v2259_v38 = vld [vmem:[#allocation7 + $0x6c0] sm:$0xff]  ;;  %v7638_v39 = vcombine.high %v2131_v34, %v2135_v20  ;;  %v7637_v40 = vcombine.low %v2131_v34, %v2135_v20 }
 0x23f   :  { %3631 = vmatprep.subr.bf16.mxu0 %v7566_v43  ;;  %3744 = vmatprep.subr.bf16.mxu1 %v7694_v47  ;;  %v2263_v29 = vld [vmem:[#allocation7 + $0x6e0] sm:$0xff] }
 0x240   :  { %v7765_v41 = vcombine.low %v2259_v38, %v2263_v29  ;;  %v7766_v42 = vcombine.high %v2259_v38, %v2263_v29  ;;  %v2123_v43 = vld [vmem:[#allocation7 + $0x280] sm:$0xff] }
 0x241   :  { %v2127_v44 = vld [vmem:[#allocation7 + $0x2a0] sm:$0xff] }
 0x242   :  { %3632 = vmatpush1.bf16.msra.mxu0 %v7565_v45  ;;  %3745 = vmatpush1.bf16.msra.mxu1 %v7693_v46  ;;  %v2251_v45 = vld [vmem:[#allocation7 + $0x680] sm:$0xff]  ;;  %v7630_v46 = vcombine.high %v2123_v43, %v2127_v44  ;;  %v7629_v48 = vcombine.low %v2123_v43, %v2127_v44 }
 0x243   :  { %3633 = vmatprep.subr.bf16.mxu0 %v7558_v52  ;;  %3746 = vmatprep.subr.bf16.mxu1 %v7686_v33  ;;  %v2255_v47 = vld [vmem:[#allocation7 + $0x6a0] sm:$0xff] }
 0x244   :  { %v7757_v50 = vcombine.low %v2251_v45, %v2255_v47  ;;  %v7758_v51 = vcombine.high %v2251_v45, %v2255_v47  ;;  %v2115_v52 = vld [vmem:[#allocation7 + $0x240] sm:$0xff] }
 0x245   :  { %v2119_v57 = vld [vmem:[#allocation7 + $0x260] sm:$0xff] }
 0x246   :  { %3634 = vmatpush1.bf16.msra.mxu0 %v7557_v58  ;;  %3747 = vmatpush1.bf16.msra.mxu1 %v7685_v59  ;;  %v2243_v58 = vld [vmem:[#allocation7 + $0x640] sm:$0xff]  ;;  %v7621_v33 = vcombine.low %v2115_v52, %v2119_v57  ;;  %v7622_v35 = vcombine.high %v2115_v52, %v2119_v57 }
 0x247   :  { %3635 = vmatprep.subr.bf16.mxu0 %v7550_v60  ;;  %3748 = vmatprep.subr.bf16.mxu1 %v7678_v62  ;;  %v2247_v59 = vld [vmem:[#allocation7 + $0x660] sm:$0xff] }
 0x248   :  { %v2107_v36 = vld [vmem:[#allocation7 + $0x200] sm:$0xff]  ;;  %v7749_v55 = vcombine.low %v2243_v58, %v2247_v59 }
 0x249   :  { %v2111_v37 = vld [vmem:[#allocation7 + $0x220] sm:$0xff] }
 0x24a   :  { %3636 = vmatpush1.bf16.msra.mxu0 %v7549_v53  ;;  %3749 = vmatpush1.bf16.msra.mxu1 %v7677_v61  ;;  %v2235_v60 = vld [vmem:[#allocation7 + $0x600] sm:$0xff]  ;;  %v7750_v53 = vcombine.high %v2243_v58, %v2247_v59  ;;  %v7614_v61 = vcombine.high %v2107_v36, %v2111_v37  ;;  %v7613_v63 = vcombine.low %v2107_v36, %v2111_v37 }
 0x24b   :  { %3637 = vmatprep.subr.bf16.mxu0 %v7670_v1  ;;  %3750 = vmatprep.subr.bf16.mxu1 %v7798_v7  ;;  %v2239_v62 = vld [vmem:[#allocation7 + $0x620] sm:$0xff]  ;;  %v9406_v1 = vld [vmem:[#allocation7 + $0x1e8] sm:$0xff] }
 0x24c   :  { %v7742_v49 = vcombine.high %v2235_v60, %v2239_v62  ;;  %v7741_v54 = vcombine.low %v2235_v60, %v2239_v62 }
 0x24e   :  { %3638 = vmatpush2.bf16.msra.mxu0 %v7669_v0  ;;  %3751 = vmatpush2.bf16.msra.mxu1 %v7797_v6  ;;  %v9404_v0 = vld [vmem:[#allocation7 + $0x1c8] sm:$0xff] }
 0x24f   :  { %3639 = vmatprep.subr.bf16.mxu0 %v7662_v8  ;;  %3752 = vmatprep.subr.bf16.mxu1 %v7790_v13  ;;  %v7608_v5 = vcombine.high %v9404_v0, %v9406_v1  ;;  %v9414_v6 = vld [vmem:[#allocation7 + $0x5e8] sm:$0xff] }
 0x250   :  { %v7736_v8 = vcombine.high %v9408_v2, %v9414_v6 }
 0x252   :  { %3640 = vmatpush2.bf16.msra.mxu0 %v7661_v9  ;;  %3753 = vmatpush2.bf16.msra.mxu1 %v7789_v15 }
 0x253   :  { %3641 = vmatprep.subr.bf16.mxu0 %v7654_v16  ;;  %3754 = vmatprep.subr.bf16.mxu1 %v7782_v26 }
 0x256   :  { %3642 = vmatpush2.bf16.msra.mxu0 %v7653_v17  ;;  %3755 = vmatpush2.bf16.msra.mxu1 %v7781_v31 }
 0x257   :  { %3643 = vmatprep.subr.bf16.mxu0 %v7646_v27  ;;  %3756 = vmatprep.subr.bf16.mxu1 %v7774_v32 }
 0x25a   :  { %3644 = vmatpush2.bf16.msra.mxu0 %v7645_v22  ;;  %3757 = vmatpush2.bf16.msra.mxu1 %v7773_v30 }
 0x25b   :  { %3645 = vmatprep.subr.bf16.mxu0 %v7638_v39  ;;  %3758 = vmatprep.subr.bf16.mxu1 %v7766_v42 }
 0x25e   :  { %3646 = vmatpush2.bf16.msra.mxu0 %v7637_v40  ;;  %3759 = vmatpush2.bf16.msra.mxu1 %v7765_v41 }
 0x25f   :  { %3647 = vmatprep.subr.bf16.mxu0 %v7630_v46  ;;  %3760 = vmatprep.subr.bf16.mxu1 %v7758_v51 }
 0x262   :  { %3648 = vmatpush2.bf16.msra.mxu0 %v7629_v48  ;;  %3761 = vmatpush2.bf16.msra.mxu1 %v7757_v50 }
 0x263   :  { %3649 = vmatprep.subr.bf16.mxu0 %v7622_v35  ;;  %3762 = vmatprep.subr.bf16.mxu1 %v7750_v53 }
 0x266   :  { %3650 = vmatpush2.bf16.msra.mxu0 %v7621_v33  ;;  %3763 = vmatpush2.bf16.msra.mxu1 %v7749_v55 }
 0x267   :  { %3651 = vmatprep.subr.bf16.mxu0 %v7614_v61  ;;  %3764 = vmatprep.subr.bf16.mxu1 %v7742_v49 }
 0x26a   :  { %3652 = vmatpush2.bf16.msra.mxu0 %v7613_v63  ;;  %3765 = vmatpush2.bf16.msra.mxu1 %v7741_v54 }
 0x26b   :  { %3847 = vmatprep.subr.bf16.mxu0 %v7608_v5  ;;  %3960 = vmatprep.subr.bf16.mxu1 %v7736_v8 }
 0x2a2   :  { %v9420_v10 = vpop.f32.mrf.mxu0  ;;  %v9422_v11 = vpop.f32.mrf.mxu1 }
 0x2a4   :  { %v9424_v12 = vpop.f32.mrf.mxu0  ;;  %v9426_v13 = vpop.f32.mrf.mxu1 }
 0x2a6   :  { %v9428_v14 = vpop.f32.mrf.mxu0  ;;  %v9430_v56 = vpop.f32.mrf.mxu1 }
 0x2a8   :  { %v9432_v4 = vpop.f32.mrf.mxu0  ;;  %v9434_v9 = vpop.f32.mrf.mxu1 }
 0x2aa   :  { %v9436_v15 = vpop.f32.mrf.mxu0  ;;  %v9438_v16 = vpop.f32.mrf.mxu1 }
 0x2ac   :  { %v9440_v26 = vpop.f32.mrf.mxu0  ;;  %v9442_v17 = vpop.f32.mrf.mxu1 }
 0x2ae   :  { %v9444_v31 = vpop.f32.mrf.mxu0  ;;  %v9446_v18 = vpop.f32.mrf.mxu1 }
 0x2b0   :  { %v9448_v19 = vpop.f32.mrf.mxu0  ;;  %v9450_v21 = vpop.f32.mrf.mxu1 }
 0x2b2   :  { %v9452_v22 = vpop.f32.mrf.mxu0  ;;  %v9454_v27 = vpop.f32.mrf.mxu1 }
 0x2b3   :  { %11058 = vst [vmem:[#allocation19_spill] sm:$0xff] %v9454_v27  ;;  %v9642_v27 = vld [vmem:[#allocation7 + $0x68] sm:$0xff] }
 0x2b4   :  { %v9456_v28 = vpop.f32.mrf.mxu0  ;;  %v9458_v30 = vpop.f32.mrf.mxu1  ;;  %11115 = vst [vmem:[#allocation76_spill] sm:$0xff] %v9642_v27  ;;  %v9694_v27 = vld [vmem:[#allocation7 + $0x788] sm:$0xff] }
 0x2b5   :  { %11125 = vst [vmem:[#allocation86_spill] sm:$0xff] %v9694_v27 }
 0x2b6   :  { %v9460_v32 = vpop.f32.mrf.mxu0  ;;  %v9462_v34 = vpop.f32.mrf.mxu1 }
 0x2b7   :  { %11059 = vst [vmem:[#allocation20_spill] sm:$0xff] %v9460_v32  ;;  %11060 = vst [vmem:[#allocation21_spill] sm:$0xff] %v9462_v34  ;;  %v9682_v34 = vld [vmem:[#allocation7 + $0x7e8] sm:$0xff] }
 0x2b8   :  { %v9464_v20 = vpop.f32.mrf.mxu0  ;;  %v9466_v38 = vpop.f32.mrf.mxu1  ;;  %11124 = vst [vmem:[#allocation85_spill] sm:$0xff] %v9682_v34 }
 0x2ba   :  { %v9468_v39 = vpop.f32.mrf.mxu0  ;;  %v9470_v29 = vpop.f32.mrf.mxu1 }
 0x2bb   :  { %11061 = vst [vmem:[#allocation22_spill] sm:$0xff] %v9468_v39  ;;  %11062 = vst [vmem:[#allocation23_spill] sm:$0xff] %v9470_v29  ;;  %v9614_v29 = vld [vmem:[#allocation7 + $0x4e8] sm:$0xff] }
 0x2bc   :  { %v9472_v40 = vpop.f32.mrf.mxu0  ;;  %v9474_v41 = vpop.f32.mrf.mxu1  ;;  %11111 = vst [vmem:[#allocation72_spill] sm:$0xff] %v9614_v29  ;;  %v9666_v29 = vld [vmem:[#allocation7 + $0x428] sm:$0xff] }
 0x2bd   :  { %11063 = vst [vmem:[#allocation24_spill] sm:$0xff] %v9472_v40  ;;  %11064 = vst [vmem:[#allocation25_spill] sm:$0xff] %v9474_v41  ;;  %v9628_v41 = vld [vmem:[#allocation7 + $0x488] sm:$0xff] }
 0x2be   :  { %v9476_v42 = vpop.f32.mrf.mxu0  ;;  %v9478_v43 = vpop.f32.mrf.mxu1  ;;  %v9632_v40 = vld [vmem:[#allocation7 + $0x48] sm:$0xff]  ;;  %11121 = vst [vmem:[#allocation82_spill] sm:$0xff] %v9666_v29 }
 0x2bf   :  { %11065 = vst [vmem:[#allocation26_spill] sm:$0xff] %v9476_v42  ;;  %11066 = vst [vmem:[#allocation27_spill] sm:$0xff] %v9478_v43  ;;  %v9604_v43 = vld [vmem:[#allocation7 + $0x4c8] sm:$0xff] }
 0x2c0   :  { %v9480_v44 = vpop.f32.mrf.mxu0  ;;  %v9482_v45 = vpop.f32.mrf.mxu1  ;;  %11110 = vst [vmem:[#allocation71_spill] sm:$0xff] %v9604_v43  ;;  %v9618_v42 = vld [vmem:[#allocation7 + $0xa8] sm:$0xff]  ;;  %11114 = vst [vmem:[#allocation75_spill] sm:$0xff] %v9632_v40 }
 0x2c1   :  { %11067 = vst [vmem:[#allocation28_spill] sm:$0xff] %v9480_v44  ;;  %11068 = vst [vmem:[#allocation29_spill] sm:$0xff] %v9482_v45  ;;  %v9630_v44 = vld [vmem:[#allocation7 + $0x4a8] sm:$0xff] }
 0x2c2   :  { %v9484_v46 = vpop.f32.mrf.mxu0  ;;  %v9486_v47 = vpop.f32.mrf.mxu1  ;;  %11113 = vst [vmem:[#allocation74_spill] sm:$0xff] %v9618_v42  ;;  %v9670_v43 = vld [vmem:[#allocation7 + $0x3e8] sm:$0xff] }
 0x2c3   :  { %11069 = vst [vmem:[#allocation30_spill] sm:$0xff] %v9484_v46  ;;  %11070 = vst [vmem:[#allocation31_spill] sm:$0xff] %v9486_v47  ;;  %v9584_v47 = vld [vmem:[#allocation7 + $0x528] sm:$0xff] }
 0x2c4   :  { %v9488_v48 = vpop.f32.mrf.mxu0  ;;  %v9490_v50 = vpop.f32.mrf.mxu1  ;;  %11105 = vst [vmem:[#allocation66_spill] sm:$0xff] %v9584_v47  ;;  %v9660_v47 = vld [vmem:[#allocation7 + $0x408] sm:$0xff]  ;;  %11122 = vst [vmem:[#allocation83_spill] sm:$0xff] %v9670_v43 }
 0x2c5   :  { %11071 = vst [vmem:[#allocation32_spill] sm:$0xff] %v9488_v48  ;;  %11072 = vst [vmem:[#allocation33_spill] sm:$0xff] %v9490_v50  ;;  %v9602_v48 = vld [vmem:[#allocation7 + $0xe8] sm:$0xff] }
 0x2c6   :  { %v9492_v51 = vpop.f32.mrf.mxu0  ;;  %v9494_v52 = vpop.f32.mrf.mxu1  ;;  %11109 = vst [vmem:[#allocation70_spill] sm:$0xff] %v9602_v48  ;;  %v9616_v50 = vld [vmem:[#allocation7 + $0x88] sm:$0xff]  ;;  %11120 = vst [vmem:[#allocation81_spill] sm:$0xff] %v9660_v47 }
 0x2c7   :  { %11073 = vst [vmem:[#allocation34_spill] sm:$0xff] %v9492_v51  ;;  %11074 = vst [vmem:[#allocation35_spill] sm:$0xff] %v9494_v52  ;;  %v9582_v52 = vld [vmem:[#allocation7 + $0x508] sm:$0xff] }
 0x2c8   :  { %v9496_v57 = vpop.f32.mrf.mxu0  ;;  %v9498_v58 = vpop.f32.mrf.mxu1  ;;  %11104 = vst [vmem:[#allocation65_spill] sm:$0xff] %v9582_v52  ;;  %11112 = vst [vmem:[#allocation73_spill] sm:$0xff] %v9616_v50  ;;  %v9656_v48 = vld [vmem:[#allocation7 + $0x8] sm:$0xff] }
 0x2c9   :  { %11075 = vst [vmem:[#allocation36_spill] sm:$0xff] %v9496_v57  ;;  %11076 = vst [vmem:[#allocation37_spill] sm:$0xff] %v9498_v58  ;;  %v9600_v57 = vld [vmem:[#allocation7 + $0xc8] sm:$0xff] }
 0x2ca   :  { %v9500_v59 = vpop.f32.mrf.mxu0  ;;  %v9502_v33 = vpop.f32.mrf.mxu1  ;;  %11108 = vst [vmem:[#allocation69_spill] sm:$0xff] %v9600_v57  ;;  %11118 = vst [vmem:[#allocation79_spill] sm:$0xff] %v9656_v48  ;;  %v9658_v57 = vld [vmem:[#allocation7 + $0x28] sm:$0xff] }
 0x2cb   :  { %11077 = vst [vmem:[#allocation38_spill] sm:$0xff] %v9500_v59  ;;  %11078 = vst [vmem:[#allocation39_spill] sm:$0xff] %v9502_v33  ;;  %v9071_v33 = vmov 1966171168   ;;  %v9569_v59 = vld [vmem:[#allocation7 + $0x108] sm:$0xff] }
 0x2cc   :  { %v9504_v35 = vpop.f32.mrf.mxu0  ;;  %v9506_v36 = vpop.f32.mrf.mxu1  ;;  %11102 = vst [vmem:[#allocation63_spill] sm:$0xff] %v9569_v59  ;;  %11119 = vst [vmem:[#allocation80_spill] sm:$0xff] %v9658_v57  ;;  %v9708_v57 = vld [vmem:[#allocation7 + $0x368] sm:$0xff] }
 0x2cd   :  { %11079 = vst [vmem:[#allocation40_spill] sm:$0xff] %v9504_v35  ;;  %11080 = vst [vmem:[#allocation41_spill] sm:$0xff] %v9506_v36  ;;  %v9580_v35 = vld [vmem:[#allocation7 + $0x128] sm:$0xff] }
 0x2ce   :  { %v9508_v37 = vpop.f32.mrf.mxu0  ;;  %v9510_v60 = vpop.f32.mrf.mxu1  ;;  %11103 = vst [vmem:[#allocation64_spill] sm:$0xff] %v9580_v35  ;;  %v9646_v35 = vld [vmem:[#allocation7 + $0x468] sm:$0xff]  ;;  %11128 = vst [vmem:[#allocation89_spill] sm:$0xff] %v9708_v57 }
 0x2cf   :  { %11081 = vst [vmem:[#allocation42_spill] sm:$0xff] %v9508_v37  ;;  %11082 = vst [vmem:[#allocation43_spill] sm:$0xff] %v9510_v60  ;;  %v9710_v48 = vld [vmem:[#allocation7 + $0x748] sm:$0xff] }
 0x2d0   :  { %v9512_v55 = vpop.f32.mrf.mxu0  ;;  %v9514_v53 = vpop.f32.mrf.mxu1  ;;  %11117 = vst [vmem:[#allocation78_spill] sm:$0xff] %v9646_v35  ;;  %11129 = vst [vmem:[#allocation90_spill] sm:$0xff] %v9710_v48  ;;  %v9716_v29 = vld [vmem:[#allocation7 + $0x768] sm:$0xff] }
 0x2d1   :  { %11083 = vst [vmem:[#allocation44_spill] sm:$0xff] %v9512_v55  ;;  %11084 = vst [vmem:[#allocation45_spill] sm:$0xff] %v9514_v53  ;;  %v9720_v47 = vld [vmem:[#allocation7 + $0x328] sm:$0xff] }
 0x2d2   :  { %v9516_v61 = vpop.f32.mrf.mxu0  ;;  %v9518_v62 = vpop.f32.mrf.mxu1  ;;  %11130 = vst [vmem:[#allocation91_spill] sm:$0xff] %v9716_v29  ;;  %11132 = vst [vmem:[#allocation93_spill] sm:$0xff] %v9720_v47 }
 0x2d3   :  { %11085 = vst [vmem:[#allocation46_spill] sm:$0xff] %v9516_v61  ;;  %11086 = vst [vmem:[#allocation47_spill] sm:$0xff] %v9518_v62  ;;  %v1728_v61 = vunpack.c.l.s4 %v9071_v33  ;;  %v9553_v33 = vld [vmem:[#allocation7 + $0x5a8] sm:$0xff] }
 0x2d4   :  { %v9520_v49 = vpop.f32.mrf.mxu0  ;;  %v9522_v63 = vpop.f32.mrf.mxu1 }
 0x2d5   :  { %11087 = vst [vmem:[#allocation48_spill] sm:$0xff] %v9520_v49  ;;  %11088 = vst [vmem:[#allocation49_spill] sm:$0xff] %v9522_v63  ;;  %v1729_v49 = vunpack.c.0.s8 %v1728_v61  ;;  %v9560_v61 = vsub.s32 2, %v9285_v23 }
 0x2d6   :  { %v9524_v54 = vpop.f32.mrf.mxu0  ;;  %v9526_v5 = vpop.f32.mrf.mxu1 }
 0x2d7   :  { %11089 = vst [vmem:[#allocation50_spill] sm:$0xff] %v9524_v54  ;;  %11090 = vst [vmem:[#allocation51_spill] sm:$0xff] %v9526_v5  ;;  %v1861_v54 = vld [vmem:[%s10972_s7] sm:$0xf]  ;;  %v9572_v53 = vsub.s32 %v1729_v49, %v9285_v23 }
 0x2d8   :  { %v9528_v8 = vpop.f32.mrf.mxu0  ;;  %v9530_v7 = vpop.f32.mrf.mxu1  ;;  %11099 = vst [vmem:[#allocation60_spill] sm:$0xff] %v9560_v61  ;;  %v9575_v36 = vrot.slane %v1861_v54, %v9291_v25  ;;  %v9578_v55 = vrot.slane %v1861_v54, %v9288_v24  ;;  %v9591_v58 = vrot.slane %v1861_v54, %v9560_v61 }
 0x2d9   :  { %11091 = vst [vmem:[#allocation52_spill] sm:$0xff] %v9528_v8  ;;  %11092 = vst [vmem:[#allocation53_spill] sm:$0xff] %v9530_v7  ;;  %v9547_v7 = vld [vmem:[#allocation7 + $0x188] sm:$0xff]  ;;  %v9563_v8 = vsub.s32 3, %v9285_v23 }
 0x2da   :  { %v9532_v3 = vpop.f32.mrf.mxu0  ;;  %v9534_v60 = vpop.f32.mrf.mxu1  ;;  %v9644_v23 = vld [vmem:[#allocation7 + $0x448] sm:$0xff] }
 0x2db   :  { %11093 = vst [vmem:[#allocation54_spill] sm:$0xff] %v9532_v3  ;;  %11094 = vst [vmem:[#allocation55_spill] sm:$0xff] %v9534_v60  ;;  %v9549_v3 = vld [vmem:[#allocation7 + $0x1a8] sm:$0xff]  ;;  %v9594_v49 = vrot.slane %v1861_v54, %v9563_v8 }
 0x2dc   :  { %v9536_v37 = vpop.f32.mrf.mxu0  ;;  %v9538_v62 = vpop.f32.mrf.mxu1  ;;  %v9551_v60 = vld [vmem:[#allocation7 + $0x588] sm:$0xff]  ;;  %11100 = vst [vmem:[#allocation61_spill] sm:$0xff] %v9563_v8  ;;  %11116 = vst [vmem:[#allocation77_spill] sm:$0xff] %v9644_v23 }
 0x2dd   :  { %11095 = vst [vmem:[#allocation56_spill] sm:$0xff] %v9536_v37  ;;  %11096 = vst [vmem:[#allocation57_spill] sm:$0xff] %v9538_v62  ;;  %v9555_v37 = vld [vmem:[#allocation7 + $0x148] sm:$0xff] }
 0x2de   :  { %v9543_v5 = vpop.f32.mrf.mxu0  ;;  %v9545_v63 = vpop.f32.mrf.mxu1  ;;  %v9557_v62 = vld [vmem:[#allocation7 + $0x168] sm:$0xff] }
 0x2df   :  { %11097 = vst [vmem:[#allocation58_spill] sm:$0xff] %v9543_v5  ;;  %11098 = vst [vmem:[#allocation59_spill] sm:$0xff] %v9545_v63  ;;  %v9565_v5 = vld [vmem:[#allocation7 + $0x548] sm:$0xff] }
 0x2e0   :  { %v9567_v63 = vld [vmem:[#allocation7 + $0x568] sm:$0xff]  ;;  %v9586_v51 = vpop.f32.mrf.mxu0  ;;  %v9588_v46 = vpop.f32.mrf.mxu1 }
 0x2e1   :  { %11101 = vst [vmem:[#allocation62_spill] sm:$0xff] %v9567_v63  ;;  %11106 = vst [vmem:[#allocation67_spill] sm:$0xff] %v9586_v51  ;;  %v9668_v51 = vld [vmem:[#allocation7 + $0x3c8] sm:$0xff] }
 0x2e2   :  { %11107 = vst [vmem:[#allocation68_spill] sm:$0xff] %v9588_v46  ;;  %v9684_v46 = vld [vmem:[#allocation7 + $0x388] sm:$0xff] }
 0x2ed   :  { %v1673_v39 = vpop.f32.mrf.mxu0  ;;  %v1714_v45 = vpop.f32.mrf.mxu1 }
 0x2ef   :  { %v1675_v59 = vpop.f32.mrf.mxu0  ;;  %v1716_v32 = vpop.f32.mrf.mxu1 }
 0x2f0   :  { %v1725_v52 = vcombine.low %v1673_v39, %v1675_v59  ;;  %v1726_v63 = vcombine.low %v1714_v45, %v1716_v32  ;;  %v9680_v59 = vld [vmem:[#allocation7 + $0x7c8] sm:$0xff] }
 0x2f1   :  { %v1677_v54 = vpop.f32.mrf.mxu0  ;;  %v1718_v42 = vpop.f32.mrf.mxu1  ;;  %11123 = vst [vmem:[#allocation84_spill] sm:$0xff] %v9680_v59  ;;  %v9692_v39 = vld [vmem:[#allocation7 + $0x3a8] sm:$0xff] }
 0x2f2   :  { %v1733_v42 = vrot.slane %v1725_v52, %v9572_v53  ;;  %v1740_v54 = vrot.slane %v1726_v63, %v9572_v53  ;;  %v9696_v45 = vld [vmem:[#allocation7 + $0x7a8] sm:$0xff] }
 0x2f3   :  { %11126 = vst [vmem:[#allocation87_spill] sm:$0xff] %v9696_v45  ;;  %v1678_v35 = vpop.f32.mrf.mxu0  ;;  %v1719_v23 = vpop.f32.mrf.mxu1  ;;  %v9706_v32 = vld [vmem:[#allocation7 + $0x348] sm:$0xff] }
 0x2f4   :  { %11127 = vst [vmem:[#allocation88_spill] sm:$0xff] %v9706_v32  ;;  %v1741_v35 = vcombine.low %v1733_v42, %v1740_v54  ;;  %v1742_v23 = vcombine.high %v1733_v42, %v1740_v54  ;;  %v9718_v63 = vld [vmem:[#allocation7 + $0x308] sm:$0xff] }
 0x2f5   :  { %11131 = vst [vmem:[#allocation92_spill] sm:$0xff] %v9718_v63 }
 0x2f6   :  { %v1749_v40 = vrot.slane %v1741_v35, %v9572_v53  ;;  %v1756_v52 = vrot.slane %v1742_v23, %v9572_v53 }
 0x2f8   :  { %v9745_v53 = vrot.slane %v1749_v40, %v9291_v25  ;;  %v9748_v23 = vrot.slane %v1749_v40, %v9288_v24  ;;  %v9751_v34 = vrot.slane %v1749_v40, %v9560_v61  ;;  %v9754_v50 = vrot.slane %v1749_v40, %v9563_v8 }
 0x2f9   :  { %v9757_v43 = vrot.slane %v1756_v52, %v9291_v25  ;;  %v9760_v42 = vrot.slane %v1756_v52, %v9288_v24  ;;  %v9763_v35 = vrot.slane %v1756_v52, %v9560_v61  ;;  %v9766_v59 = vrot.slane %v1756_v52, %v9563_v8 }
 0x2fa   :  { %v1798_v54 = vadd.f32 %v9748_v23, %v9424_v12  ;;  %v1802_v47 = vadd.f32 %v9748_v23, %v9432_v4  ;;  %v1800_v40 = vadd.f32 %v9754_v50, %v9426_v13  ;;  %v1804_v25 = vadd.f32 %v9754_v50, %v9434_v9 }
 0x2fb   :  { %v1797_v24 = vadd.f32 %v9745_v53, %v9420_v10  ;;  %v1801_v61 = vadd.f32 %v9745_v53, %v9428_v14  ;;  %v1799_v52 = vadd.f32 %v9751_v34, %v9422_v11  ;;  %v1803_v12 = vadd.f32 %v9751_v34, %v9430_v56 }
 0x2fc   :  { %v1884_v4 = vadd.f32 %v9578_v55, %v1798_v54  ;;  %v1888_v8 = vadd.f32 %v9578_v55, %v1802_v47  ;;  %v1886_v13 = vadd.f32 %v9594_v49, %v1800_v40  ;;  %v1890_v9 = vadd.f32 %v9594_v49, %v1804_v25 }
 0x2fd   :  { %v1883_v63 = vadd.f32 %v9575_v36, %v1797_v24  ;;  %v1887_v10 = vadd.f32 %v9575_v36, %v1801_v61  ;;  %v1885_v14 = vadd.f32 %v9591_v58, %v1799_v52  ;;  %v1889_v29 = vadd.f32 %v9591_v58, %v1803_v12 }
 0x2fe   :  { %v1948_v11 = vmax.f32 %v1884_v4, 0.0  ;;  %v1952_v48 = vmax.f32 %v1888_v8, 0.0  ;;  %v1950_v57 = vmax.f32 %v1886_v13, 0.0  ;;  %v1954_v56 = vmax.f32 %v1890_v9, 0.0 }
 0x2ff   :  { %v1947_v32 = vmax.f32 %v1883_v63, 0.0  ;;  %v1951_v54 = vmax.f32 %v1887_v10, 0.0  ;;  %v1949_v45 = vmax.f32 %v1885_v14, 0.0  ;;  %v1953_v47 = vmax.f32 %v1889_v29, 0.0 }
 0x300   :  { %v9792_v27 = vpack.c.bf16 %v1952_v48, %v1948_v11  ;;  %v9794_v40 = vpack.c.bf16 %v1954_v56, %v1950_v57  ;;  %v1806_v24 = vadd.f32 %v9748_v23, %v9440_v26  ;;  %v1810_v25 = vadd.f32 %v9748_v23, %v9448_v19 }
 0x301   :  { %v9800_v61 = vpack.c.bf16 %v1951_v54, %v1947_v32  ;;  %v9802_v52 = vpack.c.bf16 %v1953_v47, %v1949_v45  ;;  %v1808_v8 = vadd.f32 %v9754_v50, %v9442_v17  ;;  %v1812_v29 = vadd.f32 %v9754_v50, %v9450_v21 }
 0x302   :  { %3653 = vmatprep.mubr.bf16.mxu0 %v9792_v27  ;;  %3766 = vmatprep.mubr.bf16.mxu1 %v9794_v40  ;;  %v1892_v48 = vadd.f32 %v9578_v55, %v1806_v24  ;;  %v1896_v26 = vadd.f32 %v9578_v55, %v1810_v25  ;;  %v1805_v19 = vadd.f32 %v9745_v53, %v9436_v15 }
 0x303   :  { %3654 = vmatmul.mubr.bf16.vlgmr.msra.gmra.mxu0 %v9800_v61  ;;  %3767 = vmatmul.mubr.bf16.vlgmr.msra.gmra.mxu1 %v9802_v52  ;;  %v1894_v17 = vadd.f32 %v9594_v49, %v1808_v8  ;;  %v1898_v57 = vadd.f32 %v9594_v49, %v1812_v29  ;;  %v1809_v21 = vadd.f32 %v9745_v53, %v9444_v31 }
 0x304   :  { %v11133_v32 = vcombine.low %v9404_v0, %v9406_v1  ;;  %v1956_v45 = vmax.f32 %v1892_v48, 0.0  ;;  %v1960_v63 = vmax.f32 %v1896_v26, 0.0  ;;  %v11134_v15 = vcombine.low %v9408_v2, %v9414_v6 }
 0x305   :  { %v1891_v12 = vadd.f32 %v9575_v36, %v1805_v19  ;;  %v1807_v4 = vadd.f32 %v9751_v34, %v9438_v16  ;;  %v1958_v13 = vmax.f32 %v1894_v17, 0.0  ;;  %v1962_v9 = vmax.f32 %v1898_v57, 0.0  ;;  %v11142_v17 = vld [vmem:[#allocation20_spill] sm:$0xff] }
 0x306   :  { %3848 = vmatpush1.bf16.msra.mxu0 %v11133_v32  ;;  %3961 = vmatpush1.bf16.msra.mxu1 %v11134_v15  ;;  %v11135_v31 = vcombine.high %v9547_v7, %v9549_v3  ;;  %v11136_v0 = vcombine.high %v9551_v60, %v9553_v33  ;;  %v1895_v1 = vadd.f32 %v9575_v36, %v1809_v21 }
 0x307   :  { %v1811_v2 = vadd.f32 %v9751_v34, %v9446_v18  ;;  %v9838_v6 = vpack.c.bf16 %v1960_v63, %v1956_v45  ;;  %v1955_v10 = vmax.f32 %v1891_v12, 0.0  ;;  %v1893_v16 = vadd.f32 %v9591_v58, %v1807_v4  ;;  %v11143_v45 = vld [vmem:[#allocation19_spill] sm:$0xff] }
 0x308   :  { %3849 = vmatprep.subr.bf16.mxu0 %v11135_v31  ;;  %3962 = vmatprep.subr.bf16.mxu1 %v11136_v0  ;;  %v1814_v14 = vadd.f32 %v9748_v23, %v9456_v28  ;;  %v9843_v11 = vpack.c.bf16 %v1962_v9, %v1958_v13  ;;  %v1959_v56 = vmax.f32 %v1895_v1, 0.0  ;;  %v1818_v47 = vadd.f32 %v9748_v23, %v9464_v20  ;;  %v11145_v9 = vld [vmem:[#allocation21_spill] sm:$0xff]  ;;  %v11146_v1 = vld [vmem:[#allocation63_spill] sm:$0xff] }
 0x309   :  { %v1897_v54 = vadd.f32 %v9591_v58, %v1811_v2  ;;  %3663 = vmatprep.mubr.bf16.mxu0 %v9838_v6  ;;  %v11137_v18 = vcombine.low %v9547_v7, %v9549_v3  ;;  %v1957_v24 = vmax.f32 %v1893_v16, 0.0  ;;  %v1816_v28 = vadd.f32 %v9754_v50, %v9458_v30  ;;  %v11147_v2 = vld [vmem:[#allocation64_spill] sm:$0xff] }
 0x30a   :  { %v1900_v25 = vadd.f32 %v9578_v55, %v1814_v14  ;;  %v1820_v8 = vadd.f32 %v9754_v50, %v9466_v38  ;;  %3776 = vmatprep.mubr.bf16.mxu1 %v9843_v11  ;;  %v11138_v20 = vcombine.low %v9551_v60, %v9553_v33  ;;  %v9861_v29 = vpack.c.bf16 %v1959_v56, %v1955_v10  ;;  %v11140_v38 = vld [vmem:[#allocation62_spill] sm:$0xff] }
 0x30b   :  { %3850 = vmatpush1.bf16.msra.mxu0 %v11137_v18  ;;  %v1961_v48 = vmax.f32 %v1897_v54, 0.0  ;;  %v1904_v3 = vadd.f32 %v9578_v55, %v1818_v47  ;;  %v1813_v7 = vadd.f32 %v9745_v53, %v9452_v22  ;;  %v11139_v30 = vcombine.high %v9555_v37, %v9557_v62 }
 0x30c   :  { %3963 = vmatpush1.bf16.msra.mxu1 %v11138_v20  ;;  %v11141_v26 = vcombine.high %v9565_v5, %v11140_v38  ;;  %v1964_v19 = vmax.f32 %v1900_v25, 0.0  ;;  %v1902_v60 = vadd.f32 %v9594_v49, %v1816_v28  ;;  %v1906_v33 = vadd.f32 %v9594_v49, %v1820_v8  ;;  %3664 = vmatmul.mubr.bf16.gmra.mxu0 %v9861_v29  ;;  %v11152_v28 = vld [vmem:[#allocation65_spill] sm:$0xff]  ;;  %v11153_v8 = vld [vmem:[#allocation66_spill] sm:$0xff] }
 0x30d   :  { %3851 = vmatprep.subr.bf16.mxu0 %v11139_v30  ;;  %v1817_v57 = vadd.f32 %v9745_v53, %v11142_v17  ;;  %v9877_v21 = vpack.c.bf16 %v1961_v48, %v1957_v24  ;;  %v1968_v22 = vmax.f32 %v1904_v3, 0.0  ;;  %v1899_v32 = vadd.f32 %v9575_v36, %v1813_v7  ;;  %v11151_v24 = vld [vmem:[#allocation28_spill] sm:$0xff]  ;;  %v11155_v7 = vld [vmem:[#allocation25_spill] sm:$0xff] }
 0x30e   :  { %3964 = vmatprep.subr.bf16.mxu1 %v11141_v26  ;;  %v1815_v63 = vadd.f32 %v9751_v34, %v11143_v45  ;;  %v11144_v15 = vcombine.low %v9555_v37, %v9557_v62  ;;  %v1966_v12 = vmax.f32 %v1902_v60, 0.0  ;;  %v1970_v4 = vmax.f32 %v1906_v33, 0.0  ;;  %v11149_v37 = vld [vmem:[#allocation24_spill] sm:$0xff]  ;;  %v11158_v33 = vld [vmem:[#allocation22_spill] sm:$0xff] }
 0x30f   :  { %v1903_v13 = vadd.f32 %v9575_v36, %v1817_v57  ;;  %v1819_v31 = vadd.f32 %v9751_v34, %v11145_v9  ;;  %3777 = vmatmul.mubr.bf16.gmra.mxu1 %v9877_v21  ;;  %v9889_v0 = vpack.c.bf16 %v1968_v22, %v1964_v19  ;;  %v11148_v10 = vcombine.high %v11146_v1, %v11147_v2  ;;  %v11159_v57 = vld [vmem:[#allocation69_spill] sm:$0xff]  ;;  %v11160_v22 = vld [vmem:[#allocation70_spill] sm:$0xff] }
 0x310   :  { %3852 = vmatpush1.bf16.msra.mxu0 %v11144_v15  ;;  %v1963_v16 = vmax.f32 %v1899_v32, 0.0  ;;  %v1901_v14 = vadd.f32 %v9591_v58, %v1815_v63  ;;  %v1822_v62 = vadd.f32 %v9748_v23, %v11149_v37  ;;  %v9897_v56 = vpack.c.bf16 %v1970_v4, %v1966_v12  ;;  %v11162_v15 = vld [vmem:[#allocation26_spill] sm:$0xff] }
 0x311   :  { %3853 = vmatprep.subr.bf16.mxu0 %v11148_v10  ;;  %v11150_v54 = vcombine.low %v9565_v5, %v11140_v38  ;;  %v1967_v47 = vmax.f32 %v1903_v13, 0.0  ;;  %v1905_v18 = vadd.f32 %v9591_v58, %v1819_v31  ;;  %v1826_v25 = vadd.f32 %v9748_v23, %v11151_v24  ;;  %3673 = vmatprep.mubr.bf16.mxu0 %v9889_v0  ;;  %v11156_v5 = vld [vmem:[#allocation29_spill] sm:$0xff]  ;;  %v11165_v10 = vld [vmem:[#allocation71_spill] sm:$0xff] }
 0x312   :  { %v11154_v20 = vcombine.high %v11152_v28, %v11153_v8  ;;  %v1965_v48 = vmax.f32 %v1901_v14, 0.0  ;;  %v1908_v3 = vadd.f32 %v9578_v55, %v1822_v62  ;;  %v1824_v30 = vadd.f32 %v9754_v50, %v11155_v7  ;;  %3786 = vmatprep.mubr.bf16.mxu1 %v9897_v56  ;;  %v11172_v7 = vld [vmem:[#allocation74_spill] sm:$0xff] }
 0x313   :  { %3965 = vmatpush1.bf16.msra.mxu1 %v11150_v54  ;;  %v1828_v38 = vadd.f32 %v9754_v50, %v11156_v5  ;;  %v11157_v23 = vcombine.low %v11146_v1, %v11147_v2  ;;  %v9918_v26 = vpack.c.bf16 %v1967_v47, %v1963_v16  ;;  %v1969_v19 = vmax.f32 %v1905_v18, 0.0  ;;  %v11164_v1 = vld [vmem:[#allocation23_spill] sm:$0xff]  ;;  %v11166_v16 = vld [vmem:[#allocation72_spill] sm:$0xff] }
 0x314   :  { %3966 = vmatprep.subr.bf16.mxu1 %v11154_v20  ;;  %v1912_v60 = vadd.f32 %v9578_v55, %v1826_v25  ;;  %v1821_v17 = vadd.f32 %v9745_v53, %v11158_v33  ;;  %v11161_v32 = vcombine.high %v11159_v57, %v11160_v22  ;;  %v1972_v45 = vmax.f32 %v1908_v3, 0.0  ;;  %v11168_v54 = vld [vmem:[#allocation27_spill] sm:$0xff]  ;;  %v11171_v3 = vld [vmem:[#allocation73_spill] sm:$0xff] }
 0x315   :  { %3854 = vmatpush1.bf16.msra.mxu0 %v11157_v23  ;;  %v1910_v50 = vadd.f32 %v9594_v49, %v1824_v30  ;;  %v1914_v63 = vadd.f32 %v9594_v49, %v1828_v38  ;;  %v1825_v12 = vadd.f32 %v9745_v53, %v11162_v15  ;;  %v11163_v4 = vcombine.low %v11152_v28, %v11153_v8  ;;  %v11170_v8 = vld [vmem:[#allocation32_spill] sm:$0xff] }
 0x316   :  { %3855 = vmatprep.subr.bf16.mxu0 %v11161_v32  ;;  %v9933_v13 = vpack.c.bf16 %v1969_v19, %v1965_v48  ;;  %v1976_v9 = vmax.f32 %v1912_v60, 0.0  ;;  %v1907_v31 = vadd.f32 %v9575_v36, %v1821_v17  ;;  %v1823_v2 = vadd.f32 %v9751_v34, %v11164_v1  ;;  %3674 = vmatmul.mubr.bf16.gmra.mxu0 %v9918_v26  ;;  %v11174_v38 = vld [vmem:[#allocation36_spill] sm:$0xff]  ;;  %v11176_v17 = vld [vmem:[#allocation33_spill] sm:$0xff] }
 0x317   :  { %3967 = vmatpush1.bf16.msra.mxu1 %v11163_v4  ;;  %v11167_v14 = vcombine.high %v11165_v10, %v11166_v16  ;;  %v1974_v37 = vmax.f32 %v1910_v50, 0.0  ;;  %v1978_v53 = vmax.f32 %v1914_v63, 0.0  ;;  %v1911_v62 = vadd.f32 %v9575_v36, %v1825_v12  ;;  %v11179_v12 = vld [vmem:[#allocation30_spill] sm:$0xff] }
 0x318   :  { %v1827_v47 = vadd.f32 %v9751_v34, %v11168_v54  ;;  %v11169_v18 = vcombine.low %v11159_v57, %v11160_v22  ;;  %v9948_v24 = vpack.c.bf16 %v1976_v9, %v1972_v45  ;;  %v1971_v25 = vmax.f32 %v1907_v31, 0.0  ;;  %3787 = vmatmul.mubr.bf16.gmra.mxu1 %v9933_v13  ;;  %v11177_v22 = vld [vmem:[#allocation37_spill] sm:$0xff] }
 0x319   :  { %3968 = vmatprep.subr.bf16.mxu1 %v11167_v14  ;;  %v1909_v28 = vadd.f32 %v9591_v58, %v1823_v2  ;;  %v1830_v20 = vadd.f32 %v9760_v42, %v11170_v8  ;;  %v9954_v48 = vpack.c.bf16 %v1978_v53, %v1974_v37  ;;  %v11173_v30 = vcombine.high %v11171_v3, %v11172_v7  ;;  %v11182_v14 = vld [vmem:[#allocation75_spill] sm:$0xff]  ;;  %v11183_v37 = vld [vmem:[#allocation76_spill] sm:$0xff] }
 0x31a   :  { %3856 = vmatpush1.bf16.msra.mxu0 %v11169_v18  ;;  %v1975_v34 = vmax.f32 %v1911_v62, 0.0  ;;  %v1913_v5 = vadd.f32 %v9591_v58, %v1827_v47  ;;  %v1834_v23 = vadd.f32 %v9760_v42, %v11174_v38  ;;  %3683 = vmatprep.mubr.bf16.mxu0 %v9948_v24  ;;  %v11175_v19 = vcombine.low %v11165_v10, %v11166_v16  ;;  %v11181_v10 = vld [vmem:[#allocation34_spill] sm:$0xff]  ;;  %v11185_v18 = vld [vmem:[#allocation31_spill] sm:$0xff] }
 0x31b   :  { %3857 = vmatprep.subr.bf16.mxu0 %v11173_v30  ;;  %v1973_v60 = vmax.f32 %v1909_v28, 0.0  ;;  %v1916_v33 = vadd.f32 %v9578_v55, %v1830_v20  ;;  %v1832_v57 = vadd.f32 %v9766_v59, %v11176_v17  ;;  %v1836_v32 = vadd.f32 %v9766_v59, %v11177_v22  ;;  %3796 = vmatprep.mubr.bf16.mxu1 %v9954_v48 }
 0x31c   :  { %3969 = vmatpush1.bf16.msra.mxu1 %v11175_v19  ;;  %v11178_v45 = vcombine.high %v9628_v41, %v9630_v44  ;;  %v9975_v50 = vpack.c.bf16 %v1975_v34, %v1971_v25  ;;  %v1977_v63 = vmax.f32 %v1913_v5, 0.0  ;;  %v1920_v15 = vadd.f32 %v9578_v55, %v1834_v23  ;;  %v11188_v34 = vld [vmem:[#allocation77_spill] sm:$0xff]  ;;  %v11189_v5 = vld [vmem:[#allocation78_spill] sm:$0xff] }
 0x31d   :  { %v1829_v4 = vadd.f32 %v9757_v43, %v11179_v12  ;;  %v11180_v9 = vcombine.low %v11171_v3, %v11172_v7  ;;  %v1980_v31 = vmax.f32 %v1916_v33, 0.0  ;;  %v1918_v1 = vadd.f32 %v9594_v49, %v1832_v57  ;;  %v11187_v7 = vld [vmem:[#allocation35_spill] sm:$0xff] }
 0x31e   :  { %3970 = vmatprep.subr.bf16.mxu1 %v11178_v45  ;;  %v1922_v2 = vadd.f32 %v9594_v49, %v1836_v32  ;;  %v1833_v16 = vadd.f32 %v9757_v43, %v11181_v10  ;;  %v11184_v53 = vcombine.high %v11182_v14, %v11183_v37  ;;  %v9990_v62 = vpack.c.bf16 %v1977_v63, %v1973_v60  ;;  %v11193_v32 = vld [vmem:[#allocation44_spill] sm:$0xff] }
 0x31f   :  { %3858 = vmatpush1.bf16.msra.mxu0 %v11180_v9  ;;  %v1984_v54 = vmax.f32 %v1920_v15, 0.0  ;;  %v1915_v47 = vadd.f32 %v9575_v36, %v1829_v4  ;;  %v1831_v25 = vadd.f32 %v9763_v35, %v11185_v18  ;;  %v11186_v28 = vcombine.low %v9628_v41, %v9630_v44  ;;  %v11191_v41 = vld [vmem:[#allocation40_spill] sm:$0xff]  ;;  %v11194_v15 = vld [vmem:[#allocation41_spill] sm:$0xff]  ;;  %v11202_v18 = vld [vmem:[#allocation82_spill] sm:$0xff] }
 0x320   :  { %3859 = vmatprep.subr.bf16.mxu0 %v11184_v53  ;;  %v1982_v8 = vmax.f32 %v1918_v1, 0.0  ;;  %v1986_v20 = vmax.f32 %v1922_v2, 0.0  ;;  %v1919_v3 = vadd.f32 %v9575_v36, %v1833_v16  ;;  %v1835_v30 = vadd.f32 %v9763_v35, %v11187_v7  ;;  %3684 = vmatmul.mubr.bf16.gmra.mxu0 %v9975_v50  ;;  %v11195_v4 = vld [vmem:[#allocation45_spill] sm:$0xff]  ;;  %v11197_v16 = vld [vmem:[#allocation38_spill] sm:$0xff]  ;;  %v11199_v53 = vld [vmem:[#allocation80_spill] sm:$0xff] }
 0x321   :  { %3971 = vmatpush1.bf16.msra.mxu1 %v11186_v28  ;;  %v11190_v38 = vcombine.high %v11188_v34, %v11189_v5  ;;  %v10005_v23 = vpack.c.bf16 %v1984_v54, %v1980_v31  ;;  %v1979_v19 = vmax.f32 %v1915_v47, 0.0  ;;  %v1917_v60 = vadd.f32 %v9591_v58, %v1831_v25  ;;  %v11201_v47 = vld [vmem:[#allocation81_spill] sm:$0xff] }
 0x322   :  { %v1838_v44 = vadd.f32 %v9760_v42, %v11191_v41  ;;  %v11192_v33 = vcombine.low %v11182_v14, %v11183_v37  ;;  %v10013_v17 = vpack.c.bf16 %v1986_v20, %v1982_v8  ;;  %v1983_v57 = vmax.f32 %v1919_v3, 0.0  ;;  %3797 = vmatmul.mubr.bf16.gmra.mxu1 %v9990_v62  ;;  %v11198_v37 = vld [vmem:[#allocation79_spill] sm:$0xff]  ;;  %v11204_v3 = vld [vmem:[#allocation42_spill] sm:$0xff] }
 0x323   :  { %3972 = vmatprep.subr.bf16.mxu1 %v11190_v38  ;;  %v1921_v22 = vadd.f32 %v9591_v58, %v1835_v30  ;;  %v1842_v45 = vadd.f32 %v9760_v42, %v11193_v32  ;;  %3693 = vmatprep.mubr.bf16.mxu0 %v10005_v23  ;;  %v1840_v12 = vadd.f32 %v9766_v59, %v11194_v15  ;;  %v1981_v1 = vmax.f32 %v1917_v60, 0.0  ;;  %v11206_v60 = vld [vmem:[#allocation39_spill] sm:$0xff] }
 0x324   :  { %3860 = vmatpush1.bf16.msra.mxu0 %v11192_v33  ;;  %v1924_v63 = vadd.f32 %v9578_v55, %v1838_v44  ;;  %v1844_v9 = vadd.f32 %v9766_v59, %v11195_v4  ;;  %3806 = vmatprep.mubr.bf16.mxu1 %v10013_v17  ;;  %v11196_v31 = vcombine.low %v11188_v34, %v11189_v5  ;;  %v11207_v44 = vld [vmem:[#allocation83_spill] sm:$0xff] }
 0x325   :  { %v1985_v2 = vmax.f32 %v1921_v22, 0.0  ;;  %v1928_v10 = vadd.f32 %v9578_v55, %v1842_v45  ;;  %v1837_v14 = vadd.f32 %v9757_v43, %v11197_v16  ;;  %v11200_v54 = vcombine.high %v11198_v37, %v11199_v53  ;;  %v11213_v16 = vld [vmem:[#allocation85_spill] sm:$0xff] }
 0x326   :  { %3973 = vmatpush1.bf16.msra.mxu1 %v11196_v31  ;;  %v11203_v25 = vcombine.high %v11201_v47, %v11202_v18  ;;  %v1988_v28 = vmax.f32 %v1924_v63, 0.0  ;;  %v1926_v8 = vadd.f32 %v9594_v49, %v1840_v12  ;;  %v1930_v20 = vadd.f32 %v9594_v49, %v1844_v9  ;;  %v11209_v63 = vld [vmem:[#allocation43_spill] sm:$0xff]  ;;  %v11211_v9 = vld [vmem:[#allocation48_spill] sm:$0xff] }
 0x327   :  { %3861 = vmatprep.subr.bf16.mxu0 %v11200_v54  ;;  %v1841_v7 = vadd.f32 %v9757_v43, %v11204_v3  ;;  %v11205_v30 = vcombine.low %v11198_v37, %v11199_v53  ;;  %v10045_v34 = vpack.c.bf16 %v1983_v57, %v1979_v19  ;;  %v1992_v5 = vmax.f32 %v1928_v10, 0.0  ;;  %v11212_v10 = vld [vmem:[#allocation84_spill] sm:$0xff]  ;;  %v11218_v3 = vld [vmem:[#allocation53_spill] sm:$0xff] }
 0x328   :  { %3974 = vmatprep.subr.bf16.mxu1 %v11203_v25  ;;  %v1923_v38 = vadd.f32 %v9575_v36, %v1837_v14  ;;  %v1839_v41 = vadd.f32 %v9763_v35, %v11206_v60  ;;  %v11208_v33 = vcombine.high %v9668_v51, %v11207_v44  ;;  %v1990_v22 = vmax.f32 %v1926_v8, 0.0  ;;  %v11217_v8 = vld [vmem:[#allocation49_spill] sm:$0xff] }
 0x329   :  { %3862 = vmatpush1.bf16.msra.mxu0 %v11205_v30  ;;  %v1994_v32 = vmax.f32 %v1930_v20, 0.0  ;;  %v1927_v45 = vadd.f32 %v9575_v36, %v1841_v7  ;;  %v1843_v15 = vadd.f32 %v9763_v35, %v11209_v63  ;;  %v11210_v19 = vcombine.low %v11201_v47, %v11202_v18  ;;  %v10075_v47 = vld [vmem:[#allocation7 + $0x708] sm:$0xff] }
 0x32a   :  { %3863 = vmatprep.subr.bf16.mxu0 %v11208_v33  ;;  %v10059_v57 = vpack.c.bf16 %v1985_v2, %v1981_v1  ;;  %v10061_v12 = vpack.c.bf16 %v1992_v5, %v1988_v28  ;;  %v1925_v4 = vadd.f32 %v9591_v58, %v1839_v41  ;;  %v1846_v31 = vadd.f32 %v9760_v42, %v11211_v9  ;;  %v11215_v1 = vld [vmem:[#allocation52_spill] sm:$0xff]  ;;  %v11220_v33 = vld [vmem:[#allocation46_spill] sm:$0xff] }
 0x32b   :  { %3975 = vmatpush1.bf16.msra.mxu1 %v11210_v19  ;;  %3694 = vmatmul.mubr.bf16.gmra.mxu0 %v10045_v34  ;;  %v11214_v14 = vcombine.high %v11212_v10, %v11213_v16  ;;  %v10070_v37 = vpack.c.bf16 %v1994_v32, %v1990_v22  ;;  %v1987_v53 = vmax.f32 %v1923_v38, 0.0  ;;  %v1929_v54 = vadd.f32 %v9591_v58, %v1843_v15  ;;  %v10086_v30 = vld [vmem:[#allocation7 + $0x728] sm:$0xff]  ;;  %v11222_v19 = vld [vmem:[#allocation50_spill] sm:$0xff] }
 0x32c   :  { %v1850_v2 = vadd.f32 %v9760_v42, %v11215_v1  ;;  %v11216_v18 = vcombine.low %v9668_v51, %v11207_v44  ;;  %3703 = vmatprep.mubr.bf16.mxu0 %v10061_v12  ;;  %v1991_v25 = vmax.f32 %v1927_v45, 0.0  ;;  %v1932_v28 = vadd.f32 %v9578_v55, %v1846_v31  ;;  %v10088_v5 = vld [vmem:[#allocation7 + $0x2c8] sm:$0xff]  ;;  %3807 = vmatmul.mubr.bf16.gmra.mxu1 %v10059_v57  ;;  %v11223_v9 = vld [vmem:[#allocation86_spill] sm:$0xff]  ;;  %v11224_v31 = vld [vmem:[#allocation87_spill] sm:$0xff] }
 0x32d   :  { %3976 = vmatprep.subr.bf16.mxu1 %v11214_v14  ;;  %v1848_v20 = vadd.f32 %v9766_v59, %v11217_v8  ;;  %v1852_v7 = vadd.f32 %v9766_v59, %v11218_v3  ;;  %v10090_v38 = vld [vmem:[#allocation7 + $0x2e8] sm:$0xff]  ;;  %v11219_v51 = vcombine.high %v9684_v46, %v9692_v39  ;;  %v1989_v60 = vmax.f32 %v1925_v4, 0.0  ;;  %3816 = vmatprep.mubr.bf16.mxu1 %v10070_v37  ;;  %v11228_v3 = vld [vmem:[#allocation51_spill] sm:$0xff] }
 0x32e   :  { %3864 = vmatpush2.bf16.msra.mxu0 %v11216_v18  ;;  %v1993_v41 = vmax.f32 %v1929_v54, 0.0  ;;  %v1936_v44 = vadd.f32 %v9578_v55, %v1850_v2  ;;  %v1845_v22 = vadd.f32 %v9757_v43, %v11220_v33  ;;  %v11221_v32 = vcombine.low %v11212_v10, %v11213_v16  ;;  %v11226_v16 = vld [vmem:[#allocation47_spill] sm:$0xff] }
 0x32f   :  { %3865 = vmatprep.subr.bf16.mxu0 %v11219_v51  ;;  %v1996_v45 = vmax.f32 %v1932_v28, 0.0  ;;  %v1934_v63 = vadd.f32 %v9594_v49, %v1848_v20  ;;  %v1938_v15 = vadd.f32 %v9594_v49, %v1852_v7  ;;  %v1849_v4 = vadd.f32 %v9757_v43, %v11222_v19  ;;  %v11229_v51 = vld [vmem:[#allocation88_spill] sm:$0xff] }
 0x330   :  { %3977 = vmatpush2.bf16.msra.mxu1 %v11221_v32  ;;  %v11225_v14 = vcombine.high %v11223_v9, %v11224_v31  ;;  %v2000_v54 = vmax.f32 %v1936_v44, 0.0  ;;  %v7776_v1 = vcombine.high %v10075_v47, %v10086_v30  ;;  %v7640_v10 = vcombine.high %v10088_v5, %v10090_v38  ;;  %v11230_v44 = vld [vmem:[#allocation89_spill] sm:$0xff] }
 0x331   :  { %v1847_v2 = vadd.f32 %v9763_v35, %v11226_v16  ;;  %v11227_v18 = vcombine.low %v9684_v46, %v9692_v39  ;;  %v1998_v28 = vmax.f32 %v1934_v63, 0.0  ;;  %v2002_v8 = vmax.f32 %v1938_v15, 0.0  ;;  %v11232_v16 = vld [vmem:[#allocation56_spill] sm:$0xff] }
 0x332   :  { %3978 = vmatprep.subr.bf16.mxu1 %v11225_v14  ;;  %v1931_v20 = vadd.f32 %v9575_v36, %v1845_v22  ;;  %v1851_v7 = vadd.f32 %v9763_v35, %v11228_v3  ;;  %v11231_v33 = vcombine.high %v11229_v51, %v11230_v44  ;;  %v10125_v32 = vpack.c.bf16 %v1991_v25, %v1987_v53  ;;  %v11235_v25 = vld [vmem:[#allocation90_spill] sm:$0xff]  ;;  %v10147_v3 = vld [vmem:[#allocation7 + $0x6e8] sm:$0xff] }
 0x333   :  { %3866 = vmatpush2.bf16.msra.mxu0 %v11227_v18  ;;  %v10127_v19 = vpack.c.bf16 %v1993_v41, %v1989_v60  ;;  %v1935_v14 = vadd.f32 %v9575_v36, %v1849_v4  ;;  %v1854_v46 = vadd.f32 %v9760_v42, %v11232_v16  ;;  %v11233_v39 = vcombine.low %v11223_v9, %v11224_v31  ;;  %v11234_v18 = vld [vmem:[#allocation67_spill] sm:$0xff]  ;;  %v10145_v4 = vld [vmem:[#allocation7 + $0x6c8] sm:$0xff] }
 0x334   :  { %3867 = vmatprep.subr.bf16.mxu0 %v11231_v33  ;;  %v10135_v22 = vpack.c.bf16 %v2000_v54, %v1996_v45  ;;  %v1933_v63 = vadd.f32 %v9591_v58, %v1847_v2  ;;  %v1937_v15 = vadd.f32 %v9591_v58, %v1851_v7  ;;  %v1858_v53 = vadd.f32 %v9760_v42, %v11234_v18  ;;  %v11236_v60 = vld [vmem:[#allocation91_spill] sm:$0xff]  ;;  %v11238_v9 = vld [vmem:[#allocation57_spill] sm:$0xff]  ;;  %v11239_v54 = vld [vmem:[#allocation68_spill] sm:$0xff] }
 0x335   :  { %3979 = vmatpush2.bf16.msra.mxu1 %v11233_v39  ;;  %3704 = vmatmul.mubr.bf16.gmra.mxu0 %v10125_v32  ;;  %v11237_v41 = vcombine.high %v11235_v25, %v11236_v60  ;;  %v1940_v45 = vadd.f32 %v9578_v55, %v1854_v46  ;;  %v1856_v31 = vadd.f32 %v9766_v59, %v11238_v9  ;;  %v1995_v33 = vmax.f32 %v1931_v20, 0.0  ;;  %v11241_v39 = vld [vmem:[#allocation54_spill] sm:$0xff]  ;;  %v11242_v18 = vld [vmem:[#allocation92_spill] sm:$0xff] }
 0x336   :  { %v1860_v2 = vadd.f32 %v9766_v59, %v11239_v54  ;;  %v11240_v42 = vcombine.low %v11229_v51, %v11230_v44  ;;  %3713 = vmatprep.mubr.bf16.mxu0 %v10135_v22  ;;  %v10158_v7 = vpack.c.bf16 %v2002_v8, %v1998_v28  ;;  %v1944_v16 = vadd.f32 %v9578_v55, %v1858_v53  ;;  %v11245_v54 = vld [vmem:[#allocation58_spill] sm:$0xff] }
 0x337   :  { %3980 = vmatprep.subr.bf16.mxu1 %v11237_v41  ;;  %v1853_v46 = vadd.f32 %v9757_v43, %v11241_v39  ;;  %3817 = vmatmul.mubr.bf16.gmra.mxu1 %v10127_v19  ;;  %v11243_v41 = vld [vmem:[#allocation93_spill] sm:$0xff]  ;;  %v1999_v59 = vmax.f32 %v1935_v14, 0.0  ;;  %v1942_v51 = vadd.f32 %v9594_v49, %v1856_v31  ;;  %v1857_v28 = vadd.f32 %v9757_v43, %v11245_v54 }
 0x338   :  { %3868 = vmatpush2.bf16.msra.mxu0 %v11240_v42  ;;  %v11244_v9 = vcombine.high %v11242_v18, %v11243_v41  ;;  %v1946_v44 = vadd.f32 %v9594_v49, %v1860_v2  ;;  %3826 = vmatprep.mubr.bf16.mxu1 %v10158_v7  ;;  %v11246_v55 = vcombine.low %v11235_v25, %v11236_v60  ;;  %v2004_v14 = vmax.f32 %v1940_v45, 0.0  ;;  %v2124_v31 = vld [vmem:[#allocation7 + $0x288] sm:$0xff]  ;;  %v11248_v25 = vld [vmem:[#allocation59_spill] sm:$0xff] }
 0x339   :  { %v7775_v8 = vcombine.low %v10075_v47, %v10086_v30  ;;  %v7768_v20 = vcombine.high %v10145_v4, %v10147_v3  ;;  %v2008_v53 = vmax.f32 %v1944_v16, 0.0  ;;  %v2128_v42 = vld [vmem:[#allocation7 + $0x2a8] sm:$0xff]  ;;  %v1997_v49 = vmax.f32 %v1933_v63, 0.0 }
 0x33a   :  { %3869 = vmatprep.subr.bf16.mxu0 %v11244_v9  ;;  %3981 = vmatpush2.bf16.msra.mxu1 %v11246_v55  ;;  %v2001_v2 = vmax.f32 %v1937_v15, 0.0  ;;  %v2252_v43 = vld [vmem:[#allocation7 + $0x688] sm:$0xff]  ;;  %v11247_v9 = vld [vmem:[#allocation55_spill] sm:$0xff]  ;;  %v1859_v60 = vadd.f32 %v9763_v35, %v11248_v25  ;;  %v11249_v47 = vcombine.low %v11242_v18, %v11243_v41  ;;  %v7639_v30 = vcombine.low %v10088_v5, %v10090_v38 }
 0x33b   :  { %3982 = vmatprep.subr.bf16.mxu1 %v7776_v1  ;;  %v2256_v39 = vld [vmem:[#allocation7 + $0x6a8] sm:$0xff]  ;;  %v1855_v54 = vadd.f32 %v9763_v35, %v11247_v9  ;;  %v2006_v45 = vmax.f32 %v1942_v51, 0.0  ;;  %v2010_v16 = vmax.f32 %v1946_v44, 0.0  ;;  %v10188_v1 = vpack.c.bf16 %v1999_v59, %v1995_v33 }
 0x33c   :  { %3870 = vmatpush2.bf16.msra.mxu0 %v11249_v47  ;;  %v7632_v63 = vcombine.high %v2124_v31, %v2128_v42  ;;  %v1939_v15 = vadd.f32 %v9575_v36, %v1853_v46  ;;  %v1943_v55 = vadd.f32 %v9575_v36, %v1857_v28  ;;  %v7767_v35 = vcombine.low %v10145_v4, %v10147_v3  ;;  %v2116_v41 = vld [vmem:[#allocation7 + $0x248] sm:$0xff]  ;;  %v2105_v47 = vld [vmem:[#allocation7 + $0x1f0] sm:$0xff] }
 0x33d   :  { %3871 = vmatprep.subr.bf16.mxu0 %v7640_v10  ;;  %v10194_v9 = vpack.c.bf16 %v2008_v53, %v2004_v14  ;;  %v7760_v18 = vcombine.high %v2252_v43, %v2256_v39  ;;  %v2120_v25 = vld [vmem:[#allocation7 + $0x268] sm:$0xff]  ;;  %3714 = vmatmul.mubr.bf16.gmra.mxu0 %v10188_v1  ;;  %v10197_v5 = vpack.c.bf16 %v2001_v2, %v1997_v49 }
 0x33e   :  { %3983 = vmatpush2.bf16.msra.mxu1 %v7775_v8  ;;  %v1941_v38 = vadd.f32 %v9591_v58, %v1855_v54  ;;  %v1945_v10 = vadd.f32 %v9591_v58, %v1859_v60  ;;  %v10202_v36 = vpack.c.bf16 %v2010_v16, %v2006_v45  ;;  %v7631_v4 = vcombine.low %v2124_v31, %v2128_v42  ;;  %v2244_v3 = vld [vmem:[#allocation7 + $0x648] sm:$0xff]  ;;  %v2101_v60 = vld [vmem:[#allocation7 + $0x1d0] sm:$0xff] }
 0x33f   :  { %3984 = vmatprep.subr.bf16.mxu1 %v7768_v20  ;;  %3723 = vmatprep.mubr.bf16.mxu0 %v10194_v9  ;;  %v2248_v33 = vld [vmem:[#allocation7 + $0x668] sm:$0xff]  ;;  %v7624_v46 = vcombine.high %v2116_v41, %v2120_v25  ;;  %v2003_v59 = vmax.f32 %v1939_v15, 0.0  ;;  %v2007_v51 = vmax.f32 %v1943_v55, 0.0  ;;  %v7759_v44 = vcombine.low %v2252_v43, %v2256_v39  ;;  %v2229_v45 = vld [vmem:[#allocation7 + $0x5d0] sm:$0xff] }
 0x340   :  { %3872 = vmatpush2.bf16.msra.mxu0 %v7639_v30  ;;  %3827 = vmatmul.mubr.bf16.gmra.mxu1 %v10197_v5  ;;  %v2108_v28 = vld [vmem:[#allocation7 + $0x208] sm:$0xff]  ;;  %v2005_v8 = vmax.f32 %v1941_v38, 0.0  ;;  %v2009_v20 = vmax.f32 %v1945_v10, 0.0  ;;  %v7752_v14 = vcombine.high %v2244_v3, %v2248_v33  ;;  %v7623_v53 = vcombine.low %v2116_v41, %v2120_v25  ;;  %v2233_v16 = vld [vmem:[#allocation7 + $0x5f0] sm:$0xff] }
 0x341   :  { %3873 = vmatprep.subr.bf16.mxu0 %v7632_v63  ;;  %3836 = vmatprep.mubr.bf16.mxu1 %v10202_v36  ;;  %v2112_v58 = vld [vmem:[#allocation7 + $0x228] sm:$0xff]  ;;  %v10206_v49 = vpack.c.bf16 %v2007_v51, %v2003_v59  ;;  %v7751_v54 = vcombine.low %v2244_v3, %v2248_v33  ;;  %v7610_v63 = vcombine.high %v2101_v60, %v2105_v47  ;;  %v2093_v55 = vld [vmem:[#allocation7 + $0x190] sm:$0xff] }
 0x342   :  { %3985 = vmatpush2.bf16.msra.mxu1 %v7767_v35  ;;  %v2236_v31 = vld [vmem:[#allocation7 + $0x608] sm:$0xff]  ;;  %v7616_v2 = vcombine.high %v2108_v28, %v2112_v58  ;;  %v10209_v43 = vpack.c.bf16 %v2009_v20, %v2005_v8  ;;  %v7615_v30 = vcombine.low %v2108_v28, %v2112_v58  ;;  %v2097_v35 = vld [vmem:[#allocation7 + $0x1b0] sm:$0xff]  ;;  %v7609_v41 = vcombine.low %v2101_v60, %v2105_v47 }
 0x343   :  { %3986 = vmatprep.subr.bf16.mxu1 %v7760_v18  ;;  %v2240_v42 = vld [vmem:[#allocation7 + $0x628] sm:$0xff]  ;;  %v7738_v18 = vcombine.high %v2229_v45, %v2233_v16  ;;  %v2221_v25 = vld [vmem:[#allocation7 + $0x590] sm:$0xff]  ;;  %v7602_v10 = vcombine.high %v2093_v55, %v2097_v35  ;;  %v7601_v59 = vcombine.low %v2093_v55, %v2097_v35 }
 0x344   :  { %3874 = vmatpush2.bf16.msra.mxu0 %v7631_v4  ;;  %v7744_v39 = vcombine.high %v2236_v31, %v2240_v42  ;;  %v7743_v15 = vcombine.low %v2236_v31, %v2240_v42  ;;  %v2225_v38 = vld [vmem:[#allocation7 + $0x5b0] sm:$0xff]  ;;  %v7737_v4 = vcombine.low %v2229_v45, %v2233_v16 }
 0x345   :  { %3875 = vmatprep.subr.bf16.mxu0 %v7624_v46  ;;  %3724 = vmatmul.mubr.bf16.gmra.mxu0 %v10206_v49  ;;  %v2085_v3 = vld [vmem:[#allocation7 + $0x150] sm:$0xff]  ;;  %v7730_v46 = vcombine.high %v2221_v25, %v2225_v38  ;;  %v7729_v58 = vcombine.low %v2221_v25, %v2225_v38 }
 0x346   :  { %3987 = vmatpush2.bf16.msra.mxu1 %v7759_v44  ;;  %3879 = vmatprep.mubr.bf16.mxu0 %v9792_v27  ;;  %v2089_v33 = vld [vmem:[#allocation7 + $0x170] sm:$0xff] }
 0x347   :  { %3988 = vmatprep.subr.bf16.mxu1 %v7752_v14  ;;  %v2213_v51 = vld [vmem:[#allocation7 + $0x550] sm:$0xff]  ;;  %v7594_v28 = vcombine.high %v2085_v3, %v2089_v33 }
 0x348   :  { %3876 = vmatpush2.bf16.msra.mxu0 %v7623_v53  ;;  %3837 = vmatmul.mubr.bf16.gmra.mxu1 %v10209_v43  ;;  %v2217_v44 = vld [vmem:[#allocation7 + $0x570] sm:$0xff]  ;;  %v7593_v53 = vcombine.low %v2085_v3, %v2089_v33 }
 0x349   :  { %3877 = vmatprep.subr.bf16.mxu0 %v7616_v2  ;;  %3992 = vmatprep.mubr.bf16.mxu1 %v9794_v40  ;;  %v2077_v8 = vld [vmem:[#allocation7 + $0x110] sm:$0xff]  ;;  %v7722_v14 = vcombine.high %v2213_v51, %v2217_v44 }
 0x34a   :  { %3989 = vmatpush2.bf16.msra.mxu1 %v7751_v54  ;;  %v2081_v20 = vld [vmem:[#allocation7 + $0x130] sm:$0xff]  ;;  %v7721_v54 = vcombine.low %v2213_v51, %v2217_v44 }
 0x34b   :  { %3990 = vmatprep.subr.bf16.mxu1 %v7744_v39  ;;  %v2205_v31 = vld [vmem:[#allocation7 + $0x510] sm:$0xff]  ;;  %v7586_v2 = vcombine.high %v2077_v8, %v2081_v20 }
 0x34c   :  { %3878 = vmatpush2.bf16.msra.mxu0 %v7615_v30  ;;  %v2209_v42 = vld [vmem:[#allocation7 + $0x530] sm:$0xff]  ;;  %v7585_v30 = vcombine.low %v2077_v8, %v2081_v20 }
 0x34d   :  { %4073 = vmatprep.subr.bf16.mxu0 %v7610_v63  ;;  %v2069_v60 = vld [vmem:[#allocation7 + $0xd0] sm:$0xff]  ;;  %v7714_v39 = vcombine.high %v2205_v31, %v2209_v42 }
 0x34e   :  { %3991 = vmatpush2.bf16.msra.mxu1 %v7743_v15  ;;  %v2073_v47 = vld [vmem:[#allocation7 + $0xf0] sm:$0xff]  ;;  %v7713_v15 = vcombine.low %v2205_v31, %v2209_v42 }
 0x34f   :  { %3880 = vmatmul.mubr.bf16.vlgmr.msra.gmra.mxu0 %v9800_v61  ;;  %4186 = vmatprep.subr.bf16.mxu1 %v7738_v18  ;;  %v2197_v45 = vld [vmem:[#allocation7 + $0x4d0] sm:$0xff]  ;;  %v7578_v63 = vcombine.high %v2069_v60, %v2073_v47 }
 0x350   :  { %4074 = vmatpush1.bf16.msra.mxu0 %v7609_v41  ;;  %3889 = vmatprep.mubr.bf16.mxu0 %v9838_v6  ;;  %v2201_v16 = vld [vmem:[#allocation7 + $0x4f0] sm:$0xff]  ;;  %v7577_v41 = vcombine.low %v2069_v60, %v2073_v47 }
 0x351   :  { %3993 = vmatmul.mubr.bf16.vlgmr.msra.gmra.mxu1 %v9802_v52  ;;  %4075 = vmatprep.subr.bf16.mxu0 %v7602_v10  ;;  %v2061_v55 = vld [vmem:[#allocation7 + $0x90] sm:$0xff]  ;;  %v7706_v18 = vcombine.high %v2197_v45, %v2201_v16 }
 0x352   :  { %4002 = vmatprep.mubr.bf16.mxu1 %v9843_v11  ;;  %4187 = vmatpush1.bf16.msra.mxu1 %v7737_v4  ;;  %v2065_v35 = vld [vmem:[#allocation7 + $0xb0] sm:$0xff]  ;;  %v7705_v4 = vcombine.low %v2197_v45, %v2201_v16 }
 0x353   :  { %4188 = vmatprep.subr.bf16.mxu1 %v7730_v46  ;;  %v2189_v25 = vld [vmem:[#allocation7 + $0x490] sm:$0xff]  ;;  %v7570_v10 = vcombine.high %v2061_v55, %v2065_v35 }
 0x354   :  { %4076 = vmatpush1.bf16.msra.mxu0 %v7601_v59  ;;  %v2193_v38 = vld [vmem:[#allocation7 + $0x4b0] sm:$0xff]  ;;  %v7569_v59 = vcombine.low %v2061_v55, %v2065_v35 }
 0x355   :  { %4077 = vmatprep.subr.bf16.mxu0 %v7594_v28  ;;  %v2053_v3 = vld [vmem:[#allocation7 + $0x50] sm:$0xff]  ;;  %v7698_v46 = vcombine.high %v2189_v25, %v2193_v38 }
 0x356   :  { %4189 = vmatpush1.bf16.msra.mxu1 %v7729_v58  ;;  %v2057_v33 = vld [vmem:[#allocation7 + $0x70] sm:$0xff]  ;;  %v7697_v58 = vcombine.low %v2189_v25, %v2193_v38 }
 0x357   :  { %3890 = vmatmul.mubr.bf16.gmra.mxu0 %v9861_v29  ;;  %4190 = vmatprep.subr.bf16.mxu1 %v7722_v14  ;;  %v2181_v51 = vld [vmem:[#allocation7 + $0x450] sm:$0xff]  ;;  %v7562_v28 = vcombine.high %v2053_v3, %v2057_v33 }
 0x358   :  { %4078 = vmatpush1.bf16.msra.mxu0 %v7593_v53  ;;  %3899 = vmatprep.mubr.bf16.mxu0 %v9889_v0  ;;  %v2185_v44 = vld [vmem:[#allocation7 + $0x470] sm:$0xff]  ;;  %v7561_v53 = vcombine.low %v2053_v3, %v2057_v33 }
 0x359   :  { %4003 = vmatmul.mubr.bf16.gmra.mxu1 %v9877_v21  ;;  %4079 = vmatprep.subr.bf16.mxu0 %v7586_v2  ;;  %v2045_v8 = vld [vmem:[#allocation7 + $0x10] sm:$0xff]  ;;  %v7690_v14 = vcombine.high %v2181_v51, %v2185_v44 }
 0x35a   :  { %4012 = vmatprep.mubr.bf16.mxu1 %v9897_v56  ;;  %4191 = vmatpush1.bf16.msra.mxu1 %v7721_v54  ;;  %v2049_v20 = vld [vmem:[#allocation7 + $0x30] sm:$0xff]  ;;  %v7689_v54 = vcombine.low %v2181_v51, %v2185_v44 }
 0x35b   :  { %4192 = vmatprep.subr.bf16.mxu1 %v7714_v39  ;;  %v2173_v31 = vld [vmem:[#allocation7 + $0x410] sm:$0xff]  ;;  %v7554_v2 = vcombine.high %v2045_v8, %v2049_v20 }
 0x35c   :  { %4080 = vmatpush1.bf16.msra.mxu0 %v7585_v30  ;;  %v2177_v42 = vld [vmem:[#allocation7 + $0x430] sm:$0xff]  ;;  %v7553_v30 = vcombine.low %v2045_v8, %v2049_v20 }
 0x35d   :  { %4081 = vmatprep.subr.bf16.mxu0 %v7578_v63  ;;  %v2165_v60 = vld [vmem:[#allocation7 + $0x3d0] sm:$0xff]  ;;  %v7682_v39 = vcombine.high %v2173_v31, %v2177_v42 }
 0x35e   :  { %4193 = vmatpush1.bf16.msra.mxu1 %v7713_v15  ;;  %v2169_v47 = vld [vmem:[#allocation7 + $0x3f0] sm:$0xff]  ;;  %v7681_v15 = vcombine.low %v2173_v31, %v2177_v42 }
 0x35f   :  { %3900 = vmatmul.mubr.bf16.gmra.mxu0 %v9918_v26  ;;  %4194 = vmatprep.subr.bf16.mxu1 %v7706_v18  ;;  %v2293_v45 = vld [vmem:[#allocation7 + $0x7d0] sm:$0xff]  ;;  %v7674_v63 = vcombine.high %v2165_v60, %v2169_v47 }
 0x360   :  { %4082 = vmatpush1.bf16.msra.mxu0 %v7577_v41  ;;  %3909 = vmatprep.mubr.bf16.mxu0 %v9948_v24  ;;  %v2297_v16 = vld [vmem:[#allocation7 + $0x7f0] sm:$0xff]  ;;  %v7673_v41 = vcombine.low %v2165_v60, %v2169_v47 }
 0x361   :  { %4013 = vmatmul.mubr.bf16.gmra.mxu1 %v9933_v13  ;;  %4083 = vmatprep.subr.bf16.mxu0 %v7570_v10  ;;  %v2157_v55 = vld [vmem:[#allocation7 + $0x390] sm:$0xff]  ;;  %v7802_v18 = vcombine.high %v2293_v45, %v2297_v16 }
 0x362   :  { %4022 = vmatprep.mubr.bf16.mxu1 %v9954_v48  ;;  %4195 = vmatpush1.bf16.msra.mxu1 %v7705_v4  ;;  %v2161_v35 = vld [vmem:[#allocation7 + $0x3b0] sm:$0xff]  ;;  %v7801_v4 = vcombine.low %v2293_v45, %v2297_v16 }
 0x363   :  { %4196 = vmatprep.subr.bf16.mxu1 %v7698_v46  ;;  %v2285_v25 = vld [vmem:[#allocation7 + $0x790] sm:$0xff]  ;;  %v7666_v10 = vcombine.high %v2157_v55, %v2161_v35 }
 0x364   :  { %4084 = vmatpush1.bf16.msra.mxu0 %v7569_v59  ;;  %v2289_v38 = vld [vmem:[#allocation7 + $0x7b0] sm:$0xff]  ;;  %v7665_v59 = vcombine.low %v2157_v55, %v2161_v35 }
 0x365   :  { %4085 = vmatprep.subr.bf16.mxu0 %v7562_v28  ;;  %v2149_v3 = vld [vmem:[#allocation7 + $0x350] sm:$0xff]  ;;  %v7794_v46 = vcombine.high %v2285_v25, %v2289_v38 }
 0x366   :  { %4197 = vmatpush1.bf16.msra.mxu1 %v7697_v58  ;;  %v2153_v33 = vld [vmem:[#allocation7 + $0x370] sm:$0xff]  ;;  %v7793_v58 = vcombine.low %v2285_v25, %v2289_v38 }
 0x367   :  { %3910 = vmatmul.mubr.bf16.gmra.mxu0 %v9975_v50  ;;  %4198 = vmatprep.subr.bf16.mxu1 %v7690_v14  ;;  %v2277_v51 = vld [vmem:[#allocation7 + $0x750] sm:$0xff]  ;;  %v7658_v28 = vcombine.high %v2149_v3, %v2153_v33 }
 0x368   :  { %4086 = vmatpush1.bf16.msra.mxu0 %v7561_v53  ;;  %3919 = vmatprep.mubr.bf16.mxu0 %v10005_v23  ;;  %v2281_v44 = vld [vmem:[#allocation7 + $0x770] sm:$0xff]  ;;  %v7657_v53 = vcombine.low %v2149_v3, %v2153_v33 }
 0x369   :  { %4023 = vmatmul.mubr.bf16.gmra.mxu1 %v9990_v62  ;;  %4087 = vmatprep.subr.bf16.mxu0 %v7554_v2  ;;  %v2141_v8 = vld [vmem:[#allocation7 + $0x310] sm:$0xff]  ;;  %v7786_v14 = vcombine.high %v2277_v51, %v2281_v44 }
 0x36a   :  { %4032 = vmatprep.mubr.bf16.mxu1 %v10013_v17  ;;  %4199 = vmatpush1.bf16.msra.mxu1 %v7689_v54  ;;  %v2145_v20 = vld [vmem:[#allocation7 + $0x330] sm:$0xff]  ;;  %v7785_v54 = vcombine.low %v2277_v51, %v2281_v44 }
 0x36b   :  { %4200 = vmatprep.subr.bf16.mxu1 %v7682_v39  ;;  %v2269_v31 = vld [vmem:[#allocation7 + $0x710] sm:$0xff]  ;;  %v7650_v2 = vcombine.high %v2141_v8, %v2145_v20 }
 0x36c   :  { %4088 = vmatpush1.bf16.msra.mxu0 %v7553_v30  ;;  %v2273_v42 = vld [vmem:[#allocation7 + $0x730] sm:$0xff]  ;;  %v7649_v30 = vcombine.low %v2141_v8, %v2145_v20 }
 0x36d   :  { %4089 = vmatprep.subr.bf16.mxu0 %v7674_v63  ;;  %v2133_v60 = vld [vmem:[#allocation7 + $0x2d0] sm:$0xff]  ;;  %v7778_v39 = vcombine.high %v2269_v31, %v2273_v42 }
 0x36e   :  { %4201 = vmatpush1.bf16.msra.mxu1 %v7681_v15  ;;  %v2137_v47 = vld [vmem:[#allocation7 + $0x2f0] sm:$0xff]  ;;  %v7777_v15 = vcombine.low %v2269_v31, %v2273_v42 }
 0x36f   :  { %3920 = vmatmul.mubr.bf16.gmra.mxu0 %v10045_v34  ;;  %4202 = vmatprep.subr.bf16.mxu1 %v7802_v18  ;;  %v2261_v45 = vld [vmem:[#allocation7 + $0x6d0] sm:$0xff]  ;;  %v7642_v63 = vcombine.high %v2133_v60, %v2137_v47 }
 0x370   :  { %4090 = vmatpush2.bf16.msra.mxu0 %v7673_v41  ;;  %3929 = vmatprep.mubr.bf16.mxu0 %v10061_v12  ;;  %v2265_v16 = vld [vmem:[#allocation7 + $0x6f0] sm:$0xff]  ;;  %v7641_v41 = vcombine.low %v2133_v60, %v2137_v47  ;;  %v2102_v60 = vld [vmem:[#allocation7 + $0x1d8] sm:$0xff] }
 0x371   :  { %4033 = vmatmul.mubr.bf16.gmra.mxu1 %v10059_v57  ;;  %4091 = vmatprep.subr.bf16.mxu0 %v7666_v10  ;;  %v2125_v55 = vld [vmem:[#allocation7 + $0x290] sm:$0xff]  ;;  %v7770_v18 = vcombine.high %v2261_v45, %v2265_v16  ;;  %v2106_v47 = vld [vmem:[#allocation7 + $0x1f8] sm:$0xff] }
 0x372   :  { %4042 = vmatprep.mubr.bf16.mxu1 %v10070_v37  ;;  %4203 = vmatpush2.bf16.msra.mxu1 %v7801_v4  ;;  %v2129_v35 = vld [vmem:[#allocation7 + $0x2b0] sm:$0xff]  ;;  %v7769_v4 = vcombine.low %v2261_v45, %v2265_v16  ;;  %v2230_v45 = vld [vmem:[#allocation7 + $0x5d8] sm:$0xff] }
 0x373   :  { %4204 = vmatprep.subr.bf16.mxu1 %v7794_v46  ;;  %v2253_v25 = vld [vmem:[#allocation7 + $0x690] sm:$0xff]  ;;  %v7634_v10 = vcombine.high %v2125_v55, %v2129_v35  ;;  %v2234_v16 = vld [vmem:[#allocation7 + $0x5f8] sm:$0xff] }
 0x374   :  { %4092 = vmatpush2.bf16.msra.mxu0 %v7665_v59  ;;  %v2257_v38 = vld [vmem:[#allocation7 + $0x6b0] sm:$0xff]  ;;  %v7633_v59 = vcombine.low %v2125_v55, %v2129_v35  ;;  %v2094_v55 = vld [vmem:[#allocation7 + $0x198] sm:$0xff] }
 0x375   :  { %4093 = vmatprep.subr.bf16.mxu0 %v7658_v28  ;;  %v2117_v3 = vld [vmem:[#allocation7 + $0x250] sm:$0xff]  ;;  %v7762_v46 = vcombine.high %v2253_v25, %v2257_v38  ;;  %v2098_v35 = vld [vmem:[#allocation7 + $0x1b8] sm:$0xff] }
 0x376   :  { %4205 = vmatpush2.bf16.msra.mxu1 %v7793_v58  ;;  %v2121_v33 = vld [vmem:[#allocation7 + $0x270] sm:$0xff]  ;;  %v7761_v58 = vcombine.low %v2253_v25, %v2257_v38  ;;  %v2222_v25 = vld [vmem:[#allocation7 + $0x598] sm:$0xff] }
 0x377   :  { %3930 = vmatmul.mubr.bf16.gmra.mxu0 %v10125_v32  ;;  %4206 = vmatprep.subr.bf16.mxu1 %v7786_v14  ;;  %v2245_v51 = vld [vmem:[#allocation7 + $0x650] sm:$0xff]  ;;  %v7626_v28 = vcombine.high %v2117_v3, %v2121_v33  ;;  %v2226_v38 = vld [vmem:[#allocation7 + $0x5b8] sm:$0xff] }
 0x378   :  { %4094 = vmatpush2.bf16.msra.mxu0 %v7657_v53  ;;  %3939 = vmatprep.mubr.bf16.mxu0 %v10135_v22  ;;  %v2249_v44 = vld [vmem:[#allocation7 + $0x670] sm:$0xff]  ;;  %v7625_v53 = vcombine.low %v2117_v3, %v2121_v33  ;;  %v2086_v3 = vld [vmem:[#allocation7 + $0x158] sm:$0xff] }
 0x379   :  { %4043 = vmatmul.mubr.bf16.gmra.mxu1 %v10127_v19  ;;  %4095 = vmatprep.subr.bf16.mxu0 %v7650_v2  ;;  %v2109_v8 = vld [vmem:[#allocation7 + $0x210] sm:$0xff]  ;;  %v7754_v14 = vcombine.high %v2245_v51, %v2249_v44  ;;  %v2090_v33 = vld [vmem:[#allocation7 + $0x178] sm:$0xff] }
 0x37a   :  { %4052 = vmatprep.mubr.bf16.mxu1 %v10158_v7  ;;  %4207 = vmatpush2.bf16.msra.mxu1 %v7785_v54  ;;  %v2113_v20 = vld [vmem:[#allocation7 + $0x230] sm:$0xff]  ;;  %v7753_v54 = vcombine.low %v2245_v51, %v2249_v44  ;;  %v2214_v51 = vld [vmem:[#allocation7 + $0x558] sm:$0xff] }
 0x37b   :  { %4208 = vmatprep.subr.bf16.mxu1 %v7778_v39  ;;  %v2237_v31 = vld [vmem:[#allocation7 + $0x610] sm:$0xff]  ;;  %v7618_v2 = vcombine.high %v2109_v8, %v2113_v20  ;;  %v2218_v44 = vld [vmem:[#allocation7 + $0x578] sm:$0xff] }
 0x37c   :  { %4096 = vmatpush2.bf16.msra.mxu0 %v7649_v30  ;;  %v2241_v42 = vld [vmem:[#allocation7 + $0x630] sm:$0xff]  ;;  %v7617_v30 = vcombine.low %v2109_v8, %v2113_v20  ;;  %v2078_v8 = vld [vmem:[#allocation7 + $0x118] sm:$0xff] }
 0x37d   :  { %4097 = vmatprep.subr.bf16.mxu0 %v7642_v63  ;;  %v7746_v39 = vcombine.high %v2237_v31, %v2241_v42  ;;  %v7612_v63 = vcombine.high %v2102_v60, %v2106_v47  ;;  %v2082_v20 = vld [vmem:[#allocation7 + $0x138] sm:$0xff] }
 0x37e   :  { %4209 = vmatpush2.bf16.msra.mxu1 %v7777_v15  ;;  %v7745_v15 = vcombine.low %v2237_v31, %v2241_v42  ;;  %v2206_v31 = vld [vmem:[#allocation7 + $0x518] sm:$0xff] }
 0x37f   :  { %3940 = vmatmul.mubr.bf16.gmra.mxu0 %v10188_v1  ;;  %4210 = vmatprep.subr.bf16.mxu1 %v7770_v18  ;;  %v7740_v18 = vcombine.high %v2230_v45, %v2234_v16  ;;  %v2210_v42 = vld [vmem:[#allocation7 + $0x538] sm:$0xff] }
 0x380   :  { %4098 = vmatpush2.bf16.msra.mxu0 %v7641_v41  ;;  %3949 = vmatprep.mubr.bf16.mxu0 %v10194_v9  ;;  %v7611_v41 = vcombine.low %v2102_v60, %v2106_v47  ;;  %v2070_v60 = vld [vmem:[#allocation7 + $0xd8] sm:$0xff] }
 0x381   :  { %4053 = vmatmul.mubr.bf16.gmra.mxu1 %v10197_v5  ;;  %4099 = vmatprep.subr.bf16.mxu0 %v7634_v10  ;;  %v7604_v10 = vcombine.high %v2094_v55, %v2098_v35  ;;  %v2074_v47 = vld [vmem:[#allocation7 + $0xf8] sm:$0xff] }
 0x382   :  { %4062 = vmatprep.mubr.bf16.mxu1 %v10202_v36  ;;  %4211 = vmatpush2.bf16.msra.mxu1 %v7769_v4  ;;  %v7739_v4 = vcombine.low %v2230_v45, %v2234_v16  ;;  %v2198_v45 = vld [vmem:[#allocation7 + $0x4d8] sm:$0xff] }
 0x383   :  { %4212 = vmatprep.subr.bf16.mxu1 %v7762_v46  ;;  %v7732_v46 = vcombine.high %v2222_v25, %v2226_v38  ;;  %v2202_v16 = vld [vmem:[#allocation7 + $0x4f8] sm:$0xff] }
 0x384   :  { %4100 = vmatpush2.bf16.msra.mxu0 %v7633_v59  ;;  %v7603_v59 = vcombine.low %v2094_v55, %v2098_v35  ;;  %v2062_v55 = vld [vmem:[#allocation7 + $0x98] sm:$0xff] }
 0x385   :  { %4101 = vmatprep.subr.bf16.mxu0 %v7626_v28  ;;  %v7596_v28 = vcombine.high %v2086_v3, %v2090_v33  ;;  %v2066_v35 = vld [vmem:[#allocation7 + $0xb8] sm:$0xff] }
 0x386   :  { %4213 = vmatpush2.bf16.msra.mxu1 %v7761_v58  ;;  %v7731_v58 = vcombine.low %v2222_v25, %v2226_v38  ;;  %v2190_v25 = vld [vmem:[#allocation7 + $0x498] sm:$0xff] }
 0x387   :  { %3950 = vmatmul.mubr.bf16.gmra.mxu0 %v10206_v49  ;;  %4214 = vmatprep.subr.bf16.mxu1 %v7754_v14  ;;  %v7724_v14 = vcombine.high %v2214_v51, %v2218_v44  ;;  %v2194_v38 = vld [vmem:[#allocation7 + $0x4b8] sm:$0xff] }
 0x388   :  { %4102 = vmatpush2.bf16.msra.mxu0 %v7625_v53  ;;  %4105 = vmatprep.mubr.bf16.mxu0 %v9792_v27  ;;  %v7595_v53 = vcombine.low %v2086_v3, %v2090_v33  ;;  %v2054_v3 = vld [vmem:[#allocation7 + $0x58] sm:$0xff] }
 0x389   :  { %4063 = vmatmul.mubr.bf16.gmra.mxu1 %v10209_v43  ;;  %4103 = vmatprep.subr.bf16.mxu0 %v7618_v2  ;;  %v7588_v2 = vcombine.high %v2078_v8, %v2082_v20  ;;  %v2058_v33 = vld [vmem:[#allocation7 + $0x78] sm:$0xff] }
 0x38a   :  { %4215 = vmatpush2.bf16.msra.mxu1 %v7753_v54  ;;  %4218 = vmatprep.mubr.bf16.mxu1 %v9794_v40  ;;  %v7723_v54 = vcombine.low %v2214_v51, %v2218_v44  ;;  %v2182_v51 = vld [vmem:[#allocation7 + $0x458] sm:$0xff] }
 0x38b   :  { %4216 = vmatprep.subr.bf16.mxu1 %v7746_v39  ;;  %v7716_v39 = vcombine.high %v2206_v31, %v2210_v42  ;;  %v2186_v44 = vld [vmem:[#allocation7 + $0x478] sm:$0xff] }
 0x38c   :  { %4104 = vmatpush2.bf16.msra.mxu0 %v7617_v30  ;;  %v7587_v30 = vcombine.low %v2078_v8, %v2082_v20  ;;  %v2046_v8 = vld [vmem:[#allocation7 + $0x18] sm:$0xff] }
 0x38d   :  { %4299 = vmatprep.subr.bf16.mxu0 %v7612_v63  ;;  %v7580_v63 = vcombine.high %v2070_v60, %v2074_v47  ;;  %v2050_v20 = vld [vmem:[#allocation7 + $0x38] sm:$0xff] }
 0x38e   :  { %4217 = vmatpush2.bf16.msra.mxu1 %v7745_v15  ;;  %v7715_v15 = vcombine.low %v2206_v31, %v2210_v42  ;;  %v2174_v31 = vld [vmem:[#allocation7 + $0x418] sm:$0xff] }
 0x38f   :  { %4106 = vmatmul.mubr.bf16.vlgmr.msra.gmra.mxu0 %v9800_v61  ;;  %4412 = vmatprep.subr.bf16.mxu1 %v7740_v18  ;;  %v7708_v18 = vcombine.high %v2198_v45, %v2202_v16  ;;  %v2178_v42 = vld [vmem:[#allocation7 + $0x438] sm:$0xff] }
 0x390   :  { %4300 = vmatpush1.bf16.msra.mxu0 %v7611_v41  ;;  %4115 = vmatprep.mubr.bf16.mxu0 %v9838_v6  ;;  %v7579_v41 = vcombine.low %v2070_v60, %v2074_v47  ;;  %v2166_v60 = vld [vmem:[#allocation7 + $0x3d8] sm:$0xff] }
 0x391   :  { %4219 = vmatmul.mubr.bf16.vlgmr.msra.gmra.mxu1 %v9802_v52  ;;  %4301 = vmatprep.subr.bf16.mxu0 %v7604_v10  ;;  %v7572_v10 = vcombine.high %v2062_v55, %v2066_v35  ;;  %v2170_v47 = vld [vmem:[#allocation7 + $0x3f8] sm:$0xff] }
 0x392   :  { %4228 = vmatprep.mubr.bf16.mxu1 %v9843_v11  ;;  %4413 = vmatpush1.bf16.msra.mxu1 %v7739_v4  ;;  %v7707_v4 = vcombine.low %v2198_v45, %v2202_v16  ;;  %v2294_v45 = vld [vmem:[#allocation7 + $0x7d8] sm:$0xff] }
 0x393   :  { %4414 = vmatprep.subr.bf16.mxu1 %v7732_v46  ;;  %v7700_v46 = vcombine.high %v2190_v25, %v2194_v38  ;;  %v2298_v16 = vld [vmem:[#allocation7 + $0x7f8] sm:$0xff] }
 0x394   :  { %4302 = vmatpush1.bf16.msra.mxu0 %v7603_v59  ;;  %v7571_v59 = vcombine.low %v2062_v55, %v2066_v35  ;;  %v2158_v55 = vld [vmem:[#allocation7 + $0x398] sm:$0xff] }
 0x395   :  { %4303 = vmatprep.subr.bf16.mxu0 %v7596_v28  ;;  %v7564_v28 = vcombine.high %v2054_v3, %v2058_v33  ;;  %v2162_v35 = vld [vmem:[#allocation7 + $0x3b8] sm:$0xff] }
 0x396   :  { %4415 = vmatpush1.bf16.msra.mxu1 %v7731_v58  ;;  %v7699_v58 = vcombine.low %v2190_v25, %v2194_v38  ;;  %v2286_v25 = vld [vmem:[#allocation7 + $0x798] sm:$0xff] }
 0x397   :  { %4116 = vmatmul.mubr.bf16.gmra.mxu0 %v9861_v29  ;;  %4416 = vmatprep.subr.bf16.mxu1 %v7724_v14  ;;  %v7692_v14 = vcombine.high %v2182_v51, %v2186_v44  ;;  %v2290_v38 = vld [vmem:[#allocation7 + $0x7b8] sm:$0xff] }
 0x398   :  { %4304 = vmatpush1.bf16.msra.mxu0 %v7595_v53  ;;  %4125 = vmatprep.mubr.bf16.mxu0 %v9889_v0  ;;  %v7563_v53 = vcombine.low %v2054_v3, %v2058_v33  ;;  %v2150_v3 = vld [vmem:[#allocation7 + $0x358] sm:$0xff] }
 0x399   :  { %4229 = vmatmul.mubr.bf16.gmra.mxu1 %v9877_v21  ;;  %4305 = vmatprep.subr.bf16.mxu0 %v7588_v2  ;;  %v7556_v2 = vcombine.high %v2046_v8, %v2050_v20  ;;  %v2154_v33 = vld [vmem:[#allocation7 + $0x378] sm:$0xff] }
 0x39a   :  { %4238 = vmatprep.mubr.bf16.mxu1 %v9897_v56  ;;  %4417 = vmatpush1.bf16.msra.mxu1 %v7723_v54  ;;  %v7691_v54 = vcombine.low %v2182_v51, %v2186_v44  ;;  %v2278_v51 = vld [vmem:[#allocation7 + $0x758] sm:$0xff] }
 0x39b   :  { %4418 = vmatprep.subr.bf16.mxu1 %v7716_v39  ;;  %v7684_v39 = vcombine.high %v2174_v31, %v2178_v42  ;;  %v2282_v44 = vld [vmem:[#allocation7 + $0x778] sm:$0xff] }
 0x39c   :  { %4306 = vmatpush1.bf16.msra.mxu0 %v7587_v30  ;;  %v7555_v30 = vcombine.low %v2046_v8, %v2050_v20  ;;  %v2142_v8 = vld [vmem:[#allocation7 + $0x318] sm:$0xff] }
 0x39d   :  { %4307 = vmatprep.subr.bf16.mxu0 %v7580_v63  ;;  %v7676_v63 = vcombine.high %v2166_v60, %v2170_v47  ;;  %v2146_v20 = vld [vmem:[#allocation7 + $0x338] sm:$0xff] }
 0x39e   :  { %4419 = vmatpush1.bf16.msra.mxu1 %v7715_v15  ;;  %v7683_v15 = vcombine.low %v2174_v31, %v2178_v42  ;;  %v2270_v31 = vld [vmem:[#allocation7 + $0x718] sm:$0xff] }
 0x39f   :  { %4126 = vmatmul.mubr.bf16.gmra.mxu0 %v9918_v26  ;;  %4420 = vmatprep.subr.bf16.mxu1 %v7708_v18  ;;  %v7804_v18 = vcombine.high %v2294_v45, %v2298_v16  ;;  %v2274_v42 = vld [vmem:[#allocation7 + $0x738] sm:$0xff] }
 0x3a0   :  { %4308 = vmatpush1.bf16.msra.mxu0 %v7579_v41  ;;  %4135 = vmatprep.mubr.bf16.mxu0 %v9948_v24  ;;  %v7675_v41 = vcombine.low %v2166_v60, %v2170_v47  ;;  %v2134_v60 = vld [vmem:[#allocation7 + $0x2d8] sm:$0xff] }
 0x3a1   :  { %4239 = vmatmul.mubr.bf16.gmra.mxu1 %v9933_v13  ;;  %4309 = vmatprep.subr.bf16.mxu0 %v7572_v10  ;;  %v7668_v10 = vcombine.high %v2158_v55, %v2162_v35  ;;  %v2138_v47 = vld [vmem:[#allocation7 + $0x2f8] sm:$0xff] }
 0x3a2   :  { %4248 = vmatprep.mubr.bf16.mxu1 %v9954_v48  ;;  %4421 = vmatpush1.bf16.msra.mxu1 %v7707_v4  ;;  %v7803_v4 = vcombine.low %v2294_v45, %v2298_v16  ;;  %v2262_v45 = vld [vmem:[#allocation7 + $0x6d8] sm:$0xff] }
 0x3a3   :  { %4422 = vmatprep.subr.bf16.mxu1 %v7700_v46  ;;  %v7796_v46 = vcombine.high %v2286_v25, %v2290_v38  ;;  %v2266_v16 = vld [vmem:[#allocation7 + $0x6f8] sm:$0xff] }
 0x3a4   :  { %4310 = vmatpush1.bf16.msra.mxu0 %v7571_v59  ;;  %v7667_v59 = vcombine.low %v2158_v55, %v2162_v35  ;;  %v2126_v55 = vld [vmem:[#allocation7 + $0x298] sm:$0xff] }
 0x3a5   :  { %4311 = vmatprep.subr.bf16.mxu0 %v7564_v28  ;;  %v7660_v28 = vcombine.high %v2150_v3, %v2154_v33  ;;  %v2130_v35 = vld [vmem:[#allocation7 + $0x2b8] sm:$0xff] }
 0x3a6   :  { %4423 = vmatpush1.bf16.msra.mxu1 %v7699_v58  ;;  %v7795_v58 = vcombine.low %v2286_v25, %v2290_v38  ;;  %v2254_v25 = vld [vmem:[#allocation7 + $0x698] sm:$0xff] }
 0x3a7   :  { %4136 = vmatmul.mubr.bf16.gmra.mxu0 %v9975_v50  ;;  %4424 = vmatprep.subr.bf16.mxu1 %v7692_v14  ;;  %v7788_v14 = vcombine.high %v2278_v51, %v2282_v44  ;;  %v2258_v38 = vld [vmem:[#allocation7 + $0x6b8] sm:$0xff] }
 0x3a8   :  { %4312 = vmatpush1.bf16.msra.mxu0 %v7563_v53  ;;  %4145 = vmatprep.mubr.bf16.mxu0 %v10005_v23  ;;  %v7659_v53 = vcombine.low %v2150_v3, %v2154_v33  ;;  %v2118_v3 = vld [vmem:[#allocation7 + $0x258] sm:$0xff] }
 0x3a9   :  { %4249 = vmatmul.mubr.bf16.gmra.mxu1 %v9990_v62  ;;  %4313 = vmatprep.subr.bf16.mxu0 %v7556_v2  ;;  %v7652_v2 = vcombine.high %v2142_v8, %v2146_v20  ;;  %v2122_v33 = vld [vmem:[#allocation7 + $0x278] sm:$0xff] }
 0x3aa   :  { %4258 = vmatprep.mubr.bf16.mxu1 %v10013_v17  ;;  %4425 = vmatpush1.bf16.msra.mxu1 %v7691_v54  ;;  %v7787_v54 = vcombine.low %v2278_v51, %v2282_v44  ;;  %v2246_v51 = vld [vmem:[#allocation7 + $0x658] sm:$0xff] }
 0x3ab   :  { %4426 = vmatprep.subr.bf16.mxu1 %v7684_v39  ;;  %v7780_v39 = vcombine.high %v2270_v31, %v2274_v42  ;;  %v2250_v44 = vld [vmem:[#allocation7 + $0x678] sm:$0xff] }
 0x3ac   :  { %4314 = vmatpush1.bf16.msra.mxu0 %v7555_v30  ;;  %v7651_v30 = vcombine.low %v2142_v8, %v2146_v20  ;;  %v2110_v8 = vld [vmem:[#allocation7 + $0x218] sm:$0xff] }
 0x3ad   :  { %4315 = vmatprep.subr.bf16.mxu0 %v7676_v63  ;;  %v7644_v63 = vcombine.high %v2134_v60, %v2138_v47  ;;  %v2114_v20 = vld [vmem:[#allocation7 + $0x238] sm:$0xff] }
 0x3ae   :  { %4427 = vmatpush1.bf16.msra.mxu1 %v7683_v15  ;;  %v7779_v15 = vcombine.low %v2270_v31, %v2274_v42  ;;  %v2238_v31 = vld [vmem:[#allocation7 + $0x618] sm:$0xff] }
 0x3af   :  { %4146 = vmatmul.mubr.bf16.gmra.mxu0 %v10045_v34  ;;  %4428 = vmatprep.subr.bf16.mxu1 %v7804_v18  ;;  %v7772_v18 = vcombine.high %v2262_v45, %v2266_v16  ;;  %v2242_v42 = vld [vmem:[#allocation7 + $0x638] sm:$0xff] }
 0x3b0   :  { %4316 = vmatpush2.bf16.msra.mxu0 %v7675_v41  ;;  %4155 = vmatprep.mubr.bf16.mxu0 %v10061_v12  ;;  %v7643_v41 = vcombine.low %v2134_v60, %v2138_v47  ;;  %v7748_v60 = vcombine.high %v2238_v31, %v2242_v42  ;;  %v7619_v47 = vcombine.low %v2110_v8, %v2114_v20 }
 0x3b1   :  { %4259 = vmatmul.mubr.bf16.gmra.mxu1 %v10059_v57  ;;  %4317 = vmatprep.subr.bf16.mxu0 %v7668_v10  ;;  %v7636_v10 = vcombine.high %v2126_v55, %v2130_v35 }
 0x3b2   :  { %4268 = vmatprep.mubr.bf16.mxu1 %v10070_v37  ;;  %4429 = vmatpush2.bf16.msra.mxu1 %v7803_v4  ;;  %v7771_v4 = vcombine.low %v2262_v45, %v2266_v16  ;;  %v8480_v45 = vld [vmem:[#allocation8 + $0x2e4] ss:$16 sps:$4 sm:$0xff]   ;;  %v8430_v16 = vld [vmem:[#allocation8 + $0xe0] ss:$16 sps:$4 sm:$0xff]  }
 0x3b3   :  { %4430 = vmatprep.subr.bf16.mxu1 %v7796_v46  ;;  %v7764_v46 = vcombine.high %v2254_v25, %v2258_v38 }
 0x3b4   :  { %4318 = vmatpush2.bf16.msra.mxu0 %v7667_v59  ;;  %v7635_v59 = vcombine.low %v2126_v55, %v2130_v35  ;;  %v8483_v35 = vld [vmem:[#allocation8 + $0x2c4] ss:$16 sps:$4 sm:$0xff]  }
 0x3b5   :  { %4319 = vmatprep.subr.bf16.mxu0 %v7660_v28  ;;  %v7628_v28 = vcombine.high %v2118_v3, %v2122_v33 }
 0x3b6   :  { %4431 = vmatpush2.bf16.msra.mxu1 %v7795_v58  ;;  %v7763_v58 = vcombine.low %v2254_v25, %v2258_v38  ;;  %v8438_v25 = vld [vmem:[#allocation8 + $0xa4] ss:$16 sps:$4 sm:$0xff]   ;;  %v8481_v38 = vld [vmem:[#allocation8 + $0x2c0] ss:$16 sps:$4 sm:$0xff]  }
 0x3b7   :  { %4156 = vmatmul.mubr.bf16.gmra.mxu0 %v10125_v32  ;;  %4432 = vmatprep.subr.bf16.mxu1 %v7788_v14  ;;  %v7756_v14 = vcombine.high %v2246_v51, %v2250_v44 }
 0x3b8   :  { %4320 = vmatpush2.bf16.msra.mxu0 %v7659_v53  ;;  %4165 = vmatprep.mubr.bf16.mxu0 %v10135_v22  ;;  %v7627_v53 = vcombine.low %v2118_v3, %v2122_v33  ;;  %v8441_v33 = vld [vmem:[#allocation8 + $0x84] ss:$16 sps:$4 sm:$0xff]  }
 0x3b9   :  { %4269 = vmatmul.mubr.bf16.gmra.mxu1 %v10127_v19  ;;  %4321 = vmatprep.subr.bf16.mxu0 %v7652_v2  ;;  %v7620_v2 = vcombine.high %v2110_v8, %v2114_v20  ;;  %v8487_v8 = vld [vmem:[#allocation8 + $0x280] ss:$16 sps:$4 sm:$0xff]  }
 0x3ba   :  { %4278 = vmatprep.mubr.bf16.mxu1 %v10158_v7  ;;  %4433 = vmatpush2.bf16.msra.mxu1 %v7787_v54  ;;  %v7755_v54 = vcombine.low %v2246_v51, %v2250_v44  ;;  %v8439_v51 = vld [vmem:[#allocation8 + $0x80] ss:$16 sps:$4 sm:$0xff]  }
 0x3bb   :  { %4434 = vmatprep.subr.bf16.mxu1 %v7780_v39  ;;  %v8432_v39 = vld [vmem:[#allocation8 + $0xe4] ss:$16 sps:$4 sm:$0xff]  }
 0x3bc   :  { %4322 = vmatpush2.bf16.msra.mxu0 %v7651_v30  ;;  %v7747_v30 = vcombine.low %v2238_v31, %v2242_v42  ;;  %v8490_v42 = vld [vmem:[#allocation8 + $0x260] ss:$16 sps:$4 sm:$0xff]  }
 0x3bd   :  { %4323 = vmatprep.subr.bf16.mxu0 %v7644_v63  ;;  %v8435_v63 = vld [vmem:[#allocation8 + $0xc4] ss:$16 sps:$4 sm:$0xff]  }
 0x3be   :  { %4435 = vmatpush2.bf16.msra.mxu1 %v7779_v15  ;;  %v8478_v15 = vld [vmem:[#allocation8 + $0x2e0] ss:$16 sps:$4 sm:$0xff]  }
 0x3bf   :  { %4166 = vmatmul.mubr.bf16.gmra.mxu0 %v10188_v1  ;;  %4436 = vmatprep.subr.bf16.mxu1 %v7772_v18 }
 0x3c0   :  { %4324 = vmatpush2.bf16.msra.mxu0 %v7643_v41  ;;  %4175 = vmatprep.mubr.bf16.mxu0 %v10194_v9 }
 0x3c1   :  { %4279 = vmatmul.mubr.bf16.gmra.mxu1 %v10197_v5  ;;  %4325 = vmatprep.subr.bf16.mxu0 %v7636_v10 }
 0x3c2   :  { %4288 = vmatprep.mubr.bf16.mxu1 %v10202_v36  ;;  %4437 = vmatpush2.bf16.msra.mxu1 %v7771_v4  ;;  %v8436_v4 = vld [vmem:[#allocation8 + $0xa0] ss:$16 sps:$4 sm:$0xff]  }
 0x3c3   :  { %4438 = vmatprep.subr.bf16.mxu1 %v7764_v46  ;;  %v10278_v55 = vpop.f32.mrf.mxu0  ;;  %v8484_v46 = vld [vmem:[#allocation8 + $0x2a0] ss:$16 sps:$4 sm:$0xff]  }
 0x3c4   :  { %4326 = vmatpush2.bf16.msra.mxu0 %v7635_v59 }
 0x3c5   :  { %4327 = vmatprep.subr.bf16.mxu0 %v7628_v28  ;;  %v10285_v18 = vpop.f32.mrf.mxu0 }
 0x3c6   :  { %4439 = vmatpush2.bf16.msra.mxu1 %v7763_v58  ;;  %v8444_v58 = vld [vmem:[#allocation8 + $0x64] ss:$16 sps:$4 sm:$0xff]  }
 0x3c7   :  { %4176 = vmatmul.mubr.bf16.gmra.mxu0 %v10206_v49  ;;  %4440 = vmatprep.subr.bf16.mxu1 %v7756_v14  ;;  %v10290_v10 = vpop.f32.mrf.mxu0  ;;  %v8442_v14 = vld [vmem:[#allocation8 + $0x60] ss:$16 sps:$4 sm:$0xff]  }
 0x3c8   :  { %4328 = vmatpush2.bf16.msra.mxu0 %v7627_v53  ;;  %4331 = vmatprep.mubr.bf16.mxu0 %v9792_v27  ;;  %v10280_v27 = vpop.f32.mrf.mxu1 }
 0x3c9   :  { %4289 = vmatmul.mubr.bf16.gmra.mxu1 %v10209_v43  ;;  %4329 = vmatprep.subr.bf16.mxu0 %v7620_v2  ;;  %v10294_v3 = vpop.f32.mrf.mxu0 }
 0x3ca   :  { %4441 = vmatpush2.bf16.msra.mxu1 %v7755_v54  ;;  %4444 = vmatprep.mubr.bf16.mxu1 %v9794_v40  ;;  %v8433_v40 = vld [vmem:[#allocation8 + $0xc0] ss:$16 sps:$4 sm:$0xff]   ;;  %v10287_v41 = vpop.f32.mrf.mxu1  ;;  %v8495_v54 = vld [vmem:[#allocation8 + $0x244] ss:$16 sps:$4 sm:$0xff]  }
 0x3cb   :  { %4442 = vmatprep.subr.bf16.mxu1 %v7748_v60  ;;  %v8445_v60 = vld [vmem:[#allocation8 + $0x40] ss:$16 sps:$4 sm:$0xff]  }
 0x3cc   :  { %4330 = vmatpush2.bf16.msra.mxu0 %v7619_v47  ;;  %v10298_v59 = vpop.f32.mrf.mxu0 }
 0x3cd   :  { %6363 = vmatprep.subr.bf16.mxu0 %v8432_v39 }
 0x3ce   :  { %4443 = vmatpush2.bf16.msra.mxu1 %v7747_v30  ;;  %v10305_v28 = vpop.f32.mrf.mxu0  ;;  %v8450_v30 = vld [vmem:[#allocation8 + $0x24] ss:$16 sps:$4 sm:$0xff]  }
 0x3cf   :  { %4332 = vmatmul.mubr.bf16.vlgmr.msra.gmra.mxu0 %v9800_v61  ;;  %6404 = vmatprep.subr.bf16.mxu1 %v8480_v45  ;;  %v10292_v61 = vpop.f32.mrf.mxu1  ;;  %v8493_v45 = vld [vmem:[#allocation8 + $0x240] ss:$16 sps:$4 sm:$0xff]  }
 0x3d0   :  { %4341 = vmatprep.mubr.bf16.mxu0 %v9838_v6  ;;  %6364 = vmatpush1.bf16.msra.mxu0 %v8430_v16  ;;  %v8486_v6 = vld [vmem:[#allocation8 + $0x2a4] ss:$16 sps:$4 sm:$0xff]  }
 0x3d1   :  { %4445 = vmatmul.mubr.bf16.vlgmr.msra.gmra.mxu1 %v9802_v52  ;;  %6365 = vmatprep.subr.bf16.mxu0 %v8435_v63  ;;  %v10296_v52 = vpop.f32.mrf.mxu1  ;;  %v8448_v63 = vld [vmem:[#allocation8 + $0x20] ss:$16 sps:$4 sm:$0xff]  }
 0x3d2   :  { %4454 = vmatprep.mubr.bf16.mxu1 %v9843_v11  ;;  %6405 = vmatpush1.bf16.msra.mxu1 %v8478_v15  ;;  %v8489_v11 = vld [vmem:[#allocation8 + $0x284] ss:$16 sps:$4 sm:$0xff]  }
 0x3d3   :  { %6406 = vmatprep.subr.bf16.mxu1 %v8483_v35  ;;  %v10302_v44 = vpop.f32.mrf.mxu1 }
 0x3d4   :  { %6366 = vmatpush1.bf16.msra.mxu0 %v8433_v40  ;;  %v8496_v40 = vld [vmem:[#allocation8 + $0x220] ss:$16 sps:$4 sm:$0xff]  }
 0x3d5   :  { %6367 = vmatprep.subr.bf16.mxu0 %v8438_v25  ;;  %v10308_v20 = vpop.f32.mrf.mxu1 }
 0x3d6   :  { %6407 = vmatpush1.bf16.msra.mxu1 %v8481_v38 }
 0x3d7   :  { %4342 = vmatmul.mubr.bf16.gmra.mxu0 %v9861_v29  ;;  %6408 = vmatprep.subr.bf16.mxu1 %v8486_v6  ;;  %v10310_v29 = vpop.f32.mrf.mxu0  ;;  %v10312_v53 = vpop.f32.mrf.mxu1  ;;  %v8501_v6 = vld [vmem:[#allocation8 + $0x204] ss:$16 sps:$4 sm:$0xff]  }
 0x3d8   :  { %4351 = vmatprep.mubr.bf16.mxu0 %v9889_v0  ;;  %6368 = vmatpush1.bf16.msra.mxu0 %v8436_v4  ;;  %v8492_v0 = vld [vmem:[#allocation8 + $0x264] ss:$16 sps:$4 sm:$0xff]  }
 0x3d9   :  { %4455 = vmatmul.mubr.bf16.gmra.mxu1 %v9877_v21  ;;  %6369 = vmatprep.subr.bf16.mxu0 %v8441_v33  ;;  %v10314_v31 = vpop.f32.mrf.mxu0  ;;  %v8447_v21 = vld [vmem:[#allocation8 + $0x44] ss:$16 sps:$4 sm:$0xff]   ;;  %v10316_v2 = vpop.f32.mrf.mxu1 }
 0x3da   :  { %4464 = vmatprep.mubr.bf16.mxu1 %v9897_v56  ;;  %6409 = vmatpush1.bf16.msra.mxu1 %v8484_v46  ;;  %v11250_v4 = vld [vmem:[#allocation18_spill] sm:$0xff] }
 0x3db   :  { %6410 = vmatprep.subr.bf16.mxu1 %v8489_v11  ;;  %v10318_v56 = vpop.f32.mrf.mxu0  ;;  %v10322_v47 = vpop.f32.mrf.mxu1  ;;  %v8451_v46 = vld [vmem:[#allocation8] ss:$16 sps:$4 sm:$0xff]  }
 0x3dc   :  { %6370 = vmatpush1.bf16.msra.mxu0 %v8439_v51 }
 0x3dd   :  { %6371 = vmatprep.subr.bf16.mxu0 %v8444_v58  ;;  %v10325_v39 = vpop.f32.mrf.mxu0  ;;  %v10328_v16 = vpop.f32.mrf.mxu1  ;;  %v8456_v58 = vld [vmem:[#allocation8 + $0x1e4] ss:$16 sps:$4 sm:$0xff]  }
 0x3de   :  { %6411 = vmatpush1.bf16.msra.mxu1 %v8487_v8  ;;  %v11251_v8 = vld [vmem:[#allocation17_spill] sm:$0xff] }
 0x3df   :  { %4352 = vmatmul.mubr.bf16.gmra.mxu0 %v9918_v26  ;;  %6412 = vmatprep.subr.bf16.mxu1 %v8492_v0  ;;  %v10330_v26 = vpop.f32.mrf.mxu0  ;;  %v10337_v15 = vpop.f32.mrf.mxu1  ;;  %v8499_v0 = vld [vmem:[#allocation8 + $0x200] ss:$16 sps:$4 sm:$0xff]  }
 0x3e0   :  { %4361 = vmatprep.mubr.bf16.mxu0 %v9948_v24  ;;  %6372 = vmatpush1.bf16.msra.mxu0 %v8442_v14  ;;  %v8498_v24 = vld [vmem:[#allocation8 + $0x224] ss:$16 sps:$4 sm:$0xff]  }
 0x3e1   :  { %4465 = vmatmul.mubr.bf16.gmra.mxu1 %v9933_v13  ;;  %6373 = vmatprep.subr.bf16.mxu0 %v8447_v21  ;;  %v10335_v13 = vld [vmem:[%s10974_s9] sm:$0xff]  ;;  %v10339_v35 = vpop.f32.mrf.mxu0  ;;  %v10341_v25 = vpop.f32.mrf.mxu1 }
 0x3e2   :  { %4474 = vmatprep.mubr.bf16.mxu1 %v9954_v48  ;;  %6413 = vmatpush1.bf16.msra.mxu1 %v8490_v42  ;;  %v8453_v48 = vld [vmem:[#allocation8 + $0x4] ss:$16 sps:$4 sm:$0xff]   ;;  %v10348_v33 = vrot.slane %v10335_v13, %v11250_v4 }
 0x3e3   :  { %6414 = vmatprep.subr.bf16.mxu1 %v8495_v54  ;;  %v10343_v38 = vpop.f32.mrf.mxu0  ;;  %v10351_v11 = vpop.f32.mrf.mxu1  ;;  %v8454_v54 = vld [vmem:[#allocation8 + $0x1e0] ss:$16 sps:$4 sm:$0xff]  }
 0x3e4   :  { %6374 = vmatpush1.bf16.msra.mxu0 %v8445_v60  ;;  %v3656_v42 = vadd.f32 %v10278_v55, %v10348_v33 }
 0x3e5   :  { %6375 = vmatprep.subr.bf16.mxu0 %v8450_v30  ;;  %v10354_v51 = vpop.f32.mrf.mxu0  ;;  %v10363_v14 = vpop.f32.mrf.mxu1 }
 0x3e6   :  { %6415 = vmatpush1.bf16.msra.mxu1 %v8493_v45  ;;  %v8459_v45 = vld [vmem:[#allocation8 + $0x1c4] ss:$16 sps:$4 sm:$0xff]  }
 0x3e7   :  { %4362 = vmatmul.mubr.bf16.gmra.mxu0 %v9975_v50  ;;  %6416 = vmatprep.subr.bf16.mxu1 %v8498_v24  ;;  %v10358_v50 = vrot.slane %v10335_v13, %v11251_v8  ;;  %v10365_v21 = vpop.f32.mrf.mxu0  ;;  %v10373_v30 = vpop.f32.mrf.mxu1 }
 0x3e8   :  { %4371 = vmatprep.mubr.bf16.mxu0 %v10005_v23  ;;  %6376 = vmatpush1.bf16.msra.mxu0 %v8448_v63  ;;  %v3660_v23 = vadd.f32 %v10290_v10, %v10348_v33  ;;  %v8502_v63 = vld [vmem:[#allocation8 + $0x3e0] ss:$16 sps:$4 sm:$0xff]  }
 0x3e9   :  { %4475 = vmatmul.mubr.bf16.gmra.mxu1 %v9990_v62  ;;  %6377 = vmatprep.subr.bf16.mxu0 %v8453_v48  ;;  %v8504_v62 = vld [vmem:[#allocation8 + $0x3e4] ss:$16 sps:$4 sm:$0xff]   ;;  %v3662_v60 = vadd.f32 %v10294_v3, %v10358_v50  ;;  %v10375_v10 = vpop.f32.mrf.mxu0  ;;  %v3658_v24 = vadd.f32 %v10285_v18, %v10358_v50  ;;  %v3668_v48 = vadd.f32 %v10305_v28, %v10358_v50 }
 0x3ea   :  { %4484 = vmatprep.mubr.bf16.mxu1 %v10013_v17  ;;  %6417 = vmatpush1.bf16.msra.mxu1 %v8496_v40  ;;  %v3666_v17 = vadd.f32 %v10298_v59, %v10348_v33  ;;  %v3773_v55 = vadd.f32 %v10292_v61, %v3660_v23  ;;  %v3670_v3 = vadd.f32 %v10310_v29, %v10348_v33  ;;  %v10384_v59 = vpop.f32.mrf.mxu1  ;;  %v8457_v61 = vld [vmem:[#allocation8 + $0x1c0] ss:$16 sps:$4 sm:$0xff]  }
 0x3eb   :  { %6418 = vmatprep.subr.bf16.mxu1 %v8501_v6  ;;  %v10386_v40 = vpop.f32.mrf.mxu0  ;;  %v8507_v6 = vld [vmem:[#allocation8 + $0x3c4] ss:$16 sps:$4 sm:$0xff]   ;;  %v3769_v18 = vadd.f32 %v10280_v27, %v3656_v42  ;;  %v3672_v29 = vadd.f32 %v10314_v31, %v10358_v50  ;;  %v8505_v27 = vld [vmem:[#allocation8 + $0x3c0] ss:$16 sps:$4 sm:$0xff]   ;;  %v3781_v31 = vadd.f32 %v10308_v20, %v3668_v48 }
 0x3ec   :  { %6378 = vmatpush1.bf16.msra.mxu0 %v8451_v46  ;;  %v3775_v46 = vadd.f32 %v10296_v52, %v3662_v60  ;;  %v3779_v28 = vadd.f32 %v10302_v44, %v3666_v17  ;;  %v3771_v52 = vadd.f32 %v10287_v41, %v3658_v24  ;;  %v3783_v23 = vadd.f32 %v10312_v53, %v3670_v3  ;;  %v8510_v42 = vld [vmem:[#allocation8 + $0x3a4] ss:$16 sps:$4 sm:$0xff]  }
 0x3ed   :  { %6379 = vmatprep.subr.bf16.mxu0 %v8456_v58  ;;  %v10395_v58 = vpop.f32.mrf.mxu1  ;;  %v4525_v44 = vmax.f32 %v3769_v18, %v3773_v55  ;;  %v3785_v17 = vadd.f32 %v10316_v2, %v3672_v29  ;;  %v8513_v2 = vld [vmem:[#allocation8 + $0x384] ss:$16 sps:$4 sm:$0xff]  }
 0x3ee   :  { %6419 = vmatpush1.bf16.msra.mxu1 %v8499_v0  ;;  %v8462_v0 = vld [vmem:[#allocation8 + $0x1a4] ss:$16 sps:$4 sm:$0xff]   ;;  %v4538_v60 = vmax.f32 %v3771_v52, %v3775_v46  ;;  %v3690_v46 = vadd.f32 %v10365_v21, %v10348_v33 }
 0x3ef   :  { %4372 = vmatmul.mubr.bf16.gmra.mxu0 %v10045_v34  ;;  %6420 = vmatprep.subr.bf16.mxu1 %v8504_v62  ;;  %v10398_v34 = vpop.f32.mrf.mxu0  ;;  %v10406_v62 = vpop.f32.mrf.mxu1  ;;  %v4526_v41 = vmax.f32 %v4525_v44, %v3779_v28  ;;  %v8468_v29 = vld [vmem:[#allocation8 + $0x164] ss:$16 sps:$4 sm:$0xff]  }
 0x3f0   :  { %4381 = vmatprep.mubr.bf16.mxu0 %v10061_v12  ;;  %6380 = vmatpush2.bf16.msra.mxu0 %v8454_v54  ;;  %v3676_v12 = vadd.f32 %v10318_v56, %v10348_v33  ;;  %v3678_v54 = vadd.f32 %v10325_v39, %v10358_v50  ;;  %v8460_v56 = vld [vmem:[#allocation8 + $0x1a0] ss:$16 sps:$4 sm:$0xff]   ;;  %v3686_v39 = vadd.f32 %v10343_v38, %v10348_v33 }
 0x3f1   :  { %4485 = vmatmul.mubr.bf16.gmra.mxu1 %v10059_v57  ;;  %6381 = vmatprep.subr.bf16.mxu0 %v8459_v45  ;;  %v3699_v57 = vpop.f32.mrf.mxu0  ;;  %v10413_v20 = vpop.f32.mrf.mxu1  ;;  %v8465_v45 = vld [vmem:[#allocation8 + $0x184] ss:$16 sps:$4 sm:$0xff]   ;;  %v4539_v55 = vmax.f32 %v4538_v60, %v3781_v31  ;;  %v4527_v48 = vmax.f32 %v4526_v41, %v3783_v23  ;;  %v8463_v38 = vld [vmem:[#allocation8 + $0x180] ss:$16 sps:$4 sm:$0xff]  }
 0x3f2   :  { %4494 = vmatprep.mubr.bf16.mxu1 %v10070_v37  ;;  %6421 = vmatpush2.bf16.msra.mxu1 %v8502_v63  ;;  %v3680_v37 = vadd.f32 %v10330_v26, %v10348_v33  ;;  %v3789_v24 = vadd.f32 %v10322_v47, %v3676_v12  ;;  %v3682_v63 = vadd.f32 %v10339_v35, %v10358_v50  ;;  %v8508_v26 = vld [vmem:[#allocation8 + $0x3a0] ss:$16 sps:$4 sm:$0xff]  }
 0x3f3   :  { %6422 = vmatprep.subr.bf16.mxu1 %v8507_v6  ;;  %v3701_v53 = vpop.f32.mrf.mxu0  ;;  %v3814_v3 = vpop.f32.mrf.mxu1  ;;  %v3791_v18 = vadd.f32 %v10328_v16, %v3678_v54  ;;  %v3688_v35 = vadd.f32 %v10354_v51, %v10358_v50  ;;  %v3692_v51 = vadd.f32 %v10375_v10, %v10358_v50  ;;  %v3700_v31 = vadd.f32 %v3699_v57, %v10348_v33  ;;  %v8471_v10 = vld [vmem:[#allocation8 + $0x144] ss:$16 sps:$4 sm:$0xff]  }
 0x3f4   :  { %6382 = vmatpush2.bf16.msra.mxu0 %v8457_v61  ;;  %v3793_v47 = vadd.f32 %v10337_v15, %v3680_v37  ;;  %v4540_v61 = vmax.f32 %v4539_v55, %v3785_v17  ;;  %v4528_v16 = vmax.f32 %v4527_v48, %v3789_v24  ;;  %v3795_v15 = vadd.f32 %v10341_v25, %v3682_v63  ;;  %v8466_v25 = vld [vmem:[#allocation8 + $0x160] ss:$16 sps:$4 sm:$0xff]  }
 0x3f5   :  { %6383 = vmatprep.subr.bf16.mxu0 %v8462_v0  ;;  %v3705_v6 = vpop.f32.mrf.mxu0  ;;  %v3799_v0 = vadd.f32 %v10351_v11, %v3686_v39  ;;  %v3801_v44 = vadd.f32 %v10363_v14, %v3688_v35  ;;  %v3803_v11 = vadd.f32 %v10373_v30, %v3690_v46  ;;  %v8514_v14 = vld [vmem:[#allocation8 + $0x360] ss:$16 sps:$4 sm:$0xff]   ;;  %v3805_v57 = vadd.f32 %v10384_v59, %v3692_v51 }
 0x3f6   :  { %6423 = vmatpush2.bf16.msra.mxu1 %v8505_v27  ;;  %v8516_v27 = vld [vmem:[#allocation8 + $0x364] ss:$16 sps:$4 sm:$0xff]   ;;  %v4529_v52 = vmax.f32 %v4528_v16, %v3793_v47  ;;  %v3706_v60 = vadd.f32 %v3705_v6, %v10348_v33  ;;  %v3698_v30 = vadd.f32 %v10398_v34, %v10358_v50  ;;  %v8469_v59 = vld [vmem:[#allocation8 + $0x140] ss:$16 sps:$4 sm:$0xff]  }
 0x3f7   :  { %4382 = vmatmul.mubr.bf16.gmra.mxu0 %v10125_v32  ;;  %6424 = vmatprep.subr.bf16.mxu1 %v8510_v42  ;;  %v3818_v28 = vpop.f32.mrf.mxu1  ;;  %v3707_v32 = vpop.f32.mrf.mxu0 }
 0x3f8   :  { %4391 = vmatprep.mubr.bf16.mxu0 %v10135_v22  ;;  %6384 = vmatpush2.bf16.msra.mxu0 %v8460_v56  ;;  %v8511_v22 = vld [vmem:[#allocation8 + $0x380] ss:$16 sps:$4 sm:$0xff]   ;;  %v4530_v37 = vmax.f32 %v4529_v52, %v3799_v0  ;;  %v3696_v56 = vadd.f32 %v10386_v40, %v10348_v33  ;;  %v3708_v41 = vadd.f32 %v3707_v32, %v10358_v50 }
 0x3f9   :  { %4495 = vmatmul.mubr.bf16.gmra.mxu1 %v10127_v19  ;;  %6385 = vmatprep.subr.bf16.mxu0 %v8465_v45  ;;  %v3820_v12 = vpop.f32.mrf.mxu1  ;;  %v3709_v21 = vpop.f32.mrf.mxu0  ;;  %v4541_v19 = vmax.f32 %v4540_v61, %v3791_v18  ;;  %v8519_v45 = vld [vmem:[#allocation8 + $0x344] ss:$16 sps:$4 sm:$0xff]   ;;  %v3813_v40 = vadd.f32 %v10413_v20, %v3700_v31 }
 0x3fa   :  { %4504 = vmatprep.mubr.bf16.mxu1 %v10158_v7  ;;  %6425 = vmatpush2.bf16.msra.mxu1 %v8508_v26  ;;  %v3702_v7 = vadd.f32 %v3701_v53, %v10358_v50  ;;  %v3710_v63 = vadd.f32 %v3709_v21, %v10348_v33  ;;  %v4531_v39 = vmax.f32 %v4530_v37, %v3803_v11  ;;  %v8520_v21 = vld [vmem:[#allocation8 + $0x320] ss:$16 sps:$4 sm:$0xff]   ;;  %v8525_v31 = vld [vmem:[#allocation8 + $0x304] ss:$16 sps:$4 sm:$0xff]  }
 0x3fb   :  { %6426 = vmatprep.subr.bf16.mxu1 %v8513_v2  ;;  %v3822_v23 = vpop.f32.mrf.mxu1  ;;  %v3711_v42 = vpop.f32.mrf.mxu0  ;;  %v4542_v54 = vmax.f32 %v4541_v19, %v3795_v15  ;;  %v3809_v6 = vadd.f32 %v10395_v58, %v3696_v56  ;;  %v3819_v2 = vadd.f32 %v3818_v28, %v3706_v60  ;;  %v3821_v47 = vadd.f32 %v3820_v12, %v3708_v41  ;;  %v8472_v28 = vld [vmem:[#allocation8 + $0x120] ss:$16 sps:$4 sm:$0xff]   ;;  %v8528_v60 = vld [vmem:[#allocation8 + $0x4e4] ss:$16 sps:$4 sm:$0xff]  }
 0x3fc   :  { %6386 = vmatpush2.bf16.msra.mxu0 %v8463_v38  ;;  %v3815_v26 = vadd.f32 %v3814_v3, %v3702_v7  ;;  %v3712_v34 = vadd.f32 %v3711_v42, %v10358_v50  ;;  %v3811_v3 = vadd.f32 %v10406_v62, %v3698_v30  ;;  %v3823_v46 = vadd.f32 %v3822_v23, %v3710_v63  ;;  %v8477_v62 = vld [vmem:[#allocation8 + $0x104] ss:$16 sps:$4 sm:$0xff]   ;;  %v8475_v42 = vld [vmem:[#allocation8 + $0x100] ss:$16 sps:$4 sm:$0xff]  }
 0x3fd   :  { %6387 = vmatprep.subr.bf16.mxu0 %v8468_v29  ;;  %v3824_v17 = vpop.f32.mrf.mxu1  ;;  %v3715_v53 = vpop.f32.mrf.mxu0  ;;  %v4543_v24 = vmax.f32 %v4542_v54, %v3801_v44  ;;  %v4629_v61 = vmax.f32 %v3809_v6, %v3813_v40  ;;  %v4532_v29 = vrot.slane %v4531_v39, 4  ;;  %v8523_v41 = vld [vmem:[#allocation8 + $0x300] ss:$16 sps:$4 sm:$0xff]  }
 0x3fe   :  { %6427 = vmatpush2.bf16.msra.mxu1 %v8511_v22  ;;  %v3716_v20 = vadd.f32 %v3715_v53, %v10348_v33  ;;  %v3825_v16 = vadd.f32 %v3824_v17, %v3712_v34 }
 0x3ff   :  { %4392 = vmatmul.mubr.bf16.gmra.mxu0 %v10188_v1  ;;  %6428 = vmatprep.subr.bf16.mxu1 %v8516_v27  ;;  %v3717_v48 = vpop.f32.mrf.mxu0  ;;  %v8474_v1 = vld [vmem:[#allocation8 + $0x124] ss:$16 sps:$4 sm:$0xff]   ;;  %v4544_v18 = vmax.f32 %v4543_v24, %v3805_v57  ;;  %v4630_v22 = vmax.f32 %v4629_v61, %v3819_v2 }
 0x400   :  { %4401 = vmatprep.mubr.bf16.mxu0 %v10194_v9  ;;  %6388 = vmatpush2.bf16.msra.mxu0 %v8466_v25  ;;  %v3828_v55 = vpop.f32.mrf.mxu1  ;;  %v8517_v9 = vld [vmem:[#allocation8 + $0x340] ss:$16 sps:$4 sm:$0xff]   ;;  %v3718_v32 = vadd.f32 %v3717_v48, %v10358_v50 }
 0x401   :  { %4505 = vmatmul.mubr.bf16.gmra.mxu1 %v10197_v5  ;;  %6389 = vmatprep.subr.bf16.mxu0 %v8471_v10  ;;  %v3719_v38 = vpop.f32.mrf.mxu0  ;;  %v8522_v5 = vld [vmem:[#allocation8 + $0x324] ss:$16 sps:$4 sm:$0xff]   ;;  %v3829_v51 = vadd.f32 %v3828_v55, %v3716_v20  ;;  %v4545_v27 = vrot.slane %v4544_v18, 4  ;;  %v4631_v25 = vmax.f32 %v4630_v22, %v3823_v46  ;;  %v4533_v10 = vmax.f32 %v4531_v39, %v4532_v29 }
 0x402   :  { %4514 = vmatprep.mubr.bf16.mxu1 %v10202_v36  ;;  %6429 = vmatpush2.bf16.msra.mxu1 %v8514_v14  ;;  %v3830_v35 = vpop.f32.mrf.mxu1  ;;  %v3720_v58 = vadd.f32 %v3719_v38, %v10348_v33  ;;  %v4642_v36 = vmax.f32 %v3811_v3, %v3815_v26 }
 0x403   :  { %6430 = vmatprep.subr.bf16.mxu1 %v8519_v45  ;;  %v3721_v0 = vpop.f32.mrf.mxu0  ;;  %v3831_v11 = vadd.f32 %v3830_v35, %v3718_v32  ;;  %v4632_v14 = vmax.f32 %v4631_v25, %v3829_v51  ;;  %v4546_v17 = vmax.f32 %v4544_v18, %v4545_v27 }
 0x404   :  { %6390 = vmatpush2.bf16.msra.mxu0 %v8469_v59  ;;  %v3832_v15 = vpop.f32.mrf.mxu1  ;;  %v3722_v12 = vadd.f32 %v3721_v0, %v10358_v50  ;;  %v4643_v19 = vmax.f32 %v4642_v36, %v3821_v47 }
 0x405   :  { %6391 = vmatprep.subr.bf16.mxu0 %v8474_v1  ;;  %v3725_v44 = vpop.f32.mrf.mxu0  ;;  %v3833_v7 = vadd.f32 %v3832_v15, %v3720_v58  ;;  %v4547_v6 = vrot.slane %v4546_v17, 2 }
 0x406   :  { %6431 = vmatpush2.bf16.msra.mxu1 %v8517_v9  ;;  %v3834_v52 = vpop.f32.mrf.mxu1  ;;  %v3726_v23 = vadd.f32 %v3725_v44, %v10348_v33  ;;  %v4644_v54 = vmax.f32 %v4643_v19, %v3825_v16 }
 0x407   :  { %4402 = vmatmul.mubr.bf16.gmra.mxu0 %v10206_v49  ;;  %6432 = vmatprep.subr.bf16.mxu1 %v8522_v5  ;;  %v3727_v56 = vpop.f32.mrf.mxu0  ;;  %v3835_v57 = vadd.f32 %v3834_v52, %v3722_v12  ;;  %v4633_v40 = vmax.f32 %v4632_v14, %v3833_v7  ;;  %v4548_v61 = vmax.f32 %v4546_v17, %v4547_v6 }
 0x408   :  { %6392 = vmatpush2.bf16.msra.mxu0 %v8472_v28  ;;  %v3838_v37 = vpop.f32.mrf.mxu1  ;;  %v3728_v30 = vadd.f32 %v3727_v56, %v10358_v50  ;;  %v4645_v24 = vmax.f32 %v4644_v54, %v3831_v11 }
 0x409   :  { %4515 = vmatmul.mubr.bf16.gmra.mxu1 %v10209_v43  ;;  %6393 = vmatprep.subr.bf16.mxu0 %v8477_v62  ;;  %v3839_v49 = vadd.f32 %v3838_v37, %v3726_v23  ;;  %v3729_v45 = vpop.f32.mrf.mxu0  ;;  %v4534_v43 = vrot.slane %v4533_v10, 2  ;;  %v4549_v0 = vrot.slane %v4548_v61, 1 }
 0x40a   :  { %6433 = vmatpush2.bf16.msra.mxu1 %v8520_v21  ;;  %v3840_v53 = vpop.f32.mrf.mxu1  ;;  %v3730_v59 = vadd.f32 %v3729_v45, %v10348_v33  ;;  %v4646_v34 = vmax.f32 %v4645_v24, %v3835_v57 }
 0x40b   :  { %6434 = vmatprep.subr.bf16.mxu1 %v8525_v31  ;;  %v3841_v63 = vadd.f32 %v3840_v53, %v3728_v30  ;;  %v3731_v26 = vpop.f32.mrf.mxu0  ;;  %v4634_v55 = vmax.f32 %v4633_v40, %v3839_v49  ;;  %v4535_v35 = vmax.f32 %v4533_v10, %v4534_v43  ;;  %v4550_v11 = vmax.f32 %v4548_v61, %v4549_v0 }
 0x40c   :  { %6394 = vmatpush2.bf16.msra.mxu0 %v8475_v42  ;;  %v3842_v39 = vpop.f32.mrf.mxu1  ;;  %v3732_v1 = vadd.f32 %v3731_v26, %v10358_v50 }
 0x40d   :  { %6445 = vmatprep.subr.bf16.mxu0 %v8528_v60  ;;  %v3843_v48 = vadd.f32 %v3842_v39, %v3730_v59  ;;  %v4647_v9 = vmax.f32 %v4646_v34, %v3841_v63  ;;  %v4536_v36 = vrot.slane %v4535_v35, 1  ;;  %v4734_v57 = vpack.c.bf16 %v4550_v11, %v4550_v11 }
 0x40e   :  { %6435 = vmatpush2.bf16.msra.mxu1 %v8523_v41  ;;  %v3844_v2 = vpop.f32.mrf.mxu1 }
 0x40f   :  { %v10464_v20 = vpop.f32.mrf.mxu0  ;;  %v4635_v18 = vmax.f32 %v4634_v55, %v3843_v48  ;;  %v3845_v3 = vadd.f32 %v3844_v2, %v3732_v1  ;;  %v4537_v19 = vmax.f32 %v4535_v35, %v4536_v36  ;;  %v5044_v40 = vunpack.c.l.b16 %v4734_v57  ;;  %v8526_v55 = vld [vmem:[#allocation8 + $0x4e0] ss:$16 sps:$4 sm:$0xff]   ;;  %v8531_v2 = vld [vmem:[#allocation8 + $0x4c4] ss:$16 sps:$4 sm:$0xff]  }
 0x410   :  { %v8534_v36 = vld [vmem:[#allocation8 + $0x4a4] ss:$16 sps:$4 sm:$0xff]  }
 0x411   :  { %v10466_v47 = vpop.f32.mrf.mxu1  ;;  %v10468_v33 = vpop.f32.mrf.mxu0  ;;  %v4636_v38 = vrot.slane %v4635_v18, 4  ;;  %v4648_v5 = vmax.f32 %v4647_v9, %v3845_v3  ;;  %v4733_v54 = vpack.c.bf16 %v4537_v19, %v4537_v19  ;;  %v11252_v3 = vld [vmem:[#allocation60_spill] sm:$0xff] }
 0x412   :  { %v10504_v35 = vrot.slane %v10335_v13, %v11252_v3 }
 0x413   :  { %v10470_v46 = vpop.f32.mrf.mxu1  ;;  %v3885_v32 = vpop.f32.mrf.mxu0  ;;  %v4637_v50 = vmax.f32 %v4635_v18, %v4636_v38  ;;  %v4649_v58 = vrot.slane %v4648_v5, 4  ;;  %v5043_v53 = vunpack.c.l.b16 %v4733_v54  ;;  %v8529_v38 = vld [vmem:[#allocation8 + $0x4c0] ss:$16 sps:$4 sm:$0xff]  }
 0x414   :  { %v3882_v19 = vadd.f32 %v10464_v20, %v10504_v35 }
 0x415   :  { %v10472_v28 = vpop.f32.mrf.mxu1  ;;  %v3887_v29 = vpop.f32.mrf.mxu0  ;;  %v4638_v16 = vrot.slane %v4637_v50, 2  ;;  %v4650_v15 = vmax.f32 %v4648_v5, %v4649_v58  ;;  %v11253_v5 = vld [vmem:[#allocation61_spill] sm:$0xff] }
 0x416   :  { %v10508_v61 = vrot.slane %v10335_v13, %v11253_v5  ;;  %v8532_v13 = vld [vmem:[#allocation8 + $0x4a0] ss:$16 sps:$4 sm:$0xff]  }
 0x417   :  { %v10474_v62 = vpop.f32.mrf.mxu1  ;;  %v3891_v22 = vpop.f32.mrf.mxu0  ;;  %v4639_v51 = vmax.f32 %v4637_v50, %v4638_v16  ;;  %v4651_v12 = vrot.slane %v4650_v15, 2  ;;  %v3886_v16 = vadd.f32 %v3885_v32, %v10504_v35 }
 0x418   :  { %v3888_v0 = vadd.f32 %v3887_v29, %v10508_v61  ;;  %v8537_v29 = vld [vmem:[#allocation8 + $0x484] ss:$16 sps:$4 sm:$0xff]  }
 0x419   :  { %v10476_v21 = vpop.f32.mrf.mxu1  ;;  %v3893_v27 = vpop.f32.mrf.mxu0  ;;  %v4640_v52 = vrot.slane %v4639_v51, 1  ;;  %v4652_v44 = vmax.f32 %v4650_v15, %v4651_v12  ;;  %v8576_v15 = vld [vmem:[#allocation8 + $0x6e4] ss:$16 sps:$4 sm:$0xff]  }
 0x41a   :  { %6486 = vmatprep.subr.bf16.mxu1 %v8576_v15  ;;  %v3894_v11 = vadd.f32 %v3893_v27, %v10508_v61 }
 0x41b   :  { %v10478_v31 = vpop.f32.mrf.mxu1  ;;  %v3895_v25 = vpop.f32.mrf.mxu0  ;;  %v4641_v7 = vmax.f32 %v4639_v51, %v4640_v52  ;;  %v4653_v23 = vrot.slane %v4652_v44, 1  ;;  %v3892_v52 = vadd.f32 %v3891_v22, %v10504_v35  ;;  %v4001_v22 = vadd.f32 %v10474_v62, %v3888_v0 }
 0x41c   :  { %v3896_v20 = vadd.f32 %v3895_v25, %v10504_v35  ;;  %v4007_v25 = vadd.f32 %v10478_v31, %v3894_v11 }
 0x41d   :  { %v10480_v42 = vpop.f32.mrf.mxu1  ;;  %v3897_v10 = vpop.f32.mrf.mxu0  ;;  %v4741_v37 = vpack.c.bf16 %v4641_v7, %v4641_v7  ;;  %v4654_v14 = vmax.f32 %v4652_v44, %v4653_v23  ;;  %v3884_v44 = vadd.f32 %v10468_v33, %v10508_v61  ;;  %v3999_v23 = vadd.f32 %v10472_v28, %v3886_v16 }
 0x41e   :  { %v3898_v54 = vadd.f32 %v3897_v10, %v10508_v61  ;;  %v3995_v33 = vadd.f32 %v10466_v47, %v3882_v19  ;;  %v4005_v27 = vadd.f32 %v10476_v21, %v3892_v52  ;;  %v4009_v47 = vadd.f32 %v10480_v42, %v3896_v20 }
 0x41f   :  { %v10482_v56 = vpop.f32.mrf.mxu1  ;;  %v3901_v60 = vpop.f32.mrf.mxu0  ;;  %v5051_v49 = vunpack.c.l.b16 %v4741_v37  ;;  %v4742_v17 = vpack.c.bf16 %v4654_v14, %v4654_v14  ;;  %v3997_v28 = vadd.f32 %v10470_v46, %v3884_v44 }
 0x420   :  { %v3902_v57 = vadd.f32 %v3901_v60, %v10504_v35  ;;  %v4011_v60 = vadd.f32 %v10482_v56, %v3898_v54  ;;  %v8543_v56 = vld [vmem:[#allocation8 + $0x444] ss:$16 sps:$4 sm:$0xff]  }
 0x421   :  { %v10484_v30 = vpop.f32.mrf.mxu1  ;;  %v3903_v41 = vpop.f32.mrf.mxu0  ;;  %v5052_v63 = vunpack.c.l.b16 %v4742_v17  ;;  %v5059_v59 = vsel %vm1312_vm2, %v5051_v49, %v5043_v53  ;;  %v8535_v49 = vld [vmem:[#allocation8 + $0x480] ss:$16 sps:$4 sm:$0xff]   ;;  %v8540_v53 = vld [vmem:[#allocation8 + $0x464] ss:$16 sps:$4 sm:$0xff]  }
 0x422   :  { %v10494_v48 = vpack.c.b16 %v5059_v59, %v5059_v59  ;;  %v3904_v62 = vadd.f32 %v3903_v41, %v10508_v61  ;;  %v4015_v41 = vadd.f32 %v10484_v30, %v3902_v57 }
 0x423   :  { %v10486_v45 = vpop.f32.mrf.mxu1  ;;  %v3905_v24 = vpop.f32.mrf.mxu0  ;;  %v5060_v26 = vsel %vm1312_vm2, %v5052_v63, %v5044_v40  ;;  %v4551_v40 = vmax.f32 %v3995_v33, %v3999_v23  ;;  %v4564_v63 = vmax.f32 %v3997_v28, %v4001_v22 }
 0x424   :  { %v10492_v34 = vpack.c.b16 %v5060_v26, %v5060_v26  ;;  %v3906_v21 = vadd.f32 %v3905_v24, %v10504_v35 }
 0x425   :  { %v10489_v43 = vpop.f32.mrf.mxu1  ;;  %v3907_v39 = vpop.f32.mrf.mxu0  ;;  %v4552_v31 = vmax.f32 %v4551_v40, %v4005_v27 }
 0x426   :  { %6395 = vmatprep.mubr.bf16.mxu0 %v10492_v34  ;;  %v3908_v59 = vadd.f32 %v3907_v39, %v10508_v61  ;;  %v4019_v39 = vadd.f32 %v10489_v43, %v3906_v21  ;;  %v8546_v43 = vld [vmem:[#allocation8 + $0x424] ss:$16 sps:$4 sm:$0xff]  }
 0x427   :  { %v10496_v1 = vpop.f32.mrf.mxu1  ;;  %v3911_v6 = vpop.f32.mrf.mxu0  ;;  %6396 = vmatmul.mubr.bf16.vlgmr.msra.gmra.mxu0 %v10494_v48  ;;  %v4553_v15 = vmax.f32 %v4552_v31, %v4009_v47 }
 0x428   :  { %6446 = vmatpush1.bf16.msra.mxu0 %v8526_v55  ;;  %v8538_v55 = vld [vmem:[#allocation8 + $0x460] ss:$16 sps:$4 sm:$0xff]   ;;  %v4021_v19 = vadd.f32 %v10496_v1, %v3908_v59 }
 0x429   :  { %v10499_v9 = vpop.f32.mrf.mxu1  ;;  %v3913_v18 = vpop.f32.mrf.mxu0  ;;  %6447 = vmatprep.subr.bf16.mxu0 %v8531_v2  ;;  %v4565_v2 = vmax.f32 %v4564_v63, %v4007_v25  ;;  %v4554_v44 = vmax.f32 %v4553_v15, %v4015_v41 }
 0x42a   :  { %v3914_v42 = vadd.f32 %v3913_v18, %v10508_v61 }
 0x42b   :  { %v10510_v50 = vpop.f32.mrf.mxu1  ;;  %v3915_v58 = vpop.f32.mrf.mxu0  ;;  %v4566_v0 = vmax.f32 %v4565_v2, %v4011_v60  ;;  %v4555_v22 = vmax.f32 %v4554_v44, %v4019_v39  ;;  %v8550_v44 = vld [vmem:[#allocation8 + $0x5e0] ss:$16 sps:$4 sm:$0xff]  }
 0x42c   :  { %6448 = vmatpush1.bf16.msra.mxu0 %v8529_v38  ;;  %v4017_v38 = vadd.f32 %v10486_v45, %v3904_v62  ;;  %v3916_v30 = vadd.f32 %v3915_v58, %v10504_v35 }
 0x42d   :  { %v10514_v51 = vpop.f32.mrf.mxu1  ;;  %v3917_v12 = vpop.f32.mrf.mxu0  ;;  %6449 = vmatprep.subr.bf16.mxu0 %v8534_v36  ;;  %v3912_v36 = vadd.f32 %v3911_v6, %v10504_v35  ;;  %v8541_v6 = vld [vmem:[#allocation8 + $0x440] ss:$16 sps:$4 sm:$0xff]  }
 0x42e   :  { %v3918_v52 = vadd.f32 %v3917_v12, %v10508_v61  ;;  %v4567_v18 = vmax.f32 %v4566_v0, %v4017_v38  ;;  %v4029_v12 = vadd.f32 %v10514_v51, %v3916_v30 }
 0x42f   :  { %v10522_v32 = vpop.f32.mrf.mxu1  ;;  %v10524_v7 = vpop.f32.mrf.mxu0  ;;  %v4025_v11 = vadd.f32 %v10499_v9, %v3912_v36 }
 0x430   :  { %6450 = vmatpush1.bf16.msra.mxu0 %v8532_v13  ;;  %v4568_v58 = vmax.f32 %v4567_v18, %v4021_v19  ;;  %v4031_v54 = vadd.f32 %v10522_v32, %v3918_v52  ;;  %v3922_v9 = vadd.f32 %v10524_v7, %v10504_v35 }
 0x431   :  { %v10530_v37 = vpop.f32.mrf.mxu1  ;;  %v10532_v14 = vpop.f32.mrf.mxu0  ;;  %6451 = vmatprep.subr.bf16.mxu0 %v8537_v29  ;;  %v4027_v29 = vadd.f32 %v10510_v50, %v3914_v42  ;;  %v4556_v28 = vmax.f32 %v4555_v22, %v4025_v11  ;;  %v8552_v42 = vld [vmem:[#allocation8 + $0x5e4] ss:$16 sps:$4 sm:$0xff]  }
 0x432   :  { %v3924_v62 = vadd.f32 %v10532_v14, %v10508_v61  ;;  %v4035_v31 = vadd.f32 %v10530_v37, %v3922_v9 }
 0x433   :  { %v10540_v17 = vpop.f32.mrf.mxu1  ;;  %v3925_v10 = vpop.f32.mrf.mxu0  ;;  %v4569_v25 = vmax.f32 %v4568_v58, %v4027_v29  ;;  %v4557_v21 = vmax.f32 %v4556_v28, %v4029_v12  ;;  %v8555_v29 = vld [vmem:[#allocation8 + $0x5c4] ss:$16 sps:$4 sm:$0xff]  }
 0x434   :  { %6452 = vmatpush1.bf16.msra.mxu0 %v8535_v49  ;;  %v3926_v1 = vadd.f32 %v3925_v10, %v10504_v35  ;;  %v8544_v49 = vld [vmem:[#allocation8 + $0x420] ss:$16 sps:$4 sm:$0xff]   ;;  %v4037_v2 = vadd.f32 %v10540_v17, %v3924_v62  ;;  %v8558_v62 = vld [vmem:[#allocation8 + $0x5a4] ss:$16 sps:$4 sm:$0xff]  }
 0x435   :  { %v4038_v46 = vpop.f32.mrf.mxu1  ;;  %v3927_v26 = vpop.f32.mrf.mxu0  ;;  %6453 = vmatprep.subr.bf16.mxu0 %v8540_v53  ;;  %v8549_v53 = vld [vmem:[#allocation8 + $0x404] ss:$16 sps:$4 sm:$0xff]   ;;  %v4570_v7 = vmax.f32 %v4569_v25, %v4031_v54  ;;  %v4558_v39 = vrot.slane %v4557_v21, 4 }
 0x436   :  { %v3928_v33 = vadd.f32 %v3927_v26, %v10508_v61  ;;  %v4039_v40 = vadd.f32 %v4038_v46, %v3926_v1 }
 0x437   :  { %v4040_v24 = vpop.f32.mrf.mxu1  ;;  %v3931_v16 = vpop.f32.mrf.mxu0  ;;  %v4571_v37 = vrot.slane %v4570_v7, 4  ;;  %v4559_v1 = vmax.f32 %v4557_v21, %v4558_v39 }
 0x438   :  { %6454 = vmatpush1.bf16.msra.mxu0 %v8538_v55  ;;  %v3932_v50 = vadd.f32 %v3931_v16, %v10504_v35  ;;  %v4041_v63 = vadd.f32 %v4040_v24, %v3928_v33  ;;  %v8547_v55 = vld [vmem:[#allocation8 + $0x400] ss:$16 sps:$4 sm:$0xff]   ;;  %v4655_v16 = vmax.f32 %v4035_v31, %v4039_v40 }
 0x439   :  { %v4044_v13 = vpop.f32.mrf.mxu1  ;;  %v3933_v45 = vpop.f32.mrf.mxu0  ;;  %6455 = vmatprep.subr.bf16.mxu0 %v8543_v56  ;;  %v4572_v58 = vmax.f32 %v4570_v7, %v4571_v37  ;;  %v4560_v40 = vrot.slane %v4559_v1, 2  ;;  %v8556_v31 = vld [vmem:[#allocation8 + $0x5a0] ss:$16 sps:$4 sm:$0xff]   ;;  %v8564_v37 = vld [vmem:[#allocation8 + $0x564] ss:$16 sps:$4 sm:$0xff]  }
 0x43a   :  { %v3934_v51 = vadd.f32 %v3933_v45, %v10508_v61  ;;  %v4045_v41 = vadd.f32 %v4044_v13, %v3932_v50  ;;  %v4668_v0 = vmax.f32 %v4037_v2, %v4041_v63 }
 0x43b   :  { %v4046_v23 = vpop.f32.mrf.mxu1  ;;  %v3935_v20 = vpop.f32.mrf.mxu0 }
 0x43c   :  { %6456 = vmatpush1.bf16.msra.mxu0 %v8541_v6  ;;  %v3936_v47 = vadd.f32 %v3935_v20, %v10504_v35  ;;  %v4047_v38 = vadd.f32 %v4046_v23, %v3934_v51  ;;  %v4656_v13 = vmax.f32 %v4655_v16, %v4045_v41 }
 0x43d   :  { %v4048_v27 = vpop.f32.mrf.mxu1  ;;  %v3937_v57 = vpop.f32.mrf.mxu0  ;;  %6457 = vmatprep.subr.bf16.mxu0 %v8546_v43 }
 0x43e   :  { %v3938_v60 = vadd.f32 %v3937_v57, %v10508_v61  ;;  %v4049_v24 = vadd.f32 %v4048_v27, %v3936_v47  ;;  %v4669_v6 = vmax.f32 %v4668_v0, %v4047_v38  ;;  %v4573_v47 = vrot.slane %v4572_v58, 2 }
 0x43f   :  { %v4050_v10 = vpop.f32.mrf.mxu1  ;;  %v3941_v32 = vpop.f32.mrf.mxu0 }
 0x440   :  { %v3942_v14 = vadd.f32 %v3941_v32, %v10504_v35  ;;  %6458 = vmatpush1.bf16.msra.mxu0 %v8544_v49  ;;  %v4051_v19 = vadd.f32 %v4050_v10, %v3938_v60  ;;  %v4657_v23 = vmax.f32 %v4656_v13, %v4049_v24  ;;  %v8553_v49 = vld [vmem:[#allocation8 + $0x5c0] ss:$16 sps:$4 sm:$0xff]   ;;  %v4574_v16 = vmax.f32 %v4572_v58, %v4573_v47 }
 0x441   :  { %v4054_v59 = vpop.f32.mrf.mxu1  ;;  %v3943_v26 = vpop.f32.mrf.mxu0  ;;  %6459 = vmatprep.subr.bf16.mxu0 %v8549_v53 }
 0x442   :  { %v3944_v56 = vadd.f32 %v3943_v26, %v10508_v61  ;;  %v4055_v45 = vadd.f32 %v4054_v59, %v3942_v14  ;;  %v4670_v12 = vmax.f32 %v4669_v6, %v4051_v19  ;;  %v8562_v6 = vld [vmem:[#allocation8 + $0x560] ss:$16 sps:$4 sm:$0xff]  }
 0x443   :  { %v4056_v46 = vpop.f32.mrf.mxu1  ;;  %v3945_v36 = vpop.f32.mrf.mxu0 }
 0x444   :  { %v3946_v15 = vadd.f32 %v3945_v36, %v10504_v35  ;;  %6460 = vmatpush1.bf16.msra.mxu0 %v8547_v55  ;;  %v4057_v20 = vadd.f32 %v4056_v46, %v3944_v56  ;;  %v4658_v27 = vmax.f32 %v4657_v23, %v4055_v45  ;;  %v8561_v55 = vld [vmem:[#allocation8 + $0x584] ss:$16 sps:$4 sm:$0xff]   ;;  %v4575_v45 = vrot.slane %v4574_v16, 1 }
 0x445   :  { %v4058_v30 = vpop.f32.mrf.mxu1  ;;  %v3947_v52 = vpop.f32.mrf.mxu0  ;;  %6461 = vmatprep.subr.bf16.mxu0 %v8552_v42 }
 0x446   :  { %v3948_v17 = vadd.f32 %v3947_v52, %v10508_v61  ;;  %v4059_v43 = vadd.f32 %v4058_v30, %v3946_v15  ;;  %v4671_v51 = vmax.f32 %v4670_v12, %v4057_v20  ;;  %v4576_v58 = vmax.f32 %v4574_v16, %v4575_v45  ;;  %v8582_v45 = vld [vmem:[#allocation8 + $0x6c4] ss:$16 sps:$4 sm:$0xff]  }
 0x447   :  { %v4060_v18 = vpop.f32.mrf.mxu1  ;;  %v3951_v11 = vpop.f32.mrf.mxu0 }
 0x448   :  { %v3952_v22 = vadd.f32 %v3951_v11, %v10504_v35  ;;  %v4061_v57 = vadd.f32 %v4060_v18, %v3948_v17  ;;  %6462 = vmatpush2.bf16.msra.mxu0 %v8550_v44  ;;  %v4659_v10 = vmax.f32 %v4658_v27, %v4059_v43 }
 0x449   :  { %v4064_v54 = vpop.f32.mrf.mxu1  ;;  %v3953_v33 = vpop.f32.mrf.mxu0  ;;  %6463 = vmatprep.subr.bf16.mxu0 %v8555_v29  ;;  %v8567_v29 = vld [vmem:[#allocation8 + $0x544] ss:$16 sps:$4 sm:$0xff]  }
 0x44a   :  { %v4065_v9 = vadd.f32 %v4064_v54, %v3952_v22  ;;  %v3954_v50 = vadd.f32 %v3953_v33, %v10508_v61  ;;  %v4672_v63 = vmax.f32 %v4671_v51, %v4061_v57  ;;  %v8565_v33 = vld [vmem:[#allocation8 + $0x540] ss:$16 sps:$4 sm:$0xff]   ;;  %v4736_v51 = vpack.c.bf16 %v4576_v58, %v4576_v58 }
 0x44b   :  { %v4066_v28 = vpop.f32.mrf.mxu1  ;;  %v3955_v25 = vpop.f32.mrf.mxu0 }
 0x44c   :  { %v4067_v32 = vadd.f32 %v4066_v28, %v3954_v50  ;;  %v3956_v53 = vadd.f32 %v3955_v25, %v10504_v35  ;;  %v4660_v60 = vmax.f32 %v4659_v10, %v4065_v9  ;;  %6464 = vmatpush2.bf16.msra.mxu0 %v8553_v49  ;;  %v4561_v35 = vmax.f32 %v4559_v1, %v4560_v40  ;;  %v8570_v9 = vld [vmem:[#allocation8 + $0x524] ss:$16 sps:$4 sm:$0xff]  }
 0x44d   :  { %v4068_v21 = vpop.f32.mrf.mxu1  ;;  %v3957_v7 = vpop.f32.mrf.mxu0  ;;  %6465 = vmatprep.subr.bf16.mxu0 %v8558_v62 }
 0x44e   :  { %v4069_v59 = vadd.f32 %v4068_v21, %v3956_v53  ;;  %v3958_v26 = vadd.f32 %v3957_v7, %v10508_v61  ;;  %v4673_v2 = vmax.f32 %v4672_v63, %v4067_v32  ;;  %v8559_v61 = vld [vmem:[#allocation8 + $0x580] ss:$16 sps:$4 sm:$0xff]   ;;  %v4562_v30 = vrot.slane %v4561_v35, 1  ;;  %v8573_v21 = vld [vmem:[#allocation8 + $0x504] ss:$16 sps:$4 sm:$0xff]  }
 0x44f   :  { %v4070_v41 = vpop.f32.mrf.mxu1  ;;  %v10578_v14 = vpop.f32.mrf.mxu0  ;;  %v8568_v53 = vld [vmem:[#allocation8 + $0x520] ss:$16 sps:$4 sm:$0xff]  }
 0x450   :  { %v4661_v38 = vmax.f32 %v4660_v60, %v4069_v59  ;;  %v4071_v46 = vadd.f32 %v4070_v41, %v3958_v26  ;;  %6466 = vmatpush2.bf16.msra.mxu0 %v8556_v31  ;;  %v4563_v43 = vmax.f32 %v4561_v35, %v4562_v30  ;;  %v5046_v31 = vunpack.c.l.b16 %v4736_v51  ;;  %v8579_v35 = vld [vmem:[#allocation8 + $0xec] ss:$16 sps:$4 sm:$0xff]  }
 0x451   :  { %v10580_v36 = vpop.f32.mrf.mxu1  ;;  %v10582_v42 = vpop.f32.mrf.mxu0  ;;  %6467 = vmatprep.subr.bf16.mxu0 %v8561_v55  ;;  %v8571_v55 = vld [vmem:[#allocation8 + $0x500] ss:$16 sps:$4 sm:$0xff]  }
 0x452   :  { %v4662_v24 = vrot.slane %v4661_v38, 4  ;;  %v4674_v56 = vmax.f32 %v4673_v2, %v4071_v46  ;;  %v4735_v28 = vpack.c.bf16 %v4563_v43, %v4563_v43  ;;  %v10641_v43 = vld [vmem:[%s10974_s9] sm:$0xff] }
 0x453   :  { %v10584_v15 = vpop.f32.mrf.mxu1  ;;  %v10586_v39 = vpop.f32.mrf.mxu0 }
 0x454   :  { %v4663_v0 = vmax.f32 %v4661_v38, %v4662_v24  ;;  %v4675_v19 = vrot.slane %v4674_v56, 4  ;;  %6468 = vmatpush2.bf16.msra.mxu0 %v8559_v61  ;;  %v5045_v60 = vunpack.c.l.b16 %v4735_v28 }
 0x455   :  { %v10588_v52 = vpop.f32.mrf.mxu1  ;;  %v10590_v13 = vpop.f32.mrf.mxu0  ;;  %6469 = vmatprep.subr.bf16.mxu0 %v8564_v37  ;;  %v8574_v37 = vld [vmem:[#allocation8 + $0x6e0] ss:$16 sps:$4 sm:$0xff]  }
 0x456   :  { %v4664_v17 = vrot.slane %v4663_v0, 2  ;;  %v4676_v44 = vmax.f32 %v4674_v56, %v4675_v19  ;;  %v11254_v19 = vld [vmem:[#allocation16_spill] sm:$0xff] }
 0x457   :  { %v10592_v18 = vpop.f32.mrf.mxu1  ;;  %v10594_v11 = vpop.f32.mrf.mxu0  ;;  %v2319_v30 = vsub.s32 4, %v11254_v19 }
 0x458   :  { %v4665_v23 = vmax.f32 %v4663_v0, %v4664_v17  ;;  %v4677_v20 = vrot.slane %v4676_v44, 2  ;;  %6470 = vmatpush2.bf16.msra.mxu0 %v8562_v6  ;;  %v2323_v17 = vsub.s32 5, %v11254_v19 }
 0x459   :  { %v10596_v22 = vpop.f32.mrf.mxu1  ;;  %v10598_v1 = vpop.f32.mrf.mxu0  ;;  %6471 = vmatprep.subr.bf16.mxu0 %v8567_v29  ;;  %v10644_v58 = vrot.slane %v10641_v43, %v2319_v30 }
 0x45a   :  { %v4666_v12 = vrot.slane %v4665_v23, 1  ;;  %v4678_v54 = vmax.f32 %v4676_v44, %v4677_v20  ;;  %v8580_v20 = vld [vmem:[#allocation8 + $0x6c0] ss:$16 sps:$4 sm:$0xff]  }
 0x45b   :  { %v10600_v27 = vpop.f32.mrf.mxu1  ;;  %v10602_v57 = vpop.f32.mrf.mxu0 }
 0x45c   :  { %v4667_v50 = vmax.f32 %v4665_v23, %v4666_v12  ;;  %v4679_v49 = vrot.slane %v4678_v54, 1  ;;  %6472 = vmatpush2.bf16.msra.mxu0 %v8565_v33  ;;  %v8588_v12 = vld [vmem:[#allocation8 + $0x6a4] ss:$16 sps:$4 sm:$0xff]  }
 0x45d   :  { %v10604_v25 = vpop.f32.mrf.mxu1  ;;  %v10606_v62 = vpop.f32.mrf.mxu0  ;;  %6473 = vmatprep.subr.bf16.mxu0 %v8570_v9 }
 0x45e   :  { %v4743_v10 = vpack.c.bf16 %v4667_v50, %v4667_v50  ;;  %v4680_v32 = vmax.f32 %v4678_v54, %v4679_v49  ;;  %v10647_v54 = vrot.slane %v10641_v43, %v2323_v17  ;;  %v4112_v50 = vadd.f32 %v10586_v39, %v10644_v58 }
 0x45f   :  { %v10608_v40 = vpop.f32.mrf.mxu1  ;;  %v10610_v47 = vpop.f32.mrf.mxu0 }
 0x460   :  { %v5053_v7 = vunpack.c.l.b16 %v4743_v10  ;;  %v4744_v63 = vpack.c.bf16 %v4680_v32, %v4680_v32  ;;  %6474 = vmatpush2.bf16.msra.mxu0 %v8568_v53  ;;  %v4114_v49 = vadd.f32 %v10590_v13, %v10647_v54  ;;  %v8586_v10 = vld [vmem:[#allocation8 + $0x6a0] ss:$16 sps:$4 sm:$0xff]   ;;  %v4108_v32 = vadd.f32 %v10578_v14, %v10644_v58 }
 0x461   :  { %v10612_v59 = vpop.f32.mrf.mxu1  ;;  %v10614_v26 = vpop.f32.mrf.mxu0  ;;  %6475 = vmatprep.subr.bf16.mxu0 %v8573_v21  ;;  %v4118_v53 = vadd.f32 %v10594_v11, %v10644_v58  ;;  %v8594_v21 = vld [vmem:[#allocation8 + $0x684] ss:$16 sps:$4 sm:$0xff]   ;;  %v4120_v39 = vadd.f32 %v10598_v1, %v10647_v54  ;;  %v4124_v11 = vadd.f32 %v10606_v62, %v10647_v54 }
 0x462   :  { %v5054_v41 = vunpack.c.l.b16 %v4744_v63  ;;  %v5061_v2 = vsel %vm1312_vm2, %v5053_v7, %v5045_v60  ;;  %v4110_v7 = vadd.f32 %v10582_v42, %v10647_v54  ;;  %v4225_v60 = vadd.f32 %v10588_v52, %v4112_v50  ;;  %v8592_v42 = vld [vmem:[#allocation8 + $0x680] ss:$16 sps:$4 sm:$0xff]   ;;  %v8606_v50 = vld [vmem:[#allocation8 + $0x644] ss:$16 sps:$4 sm:$0xff]  }
 0x463   :  { %v10617_v38 = vpop.f32.mrf.mxu1  ;;  %v10619_v46 = vpop.f32.mrf.mxu0  ;;  %v10626_v0 = vpack.c.b16 %v5061_v2, %v5061_v2  ;;  %v4227_v14 = vadd.f32 %v10592_v18, %v4114_v49  ;;  %v4221_v1 = vadd.f32 %v10580_v36, %v4108_v32  ;;  %v4231_v2 = vadd.f32 %v10596_v22, %v4118_v53 }
 0x464   :  { %v5062_v16 = vsel %vm1312_vm2, %v5054_v41, %v5046_v31  ;;  %6476 = vmatpush2.bf16.msra.mxu0 %v8571_v55  ;;  %v4122_v31 = vadd.f32 %v10602_v57, %v10644_v58  ;;  %v4128_v52 = vadd.f32 %v10610_v47, %v10644_v58  ;;  %v8600_v57 = vld [vmem:[#allocation8 + $0x664] ss:$16 sps:$4 sm:$0xff]   ;;  %v4223_v18 = vadd.f32 %v10584_v15, %v4110_v7 }
 0x465   :  { %v10622_v24 = vpop.f32.mrf.mxu1  ;;  %v4133_v56 = vpop.f32.mrf.mxu0  ;;  %v10624_v61 = vpack.c.b16 %v5062_v16, %v5062_v16  ;;  %6527 = vmatprep.subr.bf16.mxu0 %v8579_v35  ;;  %v4233_v35 = vadd.f32 %v10600_v27, %v4120_v39  ;;  %v4130_v62 = vadd.f32 %v10614_v26, %v10647_v54  ;;  %v4577_v30 = vmax.f32 %v4221_v1, %v4225_v60  ;;  %v8598_v27 = vld [vmem:[#allocation8 + $0x660] ss:$16 sps:$4 sm:$0xff]  }
 0x466   :  { %v4235_v36 = vadd.f32 %v10604_v25, %v4122_v31  ;;  %v4132_v22 = vadd.f32 %v10619_v46, %v10644_v58  ;;  %v4237_v47 = vadd.f32 %v10608_v40, %v4124_v11  ;;  %v4134_v17 = vadd.f32 %v4133_v56, %v10647_v54 }
 0x467   :  { %v10630_v44 = vpop.f32.mrf.mxu1  ;;  %v10632_v6 = vpop.f32.mrf.mxu0  ;;  %6436 = vmatprep.mubr.bf16.mxu1 %v10624_v61  ;;  %v4241_v26 = vadd.f32 %v10612_v59, %v4128_v52  ;;  %v4243_v25 = vadd.f32 %v10617_v38, %v4130_v62  ;;  %v8604_v38 = vld [vmem:[#allocation8 + $0x640] ss:$16 sps:$4 sm:$0xff]  }
 0x468   :  { %6437 = vmatmul.mubr.bf16.vlgmr.msra.gmra.mxu1 %v10626_v0  ;;  %v4138_v46 = vadd.f32 %v10632_v6, %v10644_v58  ;;  %v4245_v53 = vadd.f32 %v10622_v24, %v4132_v22  ;;  %v4247_v7 = vadd.f32 %v10630_v44, %v4134_v17  ;;  %v8612_v6 = vld [vmem:[#allocation8 + $0x624] ss:$16 sps:$4 sm:$0xff]   ;;  %v8610_v62 = vld [vmem:[#allocation8 + $0x620] ss:$16 sps:$4 sm:$0xff]  }
 0x469   :  { %v10636_v29 = vpop.f32.mrf.mxu1  ;;  %v4139_v23 = vpop.f32.mrf.mxu0  ;;  %6487 = vmatpush1.bf16.msra.mxu1 %v8574_v37 }
 0x46a   :  { %6488 = vmatprep.subr.bf16.mxu1 %v8582_v45  ;;  %v4590_v45 = vmax.f32 %v4223_v18, %v4227_v14  ;;  %v4251_v11 = vadd.f32 %v10636_v29, %v4138_v46 }
 0x46b   :  { %v10649_v33 = vpop.f32.mrf.mxu1  ;;  %v4141_v9 = vpop.f32.mrf.mxu0 }
 0x46c   :  { %v4591_v49 = vmax.f32 %v4590_v45, %v4233_v35  ;;  %v4142_v59 = vadd.f32 %v4141_v9, %v10644_v58 }
 0x46d   :  { %v10655_v28 = vpop.f32.mrf.mxu1  ;;  %v4143_v51 = vpop.f32.mrf.mxu0  ;;  %6489 = vmatpush1.bf16.msra.mxu1 %v8580_v20 }
 0x46e   :  { %6490 = vmatprep.subr.bf16.mxu1 %v8588_v12  ;;  %v4578_v12 = vmax.f32 %v4577_v30, %v4231_v2  ;;  %v4144_v39 = vadd.f32 %v4143_v51, %v10647_v54  ;;  %v4255_v51 = vadd.f32 %v10655_v28, %v4142_v59  ;;  %v8618_v30 = vld [vmem:[#allocation8 + $0x604] ss:$16 sps:$4 sm:$0xff]  }
 0x46f   :  { %v4256_v13 = vpop.f32.mrf.mxu1  ;;  %v10665_v63 = vpop.f32.mrf.mxu0 }
 0x470   :  { %v4579_v56 = vmax.f32 %v4578_v12, %v4235_v36  ;;  %v4257_v52 = vadd.f32 %v4256_v13, %v4144_v39  ;;  %v4148_v29 = vadd.f32 %v10665_v63, %v10644_v58 }
 0x471   :  { %v10673_v41 = vpop.f32.mrf.mxu1  ;;  %v10675_v55 = vpop.f32.mrf.mxu0  ;;  %6491 = vmatpush1.bf16.msra.mxu1 %v8586_v10  ;;  %v4140_v10 = vadd.f32 %v4139_v23, %v10647_v54 }
 0x472   :  { %6492 = vmatprep.subr.bf16.mxu1 %v8594_v21  ;;  %v4592_v21 = vmax.f32 %v4591_v49, %v4237_v47  ;;  %v4580_v14 = vmax.f32 %v4579_v56, %v4241_v26  ;;  %v8616_v49 = vld [vmem:[#allocation8 + $0x600] ss:$16 sps:$4 sm:$0xff]  }
 0x473   :  { %v10685_v16 = vpop.f32.mrf.mxu1  ;;  %v4151_v37 = vpop.f32.mrf.mxu0 }
 0x474   :  { %v4593_v23 = vmax.f32 %v4592_v21, %v4243_v25  ;;  %v4581_v2 = vmax.f32 %v4580_v14, %v4245_v53  ;;  %v4152_v44 = vadd.f32 %v4151_v37, %v10644_v58  ;;  %v4150_v37 = vadd.f32 %v10675_v55, %v10647_v54 }
 0x475   :  { %v4264_v15 = vpop.f32.mrf.mxu1  ;;  %v4153_v20 = vpop.f32.mrf.mxu0  ;;  %6493 = vmatpush1.bf16.msra.mxu1 %v8592_v42  ;;  %v4253_v42 = vadd.f32 %v10649_v33, %v4140_v10  ;;  %v4261_v25 = vadd.f32 %v10673_v41, %v4148_v29  ;;  %v8624_v10 = vld [vmem:[#allocation8 + $0x7e4] ss:$16 sps:$4 sm:$0xff]  }
 0x476   :  { %6494 = vmatprep.subr.bf16.mxu1 %v8600_v57  ;;  %v4594_v9 = vmax.f32 %v4593_v23, %v4247_v7  ;;  %v4154_v57 = vadd.f32 %v4153_v20, %v10647_v54  ;;  %v4582_v36 = vmax.f32 %v4581_v2, %v4251_v11  ;;  %v4265_v47 = vadd.f32 %v4264_v15, %v4152_v44 }
 0x477   :  { %v4266_v40 = vpop.f32.mrf.mxu1  ;;  %v4157_v32 = vpop.f32.mrf.mxu0  ;;  %v4263_v15 = vadd.f32 %v10685_v16, %v4150_v37 }
 0x478   :  { %v4158_v33 = vadd.f32 %v4157_v32, %v10644_v58  ;;  %v4595_v22 = vmax.f32 %v4594_v9, %v4253_v42  ;;  %v4583_v20 = vmax.f32 %v4582_v36, %v4255_v51  ;;  %v4267_v12 = vadd.f32 %v4266_v40, %v4154_v57  ;;  %v8630_v42 = vld [vmem:[#allocation8 + $0x7c4] ss:$16 sps:$4 sm:$0xff]  }
 0x479   :  { %v4270_v60 = vpop.f32.mrf.mxu1  ;;  %v4159_v31 = vpop.f32.mrf.mxu0  ;;  %6495 = vmatpush1.bf16.msra.mxu1 %v8598_v27  ;;  %v4681_v21 = vmax.f32 %v4261_v25, %v4265_v47 }
 0x47a   :  { %6496 = vmatprep.subr.bf16.mxu1 %v8606_v50  ;;  %v4160_v28 = vadd.f32 %v4159_v31, %v10647_v54  ;;  %v4596_v27 = vmax.f32 %v4595_v22, %v4257_v52  ;;  %v4271_v46 = vadd.f32 %v4270_v60, %v4158_v33  ;;  %v4584_v39 = vrot.slane %v4583_v20, 4  ;;  %v8628_v33 = vld [vmem:[#allocation8 + $0x7c0] ss:$16 sps:$4 sm:$0xff]  }
 0x47b   :  { %v4272_v24 = vpop.f32.mrf.mxu1  ;;  %v4161_v1 = vpop.f32.mrf.mxu0 }
 0x47c   :  { %v4162_v17 = vadd.f32 %v4161_v1, %v10644_v58  ;;  %v4273_v32 = vadd.f32 %v4272_v24, %v4160_v28  ;;  %v4597_v31 = vrot.slane %v4596_v27, 4  ;;  %v4682_v23 = vmax.f32 %v4681_v21, %v4271_v46  ;;  %v8636_v28 = vld [vmem:[#allocation8 + $0x7a4] ss:$16 sps:$4 sm:$0xff]  }
 0x47d   :  { %v4274_v18 = vpop.f32.mrf.mxu1  ;;  %v4163_v35 = vpop.f32.mrf.mxu0  ;;  %6497 = vmatpush1.bf16.msra.mxu1 %v8604_v38  ;;  %v4694_v38 = vmax.f32 %v4263_v15, %v4267_v12  ;;  %v4585_v57 = vmax.f32 %v4583_v20, %v4584_v39  ;;  %v8642_v15 = vld [vmem:[#allocation8 + $0x784] ss:$16 sps:$4 sm:$0xff]   ;;  %v8640_v39 = vld [vmem:[#allocation8 + $0x780] ss:$16 sps:$4 sm:$0xff]  }
 0x47e   :  { %6498 = vmatprep.subr.bf16.mxu1 %v8612_v6  ;;  %v4164_v63 = vadd.f32 %v4163_v35, %v10647_v54  ;;  %v4275_v40 = vadd.f32 %v4274_v18, %v4162_v17  ;;  %v8622_v6 = vld [vmem:[#allocation8 + $0x7e0] ss:$16 sps:$4 sm:$0xff]   ;;  %v4598_v18 = vmax.f32 %v4596_v27, %v4597_v31 }
 0x47f   :  { %v4276_v13 = vpop.f32.mrf.mxu1  ;;  %v4167_v45 = vpop.f32.mrf.mxu0  ;;  %v4695_v24 = vmax.f32 %v4694_v38, %v4273_v32  ;;  %v4586_v27 = vrot.slane %v4585_v57, 2 }
 0x480   :  { %v4168_v55 = vadd.f32 %v4167_v45, %v10644_v58  ;;  %v4277_v41 = vadd.f32 %v4276_v13, %v4164_v63  ;;  %v4683_v44 = vmax.f32 %v4682_v23, %v4275_v40  ;;  %v4599_v63 = vrot.slane %v4598_v18, 2 }
 0x481   :  { %v4280_v26 = vpop.f32.mrf.mxu1  ;;  %v4169_v50 = vpop.f32.mrf.mxu0  ;;  %6499 = vmatpush1.bf16.msra.mxu1 %v8610_v62 }
 0x482   :  { %6500 = vmatprep.subr.bf16.mxu1 %v8618_v30  ;;  %v4170_v7 = vadd.f32 %v4169_v50, %v10647_v54  ;;  %v4281_v11 = vadd.f32 %v4280_v26, %v4168_v55  ;;  %v4696_v35 = vmax.f32 %v4695_v24, %v4277_v41  ;;  %v4600_v31 = vmax.f32 %v4598_v18, %v4599_v63  ;;  %v8646_v24 = vld [vmem:[#allocation8 + $0x760] ss:$16 sps:$4 sm:$0xff]  }
 0x483   :  { %v4282_v56 = vpop.f32.mrf.mxu1  ;;  %v4171_v53 = vpop.f32.mrf.mxu0 }
 0x484   :  { %v4172_v59 = vadd.f32 %v4171_v53, %v10644_v58  ;;  %v4283_v9 = vadd.f32 %v4282_v56, %v4170_v7  ;;  %v4684_v30 = vmax.f32 %v4683_v44, %v4281_v11 }
 0x485   :  { %v4284_v60 = vpop.f32.mrf.mxu1  ;;  %v4173_v14 = vpop.f32.mrf.mxu0  ;;  %6501 = vmatpush1.bf16.msra.mxu1 %v8616_v49  ;;  %v8634_v49 = vld [vmem:[#allocation8 + $0x7a0] ss:$16 sps:$4 sm:$0xff]  }
 0x486   :  { %v4174_v16 = vadd.f32 %v4173_v14, %v10647_v54  ;;  %6502 = vmatprep.subr.bf16.mxu1 %v8624_v10  ;;  %v4285_v51 = vadd.f32 %v4284_v60, %v4172_v59  ;;  %v4697_v47 = vmax.f32 %v4696_v35, %v4283_v9  ;;  %v8654_v9 = vld [vmem:[#allocation8 + $0x744] ss:$16 sps:$4 sm:$0xff]  }
 0x487   :  { %v4286_v1 = vpop.f32.mrf.mxu1  ;;  %v4177_v2 = vpop.f32.mrf.mxu0 }
 0x488   :  { %v4178_v52 = vadd.f32 %v4177_v2, %v10644_v58  ;;  %v4287_v36 = vadd.f32 %v4286_v1, %v4174_v16  ;;  %v4685_v17 = vmax.f32 %v4684_v30, %v4285_v51  ;;  %v4601_v1 = vrot.slane %v4600_v31, 1 }
 0x489   :  { %v4290_v62 = vpop.f32.mrf.mxu1  ;;  %v4179_v29 = vpop.f32.mrf.mxu0  ;;  %6503 = vmatpush2.bf16.msra.mxu1 %v8622_v6 }
 0x48a   :  { %v4291_v22 = vadd.f32 %v4290_v62, %v4178_v52  ;;  %v4180_v37 = vadd.f32 %v4179_v29, %v10647_v54  ;;  %6504 = vmatprep.subr.bf16.mxu1 %v8630_v42  ;;  %v4698_v25 = vmax.f32 %v4697_v47, %v4287_v36  ;;  %v4602_v30 = vmax.f32 %v4600_v31, %v4601_v1 }
 0x48b   :  { %v4292_v13 = vpop.f32.mrf.mxu1  ;;  %v4181_v45 = vpop.f32.mrf.mxu0  ;;  %v2327_v1 = vsub.s32 6, %v11254_v19 }
 0x48c   :  { %v4293_v12 = vadd.f32 %v4292_v13, %v4180_v37  ;;  %v4182_v20 = vadd.f32 %v4181_v45, %v10644_v58  ;;  %v4686_v46 = vmax.f32 %v4685_v17, %v4291_v22  ;;  %v4587_v58 = vmax.f32 %v4585_v57, %v4586_v27  ;;  %v8660_v37 = vld [vmem:[#allocation8 + $0x724] ss:$16 sps:$4 sm:$0xff]   ;;  %v8658_v27 = vld [vmem:[#allocation8 + $0x720] ss:$16 sps:$4 sm:$0xff]  }
 0x48d   :  { %v4294_v26 = vpop.f32.mrf.mxu1  ;;  %v4183_v50 = vpop.f32.mrf.mxu0  ;;  %6505 = vmatpush2.bf16.msra.mxu1 %v8628_v33  ;;  %v8652_v33 = vld [vmem:[#allocation8 + $0x740] ss:$16 sps:$4 sm:$0xff]   ;;  %v4738_v63 = vpack.c.bf16 %v4602_v30, %v4602_v30  ;;  %v8583_v30 = vld [vmem:[#allocation8 + $0xc8] ss:$16 sps:$4 sm:$0xff]  }
 0x48e   :  { %v4295_v55 = vadd.f32 %v4294_v26, %v4182_v20  ;;  %v4184_v10 = vadd.f32 %v4183_v50, %v10647_v54  ;;  %6506 = vmatprep.subr.bf16.mxu1 %v8636_v28  ;;  %v4699_v53 = vmax.f32 %v4698_v25, %v4293_v12  ;;  %v8648_v54 = vld [vmem:[#allocation8 + $0x764] ss:$16 sps:$4 sm:$0xff]   ;;  %v4588_v11 = vrot.slane %v4587_v58, 1 }
 0x48f   :  { %v4296_v32 = vpop.f32.mrf.mxu1  ;;  %v10724_v56 = vpop.f32.mrf.mxu0 }
 0x490   :  { %v4687_v21 = vmax.f32 %v4686_v46, %v4295_v55  ;;  %v4297_v40 = vadd.f32 %v4296_v32, %v4184_v10  ;;  %v4589_v35 = vmax.f32 %v4587_v58, %v4588_v11 }
 0x491   :  { %v10726_v7 = vpop.f32.mrf.mxu1  ;;  %v10728_v59 = vpop.f32.mrf.mxu0  ;;  %6507 = vmatpush2.bf16.msra.mxu1 %v8634_v49  ;;  %v8666_v49 = vld [vmem:[#allocation8 + $0x704] ss:$16 sps:$4 sm:$0xff]  }
 0x492   :  { %v4688_v38 = vrot.slane %v4687_v21, 4  ;;  %v4700_v41 = vmax.f32 %v4699_v53, %v4297_v40  ;;  %6508 = vmatprep.subr.bf16.mxu1 %v8642_v15  ;;  %v4737_v17 = vpack.c.bf16 %v4589_v35, %v4589_v35  ;;  %v5048_v40 = vunpack.c.l.b16 %v4738_v63  ;;  %v8589_v63 = vld [vmem:[#allocation8 + $0xa8] ss:$16 sps:$4 sm:$0xff]  }
 0x493   :  { %v10730_v60 = vpop.f32.mrf.mxu1  ;;  %v10732_v14 = vpop.f32.mrf.mxu0 }
 0x494   :  { %v4689_v6 = vmax.f32 %v4687_v21, %v4688_v38  ;;  %v4701_v23 = vrot.slane %v4700_v41, 4  ;;  %v5047_v15 = vunpack.c.l.b16 %v4737_v17  ;;  %v8664_v21 = vld [vmem:[#allocation8 + $0x700] ss:$16 sps:$4 sm:$0xff]  }
 0x495   :  { %v10734_v16 = vpop.f32.mrf.mxu1  ;;  %v10736_v42 = vpop.f32.mrf.mxu0  ;;  %6509 = vmatpush2.bf16.msra.mxu1 %v8640_v39  ;;  %v8672_v39 = vld [vmem:[#allocation8 + $0x2ec] ss:$16 sps:$4 sm:$0xff]  }
 0x496   :  { %v4690_v2 = vrot.slane %v4689_v6, 2  ;;  %v4702_v44 = vmax.f32 %v4700_v41, %v4701_v23  ;;  %6510 = vmatprep.subr.bf16.mxu1 %v8648_v54 }
 0x497   :  { %v10738_v51 = vpop.f32.mrf.mxu1  ;;  %v10740_v52 = vpop.f32.mrf.mxu0 }
 0x498   :  { %v4691_v57 = vmax.f32 %v4689_v6, %v4690_v2  ;;  %v4703_v18 = vrot.slane %v4702_v44, 2 }
 0x499   :  { %v10742_v62 = vpop.f32.mrf.mxu1  ;;  %v10744_v29 = vpop.f32.mrf.mxu0  ;;  %6511 = vmatpush2.bf16.msra.mxu1 %v8646_v24  ;;  %v8577_v24 = vld [vmem:[#allocation8 + $0xe8] ss:$16 sps:$4 sm:$0xff]  }
 0x49a   :  { %v4692_v36 = vrot.slane %v4691_v57, 1  ;;  %v4704_v22 = vmax.f32 %v4702_v44, %v4703_v18  ;;  %6512 = vmatprep.subr.bf16.mxu1 %v8654_v9  ;;  %v8585_v44 = vld [vmem:[#allocation8 + $0xcc] ss:$16 sps:$4 sm:$0xff]   ;;  %v2331_v9 = vsub.s32 7, %v11254_v19 }
 0x49b   :  { %v10746_v28 = vpop.f32.mrf.mxu1  ;;  %v10748_v13 = vpop.f32.mrf.mxu0 }
 0x49c   :  { %v4693_v45 = vmax.f32 %v4691_v57, %v4692_v36  ;;  %v4705_v47 = vrot.slane %v4704_v22, 1  ;;  %v10782_v36 = vrot.slane %v10641_v43, %v2327_v1  ;;  %v10785_v19 = vrot.slane %v10641_v43, %v2331_v9 }
 0x49d   :  { %v10750_v12 = vpop.f32.mrf.mxu1  ;;  %v10752_v20 = vpop.f32.mrf.mxu0  ;;  %6513 = vmatpush2.bf16.msra.mxu1 %v8652_v33 }
 0x49e   :  { %v4745_v26 = vpack.c.bf16 %v4693_v45, %v4693_v45  ;;  %v4706_v50 = vmax.f32 %v4704_v22, %v4705_v47  ;;  %6514 = vmatprep.subr.bf16.mxu1 %v8660_v37  ;;  %v8591_v22 = vld [vmem:[#allocation8 + $0xac] ss:$16 sps:$4 sm:$0xff]   ;;  %v4338_v47 = vadd.f32 %v10732_v14, %v10782_v36  ;;  %v4340_v17 = vadd.f32 %v10736_v42, %v10785_v19 }
 0x49f   :  { %v10754_v25 = vpop.f32.mrf.mxu1  ;;  %v10756_v46 = vpop.f32.mrf.mxu0  ;;  %v4344_v43 = vadd.f32 %v10740_v52, %v10782_v36  ;;  %v4346_v14 = vadd.f32 %v10744_v29, %v10785_v19  ;;  %v4350_v52 = vadd.f32 %v10752_v20, %v10785_v19 }
 0x4a0   :  { %v5055_v55 = vunpack.c.l.b16 %v4745_v26  ;;  %v4746_v10 = vpack.c.bf16 %v4706_v50, %v4706_v50  ;;  %v4334_v26 = vadd.f32 %v10724_v56, %v10782_v36  ;;  %v8597_v50 = vld [vmem:[#allocation8 + $0x8c] ss:$16 sps:$4 sm:$0xff]   ;;  %v4453_v56 = vadd.f32 %v10738_v51, %v4340_v17 }
 0x4a1   :  { %v10758_v32 = vpop.f32.mrf.mxu1  ;;  %v10760_v53 = vpop.f32.mrf.mxu0  ;;  %6515 = vmatpush2.bf16.msra.mxu1 %v8658_v27 }
 0x4a2   :  { %v5056_v58 = vunpack.c.l.b16 %v4746_v10  ;;  %6516 = vmatprep.subr.bf16.mxu1 %v8666_v49  ;;  %v5063_v41 = vsel %vm1312_vm2, %v5055_v55, %v5047_v15  ;;  %v4336_v49 = vadd.f32 %v10728_v59, %v10785_v19  ;;  %v4451_v10 = vadd.f32 %v10734_v16, %v4338_v47 }
 0x4a3   :  { %v10762_v31 = vpop.f32.mrf.mxu1  ;;  %v4357_v38 = vpop.f32.mrf.mxu0  ;;  %v10771_v2 = vpack.c.b16 %v5063_v41, %v5063_v41  ;;  %v4348_v15 = vadd.f32 %v10748_v13, %v10782_v36  ;;  %v4447_v29 = vadd.f32 %v10726_v7, %v4334_v26  ;;  %v4354_v16 = vadd.f32 %v10756_v46, %v10782_v36  ;;  %v8603_v13 = vld [vmem:[#allocation8 + $0x6c] ss:$16 sps:$4 sm:$0xff]  }
 0x4a4   :  { %v5064_v54 = vsel %vm1312_vm2, %v5056_v58, %v5048_v40  ;;  %v8595_v40 = vld [vmem:[#allocation8 + $0x88] ss:$16 sps:$4 sm:$0xff]   ;;  %v4457_v58 = vadd.f32 %v10742_v62, %v4344_v43  ;;  %v4449_v51 = vadd.f32 %v10730_v60, %v4336_v49  ;;  %v4356_v20 = vadd.f32 %v10760_v53, %v10785_v19 }
 0x4a5   :  { %v10766_v6 = vpop.f32.mrf.mxu1  ;;  %v4359_v23 = vpop.f32.mrf.mxu0  ;;  %v10768_v11 = vpack.c.b16 %v5064_v54, %v5064_v54  ;;  %6517 = vmatpush2.bf16.msra.mxu1 %v8664_v21  ;;  %v4461_v7 = vadd.f32 %v10750_v12, %v4348_v15  ;;  %v4358_v62 = vadd.f32 %v4357_v38, %v10782_v36  ;;  %v4463_v46 = vadd.f32 %v10754_v25, %v4350_v52 }
 0x4a6   :  { %6568 = vmatprep.subr.bf16.mxu1 %v8672_v39  ;;  %v4459_v39 = vadd.f32 %v10746_v28, %v4346_v14  ;;  %v4616_v1 = vmax.f32 %v4449_v51, %v4453_v56  ;;  %v8601_v28 = vld [vmem:[#allocation8 + $0x68] ss:$16 sps:$4 sm:$0xff]   ;;  %v4467_v53 = vadd.f32 %v10758_v32, %v4354_v16  ;;  %v4469_v17 = vadd.f32 %v10762_v31, %v4356_v20  ;;  %v8621_v20 = vld [vmem:[#allocation8 + $0xc] ss:$16 sps:$4 sm:$0xff]  }
 0x4a7   :  { %v10774_v57 = vpop.f32.mrf.mxu1  ;;  %v4363_v18 = vpop.f32.mrf.mxu0  ;;  %6477 = vmatprep.mubr.bf16.mxu0 %v10768_v11  ;;  %v8607_v31 = vld [vmem:[#allocation8 + $0x48] ss:$16 sps:$4 sm:$0xff]  }
 0x4a8   :  { %6478 = vmatmul.mubr.bf16.vlgmr.msra.gmra.mxu0 %v10771_v2  ;;  %v4617_v47 = vmax.f32 %v4616_v1, %v4459_v39  ;;  %v4364_v12 = vadd.f32 %v4363_v18, %v10782_v36  ;;  %v8615_v18 = vld [vmem:[#allocation8 + $0x2c] ss:$16 sps:$4 sm:$0xff]   ;;  %v8613_v39 = vld [vmem:[#allocation8 + $0x28] ss:$16 sps:$4 sm:$0xff]  }
 0x4a9   :  { %v10778_v35 = vpop.f32.mrf.mxu1  ;;  %6528 = vmatpush1.bf16.msra.mxu0 %v8577_v24  ;;  %v4365_v33 = vpop.f32.mrf.mxu0  ;;  %6559 = vmatprep.mubr.bf16.mxu0 %v10492_v34  ;;  %v4603_v24 = vmax.f32 %v4447_v29, %v4451_v10 }
 0x4aa   :  { %6529 = vmatprep.subr.bf16.mxu0 %v8585_v44  ;;  %v4360_v44 = vadd.f32 %v4359_v23, %v10785_v19  ;;  %v4366_v38 = vadd.f32 %v4365_v33, %v10785_v19  ;;  %v4471_v23 = vadd.f32 %v10766_v6, %v4358_v62  ;;  %v4618_v43 = vmax.f32 %v4617_v47, %v4463_v46 }
 0x4ab   :  { %v10787_v37 = vpop.f32.mrf.mxu1  ;;  %v4367_v45 = vpop.f32.mrf.mxu0  ;;  %v4477_v56 = vadd.f32 %v10778_v35, %v4364_v12  ;;  %v8627_v12 = vld [vmem:[#allocation8 + $0x1ec] ss:$16 sps:$4 sm:$0xff]  }
 0x4ac   :  { %v4368_v49 = vadd.f32 %v4367_v45, %v10782_v36  ;;  %v4619_v33 = vmax.f32 %v4618_v43, %v4469_v17  ;;  %v4479_v52 = vadd.f32 %v10787_v37, %v4366_v38 }
 0x4ad   :  { %v10793_v27 = vpop.f32.mrf.mxu1  ;;  %6530 = vmatpush1.bf16.msra.mxu0 %v8583_v30  ;;  %v4369_v34 = vpop.f32.mrf.mxu0  ;;  %v4604_v30 = vmax.f32 %v4603_v24, %v4457_v58 }
 0x4ae   :  { %6531 = vmatprep.subr.bf16.mxu0 %v8591_v22  ;;  %v8609_v22 = vld [vmem:[#allocation8 + $0x4c] ss:$16 sps:$4 sm:$0xff]   ;;  %v4370_v32 = vadd.f32 %v4369_v34, %v10785_v19  ;;  %v4481_v34 = vadd.f32 %v10793_v27, %v4368_v49 }
 0x4af   :  { %v4482_v42 = vpop.f32.mrf.mxu1  ;;  %v10803_v55 = vpop.f32.mrf.mxu0  ;;  %v4605_v26 = vmax.f32 %v4604_v30, %v4461_v7 }
 0x4b0   :  { %v4483_v58 = vadd.f32 %v4482_v42, %v4370_v32  ;;  %v4374_v35 = vadd.f32 %v10803_v55, %v10782_v36 }
 0x4b1   :  { %v10811_v21 = vpop.f32.mrf.mxu1  ;;  %6532 = vmatpush1.bf16.msra.mxu0 %v8589_v63  ;;  %v10813_v59 = vpop.f32.mrf.mxu0  ;;  %v4606_v15 = vmax.f32 %v4605_v26, %v4467_v53 }
 0x4b2   :  { %6533 = vmatprep.subr.bf16.mxu0 %v8597_v50  ;;  %v4473_v50 = vadd.f32 %v10774_v57, %v4360_v44  ;;  %v4487_v47 = vadd.f32 %v10811_v21, %v4374_v35  ;;  %v8631_v35 = vld [vmem:[#allocation8 + $0x1c8] ss:$16 sps:$4 sm:$0xff]  }
 0x4b3   :  { %v10823_v41 = vpop.f32.mrf.mxu1  ;;  %v4377_v54 = vpop.f32.mrf.mxu0  ;;  %v4607_v29 = vmax.f32 %v4606_v15, %v4471_v23  ;;  %v8625_v15 = vld [vmem:[#allocation8 + $0x1e8] ss:$16 sps:$4 sm:$0xff]  }
 0x4b4   :  { %v4378_v57 = vadd.f32 %v4377_v54, %v10782_v36  ;;  %v4620_v45 = vmax.f32 %v4619_v33, %v4473_v50  ;;  %v4376_v54 = vadd.f32 %v10813_v59, %v10785_v19 }
 0x4b5   :  { %v4490_v9 = vpop.f32.mrf.mxu1  ;;  %6534 = vmatpush1.bf16.msra.mxu0 %v8595_v40  ;;  %v4379_v60 = vpop.f32.mrf.mxu0  ;;  %v4608_v24 = vmax.f32 %v4607_v29, %v4477_v56  ;;  %v8633_v56 = vld [vmem:[#allocation8 + $0x1cc] ss:$16 sps:$4 sm:$0xff]  }
 0x4b6   :  { %6535 = vmatprep.subr.bf16.mxu0 %v8603_v13  ;;  %v4380_v16 = vadd.f32 %v4379_v60, %v10785_v19  ;;  %v4621_v7 = vmax.f32 %v4620_v45, %v4479_v52  ;;  %v4491_v1 = vadd.f32 %v4490_v9, %v4378_v57  ;;  %v4489_v9 = vadd.f32 %v10823_v41, %v4376_v54  ;;  %v8639_v54 = vld [vmem:[#allocation8 + $0x1ac] ss:$16 sps:$4 sm:$0xff]  }
 0x4b7   :  { %v4492_v63 = vpop.f32.mrf.mxu1  ;;  %v4383_v25 = vpop.f32.mrf.mxu0  ;;  %v4609_v44 = vmax.f32 %v4608_v24, %v4481_v34 }
 0x4b8   :  { %v4384_v37 = vadd.f32 %v4383_v25, %v10782_v36  ;;  %v4622_v60 = vmax.f32 %v4621_v7, %v4483_v58  ;;  %v4707_v23 = vmax.f32 %v4487_v47, %v4491_v1 }
 0x4b9   :  { %v4496_v14 = vpop.f32.mrf.mxu1  ;;  %6536 = vmatpush1.bf16.msra.mxu0 %v8601_v28  ;;  %v4385_v10 = vpop.f32.mrf.mxu0  ;;  %v4493_v28 = vadd.f32 %v4492_v63, %v4380_v16  ;;  %v4610_v49 = vrot.slane %v4609_v44, 4 }
 0x4ba   :  { %6537 = vmatprep.subr.bf16.mxu0 %v8609_v22  ;;  %v4386_v27 = vadd.f32 %v4385_v10, %v10785_v19  ;;  %v8619_v22 = vld [vmem:[#allocation8 + $0x8] ss:$16 sps:$4 sm:$0xff]   ;;  %v4497_v17 = vadd.f32 %v4496_v14, %v4384_v37  ;;  %v4623_v32 = vrot.slane %v4622_v60, 4 }
 0x4bb   :  { %v4498_v6 = vpop.f32.mrf.mxu1  ;;  %v4387_v40 = vpop.f32.mrf.mxu0  ;;  %v4720_v10 = vmax.f32 %v4489_v9, %v4493_v28  ;;  %v4611_v58 = vmax.f32 %v4609_v44, %v4610_v49  ;;  %v8651_v49 = vld [vmem:[#allocation8 + $0x16c] ss:$16 sps:$4 sm:$0xff]  }
 0x4bc   :  { %v4388_v46 = vadd.f32 %v4387_v40, %v10782_v36  ;;  %v4499_v38 = vadd.f32 %v4498_v6, %v4386_v27  ;;  %v4624_v16 = vmax.f32 %v4622_v60, %v4623_v32 }
 0x4bd   :  { %v4500_v13 = vpop.f32.mrf.mxu1  ;;  %6538 = vmatpush1.bf16.msra.mxu0 %v8607_v31  ;;  %v4389_v51 = vpop.f32.mrf.mxu0  ;;  %v4612_v60 = vrot.slane %v4611_v58, 2 }
 0x4be   :  { %6539 = vmatprep.subr.bf16.mxu0 %v8615_v18  ;;  %v4390_v55 = vadd.f32 %v4389_v51, %v10785_v19  ;;  %v4501_v63 = vadd.f32 %v4500_v13, %v4388_v46  ;;  %v4708_v18 = vmax.f32 %v4707_v23, %v4497_v17  ;;  %v4721_v52 = vmax.f32 %v4720_v10, %v4499_v38 }
 0x4bf   :  { %v4502_v42 = vpop.f32.mrf.mxu1  ;;  %v4393_v62 = vpop.f32.mrf.mxu0  ;;  %v4625_v28 = vrot.slane %v4624_v16, 2  ;;  %v4613_v23 = vmax.f32 %v4611_v58, %v4612_v60  ;;  %v8673_v60 = vld [vmem:[#allocation8 + $0x4e8] ss:$16 sps:$4 sm:$0xff]  }
 0x4c0   :  { %v4394_v59 = vadd.f32 %v4393_v62, %v10782_v36  ;;  %v4503_v21 = vadd.f32 %v4502_v42, %v4390_v55  ;;  %v4709_v29 = vmax.f32 %v4708_v18, %v4501_v63  ;;  %v8657_v18 = vld [vmem:[#allocation8 + $0x14c] ss:$16 sps:$4 sm:$0xff]  }
 0x4c1   :  { %v4506_v30 = vpop.f32.mrf.mxu1  ;;  %6540 = vmatpush1.bf16.msra.mxu0 %v8613_v39  ;;  %v4395_v53 = vpop.f32.mrf.mxu0  ;;  %v4626_v63 = vmax.f32 %v4624_v16, %v4625_v28  ;;  %v8661_v16 = vld [vmem:[#allocation8 + $0x128] ss:$16 sps:$4 sm:$0xff]  }
 0x4c2   :  { %6541 = vmatprep.subr.bf16.mxu0 %v8621_v20  ;;  %v4396_v43 = vadd.f32 %v4395_v53, %v10785_v19  ;;  %v4507_v33 = vadd.f32 %v4506_v30, %v4394_v59  ;;  %v4722_v13 = vmax.f32 %v4721_v52, %v4503_v21  ;;  %v8637_v53 = vld [vmem:[#allocation8 + $0x1a8] ss:$16 sps:$4 sm:$0xff]   ;;  %v4614_v21 = vrot.slane %v4613_v23, 1 }
 0x4c3   :  { %v4508_v25 = vpop.f32.mrf.mxu1  ;;  %v4397_v26 = vpop.f32.mrf.mxu0  ;;  %v8655_v52 = vld [vmem:[#allocation8 + $0x148] ss:$16 sps:$4 sm:$0xff]  }
 0x4c4   :  { %v4398_v50 = vadd.f32 %v4397_v26, %v10782_v36  ;;  %v4509_v57 = vadd.f32 %v4508_v25, %v4396_v43  ;;  %v4710_v37 = vmax.f32 %v4709_v29, %v4507_v33 }
 0x4c5   :  { %v4510_v14 = vpop.f32.mrf.mxu1  ;;  %6542 = vmatpush1.bf16.msra.mxu0 %v8619_v22  ;;  %v4399_v31 = vpop.f32.mrf.mxu0 }
 0x4c6   :  { %v4400_v41 = vadd.f32 %v4399_v31, %v10785_v19  ;;  %6543 = vmatprep.subr.bf16.mxu0 %v8627_v12  ;;  %v4511_v45 = vadd.f32 %v4510_v14, %v4398_v50  ;;  %v4723_v62 = vmax.f32 %v4722_v13, %v4509_v57  ;;  %v8645_v12 = vld [vmem:[#allocation8 + $0x18c] ss:$16 sps:$4 sm:$0xff]   ;;  %v8649_v14 = vld [vmem:[#allocation8 + $0x168] ss:$16 sps:$4 sm:$0xff]  }
 0x4c7   :  { %v4512_v6 = vpop.f32.mrf.mxu1  ;;  %v4403_v40 = vpop.f32.mrf.mxu0  ;;  %v8663_v57 = vld [vmem:[#allocation8 + $0x12c] ss:$16 sps:$4 sm:$0xff]  }
 0x4c8   :  { %v4404_v34 = vadd.f32 %v4403_v40, %v10782_v36  ;;  %v4513_v20 = vadd.f32 %v4512_v6, %v4400_v41  ;;  %v4711_v1 = vmax.f32 %v4710_v37, %v4511_v45 }
 0x4c9   :  { %v4516_v51 = vpop.f32.mrf.mxu1  ;;  %6544 = vmatpush2.bf16.msra.mxu0 %v8625_v15  ;;  %v4405_v39 = vpop.f32.mrf.mxu0 }
 0x4ca   :  { %v4517_v24 = vadd.f32 %v4516_v51, %v4404_v34  ;;  %v4406_v7 = vadd.f32 %v4405_v39, %v10785_v19  ;;  %6545 = vmatprep.subr.bf16.mxu0 %v8633_v56  ;;  %v4724_v22 = vmax.f32 %v4723_v62, %v4513_v20  ;;  %v4615_v56 = vmax.f32 %v4613_v23, %v4614_v21  ;;  %v8703_v21 = vld [vmem:[#allocation8 + $0x448] ss:$16 sps:$4 sm:$0xff]  }
 0x4cb   :  { %v4518_v27 = vpop.f32.mrf.mxu1  ;;  %v4407_v42 = vpop.f32.mrf.mxu0 }
 0x4cc   :  { %v4519_v46 = vadd.f32 %v4518_v27, %v4406_v7  ;;  %v4408_v44 = vadd.f32 %v4407_v42, %v10782_v36  ;;  %v4712_v47 = vmax.f32 %v4711_v1, %v4517_v24  ;;  %v8643_v36 = vld [vmem:[#allocation8 + $0x188] ss:$16 sps:$4 sm:$0xff]   ;;  %v4739_v58 = vpack.c.bf16 %v4615_v56, %v4615_v56  ;;  %v8675_v42 = vld [vmem:[#allocation8 + $0x4ec] ss:$16 sps:$4 sm:$0xff]  }
 0x4cd   :  { %v4520_v55 = vpop.f32.mrf.mxu1  ;;  %6546 = vmatpush2.bf16.msra.mxu0 %v8631_v35  ;;  %v4409_v30 = vpop.f32.mrf.mxu0  ;;  %v8669_v35 = vld [vmem:[#allocation8 + $0x10c] ss:$16 sps:$4 sm:$0xff]   ;;  %v8667_v7 = vld [vmem:[#allocation8 + $0x108] ss:$16 sps:$4 sm:$0xff]  }
 0x4ce   :  { %v4521_v17 = vadd.f32 %v4520_v55, %v4408_v44  ;;  %v4410_v59 = vadd.f32 %v4409_v30, %v10785_v19  ;;  %6547 = vmatprep.subr.bf16.mxu0 %v8639_v54  ;;  %v4725_v38 = vmax.f32 %v4724_v22, %v4519_v46  ;;  %v4627_v19 = vrot.slane %v4626_v63, 1  ;;  %v8670_v44 = vld [vmem:[#allocation8 + $0x2e8] ss:$16 sps:$4 sm:$0xff]   ;;  %v8678_v55 = vld [vmem:[#allocation8 + $0x2cc] ss:$16 sps:$4 sm:$0xff]  }
 0x4cf   :  { %v4522_v9 = vpop.f32.mrf.mxu1  ;;  %v5049_v24 = vunpack.c.l.b16 %v4739_v58  ;;  %v8681_v30 = vld [vmem:[#allocation8 + $0x4cc] ss:$16 sps:$4 sm:$0xff]   ;;  %v8676_v22 = vld [vmem:[#allocation8 + $0x2c8] ss:$16 sps:$4 sm:$0xff]  }
 0x4d0   :  { %v4713_v25 = vmax.f32 %v4712_v47, %v4521_v17  ;;  %v4523_v26 = vadd.f32 %v4522_v9, %v4410_v59  ;;  %v4628_v6 = vmax.f32 %v4626_v63, %v4627_v19  ;;  %v8679_v47 = vld [vmem:[#allocation8 + $0x4c8] ss:$16 sps:$4 sm:$0xff]   ;;  %v8684_v17 = vld [vmem:[#allocation8 + $0x2ac] ss:$16 sps:$4 sm:$0xff]  }
 0x4d1   :  { %6548 = vmatpush2.bf16.msra.mxu0 %v8637_v53  ;;  %v8687_v59 = vld [vmem:[#allocation8 + $0x4ac] ss:$16 sps:$4 sm:$0xff]   ;;  %v8715_v56 = vld [vmem:[#allocation8 + $0x408] ss:$16 sps:$4 sm:$0xff]  }
 0x4d2   :  { %v4714_v43 = vrot.slane %v4713_v25, 4  ;;  %v4726_v50 = vmax.f32 %v4725_v38, %v4523_v26  ;;  %6549 = vmatprep.subr.bf16.mxu0 %v8645_v12  ;;  %v4740_v13 = vpack.c.bf16 %v4628_v6, %v4628_v6  ;;  %v8685_v38 = vld [vmem:[#allocation8 + $0x4a8] ss:$16 sps:$4 sm:$0xff]   ;;  %v8693_v26 = vld [vmem:[#allocation8 + $0x48c] ss:$16 sps:$4 sm:$0xff]  }
 0x4d3   :  { %v8699_v63 = vld [vmem:[#allocation8 + $0x46c] ss:$16 sps:$4 sm:$0xff]   ;;  %v8727_v58 = vld [vmem:[#allocation8 + $0x5c8] ss:$16 sps:$4 sm:$0xff]  }
 0x4d4   :  { %v4715_v32 = vmax.f32 %v4713_v25, %v4714_v43  ;;  %v4727_v10 = vrot.slane %v4726_v50, 4  ;;  %v5050_v54 = vunpack.c.l.b16 %v4740_v13  ;;  %v8690_v25 = vld [vmem:[#allocation8 + $0x28c] ss:$16 sps:$4 sm:$0xff]   ;;  %v8694_v43 = vld [vmem:[#allocation8 + $0x268] ss:$16 sps:$4 sm:$0xff]  }
 0x4d5   :  { %6550 = vmatpush2.bf16.msra.mxu0 %v8643_v36  ;;  %v8696_v36 = vld [vmem:[#allocation8 + $0x26c] ss:$16 sps:$4 sm:$0xff]  }
 0x4d6   :  { %v4716_v31 = vrot.slane %v4715_v32, 2  ;;  %v4728_v15 = vmax.f32 %v4726_v50, %v4727_v10  ;;  %6551 = vmatprep.subr.bf16.mxu0 %v8651_v49  ;;  %v8697_v50 = vld [vmem:[#allocation8 + $0x468] ss:$16 sps:$4 sm:$0xff]   ;;  %v8702_v49 = vld [vmem:[#allocation8 + $0x24c] ss:$16 sps:$4 sm:$0xff]  }
 0x4d7   :  { %v8700_v10 = vld [vmem:[#allocation8 + $0x248] ss:$16 sps:$4 sm:$0xff]   ;;  %v8711_v19 = vld [vmem:[#allocation8 + $0x42c] ss:$16 sps:$4 sm:$0xff]  }
 0x4d8   :  { %v4717_v33 = vmax.f32 %v4715_v32, %v4716_v31  ;;  %v4729_v41 = vrot.slane %v4728_v15, 2  ;;  %v8705_v32 = vld [vmem:[#allocation8 + $0x44c] ss:$16 sps:$4 sm:$0xff]   ;;  %v8706_v31 = vld [vmem:[#allocation8 + $0x228] ss:$16 sps:$4 sm:$0xff]  }
 0x4d9   :  { %6552 = vmatpush2.bf16.msra.mxu0 %v8649_v14  ;;  %v8708_v14 = vld [vmem:[#allocation8 + $0x22c] ss:$16 sps:$4 sm:$0xff]  }
 0x4da   :  { %v4718_v40 = vrot.slane %v4717_v33, 1  ;;  %v4730_v29 = vmax.f32 %v4728_v15, %v4729_v41  ;;  %6553 = vmatprep.subr.bf16.mxu0 %v8657_v18  ;;  %v8709_v15 = vld [vmem:[#allocation8 + $0x428] ss:$16 sps:$4 sm:$0xff]   ;;  %v8714_v18 = vld [vmem:[#allocation8 + $0x20c] ss:$16 sps:$4 sm:$0xff]  }
 0x4db   :  { %v8712_v41 = vld [vmem:[#allocation8 + $0x208] ss:$16 sps:$4 sm:$0xff]   ;;  %v8723_v6 = vld [vmem:[#allocation8 + $0x5ec] ss:$16 sps:$4 sm:$0xff]  }
 0x4dc   :  { %v4719_v45 = vmax.f32 %v4717_v33, %v4718_v40  ;;  %v4731_v34 = vrot.slane %v4730_v29, 1  ;;  %v8717_v33 = vld [vmem:[#allocation8 + $0x40c] ss:$16 sps:$4 sm:$0xff]   ;;  %v8718_v40 = vld [vmem:[#allocation8 + $0x3e8] ss:$16 sps:$4 sm:$0xff]  }
 0x4dd   :  { %6554 = vmatpush2.bf16.msra.mxu0 %v8655_v52  ;;  %v8720_v52 = vld [vmem:[#allocation8 + $0x3ec] ss:$16 sps:$4 sm:$0xff]  }
 0x4de   :  { %v4747_v51 = vpack.c.bf16 %v4719_v45, %v4719_v45  ;;  %v4732_v39 = vmax.f32 %v4730_v29, %v4731_v34  ;;  %6555 = vmatprep.subr.bf16.mxu0 %v8663_v57  ;;  %v8721_v29 = vld [vmem:[#allocation8 + $0x5e8] ss:$16 sps:$4 sm:$0xff]   ;;  %v8726_v57 = vld [vmem:[#allocation8 + $0x3cc] ss:$16 sps:$4 sm:$0xff]  }
 0x4df   :  { %v8729_v45 = vld [vmem:[#allocation8 + $0x5cc] ss:$16 sps:$4 sm:$0xff]   ;;  %v8724_v34 = vld [vmem:[#allocation8 + $0x3c8] ss:$16 sps:$4 sm:$0xff]  }
 0x4e0   :  { %v5057_v37 = vunpack.c.l.b16 %v4747_v51  ;;  %v4748_v20 = vpack.c.bf16 %v4732_v39, %v4732_v39  ;;  %v8735_v13 = vld [vmem:[#allocation8 + $0x5ac] ss:$16 sps:$4 sm:$0xff]   ;;  %v8730_v51 = vld [vmem:[#allocation8 + $0x3a8] ss:$16 sps:$4 sm:$0xff]  }
 0x4e1   :  { %6556 = vmatpush2.bf16.msra.mxu0 %v8661_v16  ;;  %v8732_v16 = vld [vmem:[#allocation8 + $0x3ac] ss:$16 sps:$4 sm:$0xff]   ;;  %v8733_v39 = vld [vmem:[#allocation8 + $0x5a8] ss:$16 sps:$4 sm:$0xff]  }
 0x4e2   :  { %6557 = vmatprep.subr.bf16.mxu0 %v8669_v35  ;;  %v5058_v27 = vunpack.c.l.b16 %v4748_v20  ;;  %v5065_v62 = vsel %vm1312_vm2, %v5057_v37, %v5049_v24  ;;  %v8738_v35 = vld [vmem:[#allocation8 + $0x38c] ss:$16 sps:$4 sm:$0xff]   ;;  %v8736_v20 = vld [vmem:[#allocation8 + $0x388] ss:$16 sps:$4 sm:$0xff]  }
 0x4e3   :  { %v10864_v28 = vpack.c.b16 %v5065_v62, %v5065_v62  ;;  %v8741_v37 = vld [vmem:[#allocation8 + $0x58c] ss:$16 sps:$4 sm:$0xff]   ;;  %v8739_v24 = vld [vmem:[#allocation8 + $0x588] ss:$16 sps:$4 sm:$0xff]  }
 0x4e4   :  { %v5066_v1 = vsel %vm1312_vm2, %v5058_v27, %v5050_v54  ;;  %v8747_v54 = vld [vmem:[#allocation8 + $0x56c] ss:$16 sps:$4 sm:$0xff]   ;;  %v8742_v27 = vld [vmem:[#allocation8 + $0x368] ss:$16 sps:$4 sm:$0xff]  }
 0x4e5   :  { %6558 = vmatpush2.bf16.msra.mxu0 %v8667_v7  ;;  %v10862_v46 = vpack.c.b16 %v5066_v1, %v5066_v1  ;;  %v8744_v7 = vld [vmem:[#allocation8 + $0x36c] ss:$16 sps:$4 sm:$0xff]  }
 0x4e6   :  { %6609 = vmatprep.subr.bf16.mxu0 %v8675_v42  ;;  %v8745_v42 = vld [vmem:[#allocation8 + $0x568] ss:$16 sps:$4 sm:$0xff]   ;;  %v8750_v62 = vld [vmem:[#allocation8 + $0x34c] ss:$16 sps:$4 sm:$0xff]  }
 0x4e7   :  { %6518 = vmatprep.mubr.bf16.mxu1 %v10862_v46  ;;  %v10869_v53 = vpop.f32.mrf.mxu0  ;;  %v8753_v1 = vld [vmem:[#allocation8 + $0x54c] ss:$16 sps:$4 sm:$0xff]  }
 0x4e8   :  { %6560 = vmatmul.mubr.bf16.vlgmr.msra.gmra.mxu0 %v10494_v48  ;;  %6519 = vmatmul.mubr.bf16.vlgmr.msra.gmra.mxu1 %v10864_v28  ;;  %v8682_v48 = vld [vmem:[#allocation8 + $0x2a8] ss:$16 sps:$4 sm:$0xff]  }
 0x4e9   :  { %6569 = vmatpush1.bf16.msra.mxu1 %v8670_v44  ;;  %6610 = vmatpush1.bf16.msra.mxu0 %v8673_v60  ;;  %v10873_v12 = vpop.f32.mrf.mxu0  ;;  %v8748_v44 = vld [vmem:[#allocation8 + $0x348] ss:$16 sps:$4 sm:$0xff]  }
 0x4ea   :  { %6641 = vmatprep.mubr.bf16.mxu0 %v10768_v11  ;;  %6600 = vmatprep.mubr.bf16.mxu1 %v10624_v61  ;;  %v8688_v11 = vld [vmem:[#allocation8 + $0x288] ss:$16 sps:$4 sm:$0xff]  }
 0x4eb   :  { %6570 = vmatprep.subr.bf16.mxu1 %v8678_v55  ;;  %6611 = vmatprep.subr.bf16.mxu0 %v8681_v30  ;;  %v6401_v9 = vpop.f32.mrf.mxu0  ;;  %v8691_v61 = vld [vmem:[#allocation8 + $0x488] ss:$16 sps:$4 sm:$0xff]   ;;  %v8756_v55 = vld [vmem:[#allocation8 + $0x32c] ss:$16 sps:$4 sm:$0xff]  }
 0x4ec   :  { %v8751_v60 = vld [vmem:[#allocation8 + $0x548] ss:$16 sps:$4 sm:$0xff]   ;;  %v8759_v30 = vld [vmem:[#allocation8 + $0x52c] ss:$16 sps:$4 sm:$0xff]   ;;  %v10878_v9 = vld [vmem:[%s10976_s11] sm:$0xf] }
 0x4ed   :  { %6571 = vmatpush1.bf16.msra.mxu1 %v8676_v22  ;;  %6612 = vmatpush1.bf16.msra.mxu0 %v8679_v47  ;;  %v6402_v23 = vpop.f32.mrf.mxu0  ;;  %v8754_v22 = vld [vmem:[#allocation8 + $0x328] ss:$16 sps:$4 sm:$0xff]  }
 0x4ee   :  { %6572 = vmatprep.subr.bf16.mxu1 %v8684_v17  ;;  %6613 = vmatprep.subr.bf16.mxu0 %v8687_v59  ;;  %v8757_v47 = vld [vmem:[#allocation8 + $0x528] ss:$16 sps:$4 sm:$0xff]   ;;  %v8762_v17 = vld [vmem:[#allocation8 + $0x30c] ss:$16 sps:$4 sm:$0xff]   ;;  %v5010_v23 = vrot.slane %v10878_v9, %v11250_v4 }
 0x4ef   :  { %v8765_v59 = vld [vmem:[#allocation8 + $0x50c] ss:$16 sps:$4 sm:$0xff]  }
 0x4f1   :  { %6573 = vmatpush1.bf16.msra.mxu1 %v8682_v48  ;;  %6614 = vmatpush1.bf16.msra.mxu0 %v8685_v38  ;;  %v8760_v48 = vld [vmem:[#allocation8 + $0x308] ss:$16 sps:$4 sm:$0xff]  }
 0x4f2   :  { %6574 = vmatprep.subr.bf16.mxu1 %v8690_v25  ;;  %6615 = vmatprep.subr.bf16.mxu0 %v8693_v26  ;;  %v8763_v38 = vld [vmem:[#allocation8 + $0x508] ss:$16 sps:$4 sm:$0xff]   ;;  %v8768_v25 = vld [vmem:[#allocation8 + $0x6ec] ss:$16 sps:$4 sm:$0xff]  }
 0x4f3   :  { %v8816_v26 = vld [vmem:[#allocation10 + $0x74] ss:$8 sps:$4 sm:$0xff]  }
 0x4f5   :  { %6575 = vmatpush1.bf16.msra.mxu1 %v8688_v11  ;;  %6616 = vmatpush1.bf16.msra.mxu0 %v8691_v61  ;;  %v5014_v11 = vrot.slane %v10878_v9, %v11251_v8  ;;  %v8766_v61 = vld [vmem:[#allocation8 + $0x6e8] ss:$16 sps:$4 sm:$0xff]  }
 0x4f6   :  { %6576 = vmatprep.subr.bf16.mxu1 %v8696_v36  ;;  %6617 = vmatprep.subr.bf16.mxu0 %v8699_v63  ;;  %v8771_v36 = vld [vmem:[#allocation8 + $0x6cc] ss:$16 sps:$4 sm:$0xff]   ;;  %v8814_v63 = vld [vmem:[#allocation10 + $0x70] ss:$8 sps:$4 sm:$0xff]  }
 0x4f9   :  { %6577 = vmatpush1.bf16.msra.mxu1 %v8694_v43  ;;  %6618 = vmatpush1.bf16.msra.mxu0 %v8697_v50  ;;  %v6398_v43 = vadd.f32 %v10869_v53, %v5010_v23  ;;  %v8819_v50 = vld [vmem:[#allocation10 + $0x64] ss:$8 sps:$4 sm:$0xff]   ;;  %v8802_v23 = vld [vmem:[#allocation8 + $0x768] ss:$16 sps:$4 sm:$0xff]  }
 0x4fa   :  { %6578 = vmatprep.subr.bf16.mxu1 %v8702_v49  ;;  %6619 = vmatprep.subr.bf16.mxu0 %v8705_v32  ;;  %v6400_v32 = vadd.f32 %v10873_v12, %v5014_v11  ;;  %v8777_v12 = vld [vmem:[#allocation8 + $0x68c] ss:$16 sps:$4 sm:$0xff]  }
 0x4fb   :  { %v8807_v11 = vld [vmem:[#allocation8 + $0x74c] ss:$16 sps:$4 sm:$0xff]  }
 0x4fd   :  { %6579 = vmatpush1.bf16.msra.mxu1 %v8700_v10  ;;  %6620 = vmatpush1.bf16.msra.mxu0 %v8703_v21  ;;  %v8769_v21 = vld [vmem:[#allocation8 + $0x6c8] ss:$16 sps:$4 sm:$0xff]  }
 0x4fe   :  { %6580 = vmatprep.subr.bf16.mxu1 %v8708_v14  ;;  %6621 = vmatprep.subr.bf16.mxu0 %v8711_v19  ;;  %v8774_v19 = vld [vmem:[#allocation8 + $0x6ac] ss:$16 sps:$4 sm:$0xff]  }
 0x501   :  { %6581 = vmatpush1.bf16.msra.mxu1 %v8706_v31  ;;  %6622 = vmatpush1.bf16.msra.mxu0 %v8709_v15  ;;  %v8817_v31 = vld [vmem:[#allocation10 + $0x60] ss:$8 sps:$4 sm:$0xff]  }
 0x502   :  { %6582 = vmatprep.subr.bf16.mxu1 %v8714_v18  ;;  %6623 = vmatprep.subr.bf16.mxu0 %v8717_v33  ;;  %v8820_v33 = vld [vmem:[#allocation10 + $0x50] ss:$8 sps:$4 sm:$0xff]  }
 0x505   :  { %6583 = vmatpush1.bf16.msra.mxu1 %v8712_v41  ;;  %6624 = vmatpush1.bf16.msra.mxu0 %v8715_v56  ;;  %v8775_v41 = vld [vmem:[#allocation8 + $0x688] ss:$16 sps:$4 sm:$0xff]   ;;  %v8780_v56 = vld [vmem:[#allocation8 + $0x66c] ss:$16 sps:$4 sm:$0xff]  }
 0x506   :  { %6584 = vmatprep.subr.bf16.mxu1 %v8720_v52  ;;  %6625 = vmatprep.subr.bf16.mxu0 %v8723_v6  ;;  %v8823_v52 = vld [vmem:[#allocation10 + $0x40] ss:$8 sps:$4 sm:$0xff]   ;;  %v8828_v6 = vld [vmem:[#allocation10 + $0x34] ss:$8 sps:$4 sm:$0xff]  }
 0x509   :  { %6585 = vmatpush2.bf16.msra.mxu1 %v8718_v40  ;;  %6626 = vmatpush2.bf16.msra.mxu0 %v8721_v29  ;;  %v8778_v40 = vld [vmem:[#allocation8 + $0x668] ss:$16 sps:$4 sm:$0xff]   ;;  %v8783_v29 = vld [vmem:[#allocation8 + $0x64c] ss:$16 sps:$4 sm:$0xff]  }
 0x50a   :  { %6586 = vmatprep.subr.bf16.mxu1 %v8726_v57  ;;  %6627 = vmatprep.subr.bf16.mxu0 %v8729_v45  ;;  %v8826_v57 = vld [vmem:[#allocation10 + $0x30] ss:$8 sps:$4 sm:$0xff]   ;;  %v8831_v45 = vld [vmem:[#allocation10 + $0x24] ss:$8 sps:$4 sm:$0xff]  }
 0x50d   :  { %6587 = vmatpush2.bf16.msra.mxu1 %v8724_v34  ;;  %6628 = vmatpush2.bf16.msra.mxu0 %v8727_v58  ;;  %v8781_v34 = vld [vmem:[#allocation8 + $0x648] ss:$16 sps:$4 sm:$0xff]   ;;  %v8786_v58 = vld [vmem:[#allocation8 + $0x62c] ss:$16 sps:$4 sm:$0xff]  }
 0x50e   :  { %6588 = vmatprep.subr.bf16.mxu1 %v8732_v16  ;;  %6629 = vmatprep.subr.bf16.mxu0 %v8735_v13  ;;  %v8829_v16 = vld [vmem:[#allocation10 + $0x20] ss:$8 sps:$4 sm:$0xff]   ;;  %v8834_v13 = vld [vmem:[#allocation10 + $0x14] ss:$8 sps:$4 sm:$0xff]  }
 0x511   :  { %6589 = vmatpush2.bf16.msra.mxu1 %v8730_v51  ;;  %6630 = vmatpush2.bf16.msra.mxu0 %v8733_v39  ;;  %v8784_v51 = vld [vmem:[#allocation8 + $0x628] ss:$16 sps:$4 sm:$0xff]   ;;  %v8789_v39 = vld [vmem:[#allocation8 + $0x60c] ss:$16 sps:$4 sm:$0xff]  }
 0x512   :  { %6590 = vmatprep.subr.bf16.mxu1 %v8738_v35  ;;  %6631 = vmatprep.subr.bf16.mxu0 %v8741_v37  ;;  %v8832_v35 = vld [vmem:[#allocation10 + $0x10] ss:$8 sps:$4 sm:$0xff]   ;;  %v8837_v37 = vld [vmem:[#allocation10 + $0x4] ss:$8 sps:$4 sm:$0xff]  }
 0x515   :  { %6591 = vmatpush2.bf16.msra.mxu1 %v8736_v20  ;;  %6632 = vmatpush2.bf16.msra.mxu0 %v8739_v24  ;;  %v8787_v20 = vld [vmem:[#allocation8 + $0x608] ss:$16 sps:$4 sm:$0xff]   ;;  %v8792_v24 = vld [vmem:[#allocation8 + $0x7ec] ss:$16 sps:$4 sm:$0xff]  }
 0x516   :  { %6592 = vmatprep.subr.bf16.mxu1 %v8744_v7  ;;  %6633 = vmatprep.subr.bf16.mxu0 %v8747_v54  ;;  %v8835_v7 = vld [vmem:[#allocation10] ss:$8 sps:$4 sm:$0xff]   ;;  %v8840_v54 = vld [vmem:[#allocation10 + $0xf4] ss:$8 sps:$4 sm:$0xff]  }
 0x519   :  { %6593 = vmatpush2.bf16.msra.mxu1 %v8742_v27  ;;  %6634 = vmatpush2.bf16.msra.mxu0 %v8745_v42  ;;  %v8790_v27 = vld [vmem:[#allocation8 + $0x7e8] ss:$16 sps:$4 sm:$0xff]   ;;  %v8795_v42 = vld [vmem:[#allocation8 + $0x7cc] ss:$16 sps:$4 sm:$0xff]  }
 0x51a   :  { %6594 = vmatprep.subr.bf16.mxu1 %v8750_v62  ;;  %6635 = vmatprep.subr.bf16.mxu0 %v8753_v1  ;;  %v8838_v62 = vld [vmem:[#allocation10 + $0xf0] ss:$8 sps:$4 sm:$0xff]   ;;  %v8843_v1 = vld [vmem:[#allocation10 + $0xe4] ss:$8 sps:$4 sm:$0xff]  }
 0x51d   :  { %6595 = vmatpush2.bf16.msra.mxu1 %v8748_v44  ;;  %6636 = vmatpush2.bf16.msra.mxu0 %v8751_v60  ;;  %v8793_v44 = vld [vmem:[#allocation8 + $0x7c8] ss:$16 sps:$4 sm:$0xff]   ;;  %v8798_v60 = vld [vmem:[#allocation8 + $0x7ac] ss:$16 sps:$4 sm:$0xff]  }
 0x51e   :  { %6596 = vmatprep.subr.bf16.mxu1 %v8756_v55  ;;  %6637 = vmatprep.subr.bf16.mxu0 %v8759_v30  ;;  %v8841_v55 = vld [vmem:[#allocation10 + $0xe0] ss:$8 sps:$4 sm:$0xff]   ;;  %v8846_v30 = vld [vmem:[#allocation10 + $0xd4] ss:$8 sps:$4 sm:$0xff]  }
 0x521   :  { %6597 = vmatpush2.bf16.msra.mxu1 %v8754_v22  ;;  %6638 = vmatpush2.bf16.msra.mxu0 %v8757_v47  ;;  %v8796_v22 = vld [vmem:[#allocation8 + $0x7a8] ss:$16 sps:$4 sm:$0xff]   ;;  %v8801_v47 = vld [vmem:[#allocation8 + $0x78c] ss:$16 sps:$4 sm:$0xff]  }
 0x522   :  { %6598 = vmatprep.subr.bf16.mxu1 %v8762_v17  ;;  %6639 = vmatprep.subr.bf16.mxu0 %v8765_v59  ;;  %v8844_v17 = vld [vmem:[#allocation10 + $0xd0] ss:$8 sps:$4 sm:$0xff]   ;;  %v8849_v59 = vld [vmem:[#allocation10 + $0xc4] ss:$8 sps:$4 sm:$0xff]  }
 0x525   :  { %6599 = vmatpush2.bf16.msra.mxu1 %v8760_v48  ;;  %6640 = vmatpush2.bf16.msra.mxu0 %v8763_v38  ;;  %v8799_v48 = vld [vmem:[#allocation8 + $0x788] ss:$16 sps:$4 sm:$0xff]   ;;  %v8804_v38 = vld [vmem:[#allocation8 + $0x76c] ss:$16 sps:$4 sm:$0xff]  }
 0x526   :  { %6650 = vmatprep.subr.bf16.mxu1 %v8768_v25  ;;  %7095 = vmatprep.subr.bf16.mxu0 %v8816_v26  ;;  %v8847_v25 = vld [vmem:[#allocation10 + $0xc0] ss:$8 sps:$4 sm:$0xff]   ;;  %v8852_v26 = vld [vmem:[#allocation10 + $0xb4] ss:$8 sps:$4 sm:$0xff]  }
 0x528   :  { %6601 = vmatmul.mubr.bf16.vlgmr.msra.gmra.mxu1 %v10626_v0  ;;  %6642 = vmatmul.mubr.bf16.vlgmr.msra.gmra.mxu0 %v10771_v2  ;;  %v6438_v49 = vpop.f32.mrf.mxu1  ;;  %v8822_v0 = vld [vmem:[#allocation10 + $0x54] ss:$8 sps:$4 sm:$0xff]   ;;  %v8772_v2 = vld [vmem:[#allocation8 + $0x6a8] ss:$16 sps:$4 sm:$0xff]  }
 0x529   :  { %v10888_v10 = vadd.f32 %v6438_v49, %v6398_v43  ;;  %6651 = vmatpush1.bf16.msra.mxu1 %v8766_v61  ;;  %6682 = vmatprep.mubr.bf16.mxu1 %v10862_v46  ;;  %v8825_v46 = vld [vmem:[#allocation10 + $0x44] ss:$8 sps:$4 sm:$0xff]   ;;  %v8850_v61 = vld [vmem:[#allocation10 + $0xb0] ss:$8 sps:$4 sm:$0xff]   ;;  %v8858_v49 = vld [vmem:[#allocation10 + $0x94] ss:$8 sps:$4 sm:$0xff]  }
 0x52a   :  { %v6440_v14 = vpop.f32.mrf.mxu1  ;;  %6652 = vmatprep.subr.bf16.mxu1 %v8771_v36  ;;  %7096 = vmatpush1.bf16.msra.mxu0 %v8814_v63  ;;  %v8855_v36 = vld [vmem:[#allocation10 + $0xa4] ss:$8 sps:$4 sm:$0xff]   ;;  %v8805_v63 = vld [vmem:[#allocation8 + $0x748] ss:$16 sps:$4 sm:$0xff]  }
 0x52b   :  { %v10891_v53 = vadd.f32 %v6440_v14, %v6400_v32  ;;  %7097 = vmatprep.subr.bf16.mxu0 %v8819_v50  ;;  %v8810_v43 = vld [vmem:[#allocation8 + $0x72c] ss:$16 sps:$4 sm:$0xff]   ;;  %v8853_v50 = vld [vmem:[#allocation10 + $0xa0] ss:$8 sps:$4 sm:$0xff]   ;;  %v8856_v14 = vld [vmem:[#allocation10 + $0x90] ss:$8 sps:$4 sm:$0xff]  }
 0x52c   :  { %v6442_v15 = vpop.f32.mrf.mxu1  ;;  %v8808_v32 = vld [vmem:[#allocation8 + $0x728] ss:$16 sps:$4 sm:$0xff]  }
 0x52d   :  { %6653 = vmatpush1.bf16.msra.mxu1 %v8769_v21  ;;  %v8813_v21 = vld [vmem:[#allocation8 + $0x70c] ss:$16 sps:$4 sm:$0xff]  }
 0x52e   :  { %v6443_v18 = vpop.f32.mrf.mxu1  ;;  %6654 = vmatprep.subr.bf16.mxu1 %v8774_v19  ;;  %7098 = vmatpush1.bf16.msra.mxu0 %v8817_v31  ;;  %v8861_v19 = vld [vmem:[#allocation10 + $0x84] ss:$8 sps:$4 sm:$0xff]   ;;  %v8811_v31 = vld [vmem:[#allocation8 + $0x708] ss:$16 sps:$4 sm:$0xff]  }
 0x52f   :  { %7099 = vmatprep.subr.bf16.mxu0 %v8822_v0  ;;  %v8859_v0 = vld [vmem:[#allocation10 + $0x80] ss:$8 sps:$4 sm:$0xff]  }
 0x531   :  { %6655 = vmatpush1.bf16.msra.mxu1 %v8772_v2 }
 0x532   :  { %6656 = vmatprep.subr.bf16.mxu1 %v8777_v12  ;;  %7100 = vmatpush1.bf16.msra.mxu0 %v8820_v33 }
 0x533   :  { %7101 = vmatprep.subr.bf16.mxu0 %v8825_v46  ;;  %v8862_v46 = vld [vmem:[#allocation10 + $0x170] ss:$8 sps:$4 sm:$0xff]  }
 0x535   :  { %6657 = vmatpush1.bf16.msra.mxu1 %v8775_v41  ;;  %v8864_v41 = vld [vmem:[#allocation10 + $0x174] ss:$8 sps:$4 sm:$0xff]  }
 0x536   :  { %6658 = vmatprep.subr.bf16.mxu1 %v8780_v56  ;;  %7102 = vmatpush1.bf16.msra.mxu0 %v8823_v52  ;;  %v8867_v56 = vld [vmem:[#allocation10 + $0x164] ss:$8 sps:$4 sm:$0xff]   ;;  %v8865_v52 = vld [vmem:[#allocation10 + $0x160] ss:$8 sps:$4 sm:$0xff]  }
 0x537   :  { %7103 = vmatprep.subr.bf16.mxu0 %v8828_v6  ;;  %v8870_v6 = vld [vmem:[#allocation10 + $0x154] ss:$8 sps:$4 sm:$0xff]  }
 0x539   :  { %6659 = vmatpush1.bf16.msra.mxu1 %v8778_v40  ;;  %v8868_v40 = vld [vmem:[#allocation10 + $0x150] ss:$8 sps:$4 sm:$0xff]  }
 0x53a   :  { %6660 = vmatprep.subr.bf16.mxu1 %v8783_v29  ;;  %7104 = vmatpush1.bf16.msra.mxu0 %v8826_v57  ;;  %v8873_v29 = vld [vmem:[#allocation10 + $0x144] ss:$8 sps:$4 sm:$0xff]   ;;  %v8874_v57 = vld [vmem:[#allocation10 + $0x130] ss:$8 sps:$4 sm:$0xff]  }
 0x53b   :  { %7105 = vmatprep.subr.bf16.mxu0 %v8831_v45  ;;  %v8879_v45 = vld [vmem:[#allocation10 + $0x124] ss:$8 sps:$4 sm:$0xff]  }
 0x53d   :  { %6661 = vmatpush1.bf16.msra.mxu1 %v8781_v34  ;;  %v8877_v34 = vld [vmem:[#allocation10 + $0x120] ss:$8 sps:$4 sm:$0xff]  }
 0x53e   :  { %6662 = vmatprep.subr.bf16.mxu1 %v8786_v58  ;;  %7106 = vmatpush1.bf16.msra.mxu0 %v8829_v16  ;;  %v8882_v58 = vld [vmem:[#allocation10 + $0x114] ss:$8 sps:$4 sm:$0xff]   ;;  %v8880_v16 = vld [vmem:[#allocation10 + $0x110] ss:$8 sps:$4 sm:$0xff]  }
 0x53f   :  { %7107 = vmatprep.subr.bf16.mxu0 %v8834_v13  ;;  %v8885_v13 = vld [vmem:[#allocation10 + $0x104] ss:$8 sps:$4 sm:$0xff]  }
 0x541   :  { %6663 = vmatpush1.bf16.msra.mxu1 %v8784_v51  ;;  %v8883_v51 = vld [vmem:[#allocation10 + $0x100] ss:$8 sps:$4 sm:$0xff]  }
 0x542   :  { %6664 = vmatprep.subr.bf16.mxu1 %v8789_v39  ;;  %7108 = vmatpush1.bf16.msra.mxu0 %v8832_v35  ;;  %v8888_v39 = vld [vmem:[#allocation10 + $0x1f4] ss:$8 sps:$4 sm:$0xff]   ;;  %v8886_v35 = vld [vmem:[#allocation10 + $0x1f0] ss:$8 sps:$4 sm:$0xff]  }
 0x543   :  { %7109 = vmatprep.subr.bf16.mxu0 %v8837_v37  ;;  %v8891_v37 = vld [vmem:[#allocation10 + $0x1e4] ss:$8 sps:$4 sm:$0xff]  }
 0x545   :  { %6665 = vmatpush1.bf16.msra.mxu1 %v8787_v20  ;;  %v8889_v20 = vld [vmem:[#allocation10 + $0x1e0] ss:$8 sps:$4 sm:$0xff]  }
 0x546   :  { %6666 = vmatprep.subr.bf16.mxu1 %v8792_v24  ;;  %7110 = vmatpush1.bf16.msra.mxu0 %v8835_v7  ;;  %v8894_v24 = vld [vmem:[#allocation10 + $0x1d4] ss:$8 sps:$4 sm:$0xff]   ;;  %v8892_v7 = vld [vmem:[#allocation10 + $0x1d0] ss:$8 sps:$4 sm:$0xff]  }
 0x547   :  { %7111 = vmatprep.subr.bf16.mxu0 %v8840_v54  ;;  %v8897_v54 = vld [vmem:[#allocation10 + $0x1c4] ss:$8 sps:$4 sm:$0xff]  }
 0x549   :  { %6667 = vmatpush2.bf16.msra.mxu1 %v8790_v27  ;;  %v8895_v27 = vld [vmem:[#allocation10 + $0x1c0] ss:$8 sps:$4 sm:$0xff]  }
 0x54a   :  { %6668 = vmatprep.subr.bf16.mxu1 %v8795_v42  ;;  %7112 = vmatpush2.bf16.msra.mxu0 %v8838_v62  ;;  %v8900_v42 = vld [vmem:[#allocation10 + $0x1b4] ss:$8 sps:$4 sm:$0xff]   ;;  %v8898_v62 = vld [vmem:[#allocation10 + $0x1b0] ss:$8 sps:$4 sm:$0xff]  }
 0x54b   :  { %7113 = vmatprep.subr.bf16.mxu0 %v8843_v1  ;;  %v8903_v1 = vld [vmem:[#allocation10 + $0x1a4] ss:$8 sps:$4 sm:$0xff]  }
 0x54d   :  { %6669 = vmatpush2.bf16.msra.mxu1 %v8793_v44  ;;  %v8901_v44 = vld [vmem:[#allocation10 + $0x1a0] ss:$8 sps:$4 sm:$0xff]  }
 0x54e   :  { %6670 = vmatprep.subr.bf16.mxu1 %v8798_v60  ;;  %7114 = vmatpush2.bf16.msra.mxu0 %v8841_v55 }
 0x54f   :  { %7115 = vmatprep.subr.bf16.mxu0 %v8846_v30 }
 0x551   :  { %6671 = vmatpush2.bf16.msra.mxu1 %v8796_v22 }
 0x552   :  { %6672 = vmatprep.subr.bf16.mxu1 %v8801_v47  ;;  %7116 = vmatpush2.bf16.msra.mxu0 %v8844_v17 }
 0x553   :  { %7117 = vmatprep.subr.bf16.mxu0 %v8849_v59 }
 0x555   :  { %6673 = vmatpush2.bf16.msra.mxu1 %v8799_v48 }
 0x556   :  { %6674 = vmatprep.subr.bf16.mxu1 %v8804_v38  ;;  %7118 = vmatpush2.bf16.msra.mxu0 %v8847_v25 }
 0x557   :  { %7119 = vmatprep.subr.bf16.mxu0 %v8852_v26 }
 0x559   :  { %6675 = vmatpush2.bf16.msra.mxu1 %v8802_v23 }
 0x55a   :  { %6676 = vmatprep.subr.bf16.mxu1 %v8807_v11  ;;  %7120 = vmatpush2.bf16.msra.mxu0 %v8850_v61 }
 0x55b   :  { %7121 = vmatprep.subr.bf16.mxu0 %v8855_v36  ;;  %v8904_v36 = vld [vmem:[#allocation10 + $0x190] ss:$8 sps:$4 sm:$0xff]  }
 0x55d   :  { %6677 = vmatpush2.bf16.msra.mxu1 %v8805_v63  ;;  %v8906_v63 = vld [vmem:[#allocation10 + $0x194] ss:$8 sps:$4 sm:$0xff]  }
 0x55e   :  { %6678 = vmatprep.subr.bf16.mxu1 %v8810_v43  ;;  %7122 = vmatpush2.bf16.msra.mxu0 %v8853_v50  ;;  %v8909_v50 = vld [vmem:[#allocation10 + $0x184] ss:$8 sps:$4 sm:$0xff]  }
 0x55f   :  { %7123 = vmatprep.subr.bf16.mxu0 %v8858_v49  ;;  %v5018_v49 = vrot.slane %v10878_v9, %v11252_v3  ;;  %v8912_v3 = vld [vmem:[%s10979_s14 + $0x70] sm:$0xff]  }
 0x561   :  { %6679 = vmatpush2.bf16.msra.mxu1 %v8808_v32 }
 0x562   :  { %6680 = vmatprep.subr.bf16.mxu1 %v8813_v21  ;;  %7124 = vmatpush2.bf16.msra.mxu0 %v8856_v14 }
 0x563   :  { %7125 = vmatprep.subr.bf16.mxu0 %v8861_v19 }
 0x565   :  { %6681 = vmatpush2.bf16.msra.mxu1 %v8811_v31 }
 0x566   :  { %7126 = vmatpush2.bf16.msra.mxu0 %v8859_v0  ;;  %7136 = vmatprep.subr.bf16.mxu1 %v8864_v41  ;;  %v8911_v41 = vld [vmem:[%s10979_s14 + $0x38] sm:$0xff]  }
 0x568   :  { %6683 = vmatmul.mubr.bf16.vlgmr.msra.gmra.mxu1 %v10864_v28  ;;  %v6479_v15 = vpop.f32.mrf.mxu0  ;;  %v8871_v28 = vld [vmem:[#allocation10 + $0x140] ss:$8 sps:$4 sm:$0xff]  }
 0x569   :  { %v10895_v2 = vadd.f32 %v6479_v15, %v10888_v10  ;;  %7137 = vmatpush1.bf16.msra.mxu1 %v8862_v46  ;;  %v8876_v10 = vld [vmem:[#allocation10 + $0x134] ss:$8 sps:$4 sm:$0xff]  }
 0x56a   :  { %v6481_v18 = vpop.f32.mrf.mxu0  ;;  %7138 = vmatprep.subr.bf16.mxu1 %v8867_v56  ;;  %v8910_v46 = vld [vmem:[%s10979_s14 + $0x78] sm:$0xff]   ;;  %v8913_v56 = vld [vmem:[%s10979_s14 + $0x30] sm:$0xff]  }
 0x56b   :  { %v6482_v30 = vadd.f32 %v6481_v18, %v10891_v53  ;;  %v8907_v53 = vld [vmem:[#allocation10 + $0x180] ss:$8 sps:$4 sm:$0xff]   ;;  %8151 = vmatprep.subr.bf16.mxu0 %v8910_v46 }
 0x56c   :  { %v6483_v12 = vpop.f32.mrf.mxu0 }
 0x56d   :  { %7139 = vmatpush1.bf16.msra.mxu1 %v8865_v52  ;;  %v8914_v52 = vld [vmem:[%s10979_s14 + $0x68] sm:$0xff]  }
 0x56e   :  { %v6484_v33 = vpop.f32.mrf.mxu0  ;;  %7140 = vmatprep.subr.bf16.mxu1 %v8870_v6  ;;  %v8915_v6 = vld [vmem:[%s10979_s14 + $0x28] sm:$0xff]  }
 0x571   :  { %7141 = vmatpush1.bf16.msra.mxu1 %v8868_v40  ;;  %v8916_v40 = vld [vmem:[%s10979_s14 + $0x60] sm:$0xff]  }
 0x572   :  { %7142 = vmatprep.subr.bf16.mxu1 %v8873_v29  ;;  %v8917_v29 = vld [vmem:[%s10979_s14 + $0x20] sm:$0xff]  }
 0x575   :  { %7143 = vmatpush1.bf16.msra.mxu1 %v8871_v28  ;;  %v8918_v28 = vld [vmem:[%s10979_s14 + $0x58] sm:$0xff]  }
 0x576   :  { %7144 = vmatprep.subr.bf16.mxu1 %v8876_v10  ;;  %v8919_v10 = vld [vmem:[%s10979_s14 + $0x18] sm:$0xff]  }
 0x579   :  { %7145 = vmatpush1.bf16.msra.mxu1 %v8874_v57  ;;  %v8920_v57 = vld [vmem:[%s10979_s14 + $0x50] sm:$0xff]  }
 0x57a   :  { %7146 = vmatprep.subr.bf16.mxu1 %v8879_v45  ;;  %v8921_v45 = vld [vmem:[%s10979_s14 + $0x10] sm:$0xff]  }
 0x57d   :  { %7147 = vmatpush1.bf16.msra.mxu1 %v8877_v34  ;;  %v5022_v34 = vrot.slane %v10878_v9, %v11253_v5  ;;  %v8922_v5 = vld [vmem:[%s10979_s14 + $0x48] sm:$0xff]  }
 0x57e   :  { %7148 = vmatprep.subr.bf16.mxu1 %v8882_v58  ;;  %v8923_v9 = vld [vmem:[%s10979_s14 + $0x8] sm:$0xff]  }
 0x581   :  { %7149 = vmatpush1.bf16.msra.mxu1 %v8880_v16 }
 0x582   :  { %7150 = vmatprep.subr.bf16.mxu1 %v8885_v13 }
 0x585   :  { %7151 = vmatpush1.bf16.msra.mxu1 %v8883_v51 }
 0x586   :  { %7152 = vmatprep.subr.bf16.mxu1 %v8888_v39 }
 0x589   :  { %7153 = vmatpush2.bf16.msra.mxu1 %v8886_v35 }
 0x58a   :  { %7154 = vmatprep.subr.bf16.mxu1 %v8891_v37 }
 0x58d   :  { %7155 = vmatpush2.bf16.msra.mxu1 %v8889_v20 }
 0x58e   :  { %7156 = vmatprep.subr.bf16.mxu1 %v8894_v24 }
 0x591   :  { %7157 = vmatpush2.bf16.msra.mxu1 %v8892_v7 }
 0x592   :  { %7158 = vmatprep.subr.bf16.mxu1 %v8897_v54 }
 0x595   :  { %7159 = vmatpush2.bf16.msra.mxu1 %v8895_v27 }
 0x596   :  { %7160 = vmatprep.subr.bf16.mxu1 %v8900_v42 }
 0x599   :  { %7161 = vmatpush2.bf16.msra.mxu1 %v8898_v62 }
 0x59a   :  { %7162 = vmatprep.subr.bf16.mxu1 %v8903_v1 }
 0x59d   :  { %7163 = vmatpush2.bf16.msra.mxu1 %v8901_v44 }
 0x59e   :  { %7164 = vmatprep.subr.bf16.mxu1 %v8906_v63 }
 0x5a1   :  { %7165 = vmatpush2.bf16.msra.mxu1 %v8904_v36 }
 0x5a2   :  { %7166 = vmatprep.subr.bf16.mxu1 %v8909_v50 }
 0x5a5   :  { %7167 = vmatpush2.bf16.msra.mxu1 %v8907_v53 }
 0x5a8   :  { %v6561_v60 = vpop.f32.mrf.mxu0  ;;  %v6520_v55 = vpop.f32.mrf.mxu1 }
 0x5a9   :  { %v6521_v22 = vadd.f32 %v6520_v55, %v10895_v2  ;;  %v6562_v32 = vadd.f32 %v6561_v60, %v5018_v49  ;;  %v8924_v55 = vld [vmem:[%s10979_s14 + $0x40] sm:$0xff]  }
 0x5aa   :  { %v6563_v47 = vpop.f32.mrf.mxu0  ;;  %v6522_v17 = vpop.f32.mrf.mxu1 }
 0x5ab   :  { %v6523_v59 = vadd.f32 %v6522_v17, %v6482_v30  ;;  %v6691_v48 = vmax.f32 %v6521_v22, 0.0  ;;  %v6564_v58 = vadd.f32 %v6563_v47, %v5022_v34  ;;  %v8925_v30 = vld [vmem:[%s10979_s14] sm:$0xff]  }
 0x5ac   :  { %v6565_v38 = vpop.f32.mrf.mxu0  ;;  %v6524_v25 = vpop.f32.mrf.mxu1  ;;  %v6763_v22 = vld [vmem:[%s10978_s13] sm:$0x3] }
 0x5ad   :  { %v6692_v26 = vmax.f32 %v6523_v59, 0.0  ;;  %v6695_v43 = vpack.c.bf16 %v6691_v48, %v6691_v48  ;;  %v6768_v47 = vrot.slane %v6763_v22, %v11250_v4  ;;  %v6772_v17 = vrot.slane %v6763_v22, %v11251_v8  ;;  %v8125_v4 = vld [vmem:[%s10980_s15] ss:$0 sm:$0xff]  ;;  %s9072_s15 = smov [#allocation11]  }
 0x5ae   :  { %v6566_v23 = vpop.f32.mrf.mxu0  ;;  %v6525_v11 = vpop.f32.mrf.mxu1  ;;  %s7377_s20 = sshll.u32 %s9072_s15, 4  ;;  %s7378_s20 = int_to_ptr.vmem [resolvable:$true] %s7377_s20 }
 0x5af   :  { %v6696_v61 = vpack.c.bf16 %v6692_v26, %v6692_v26  ;;  %s9031_s21 = scalar_lea.vmem %s7378_s20, 32  ;;  %p9036_p12 = scmp.lt.s32.totalorder %s7378_s20, %s7378_s20 }
 0x5b0   :  { %p9032_p11 = scmp.ne.s32.totalorder %s7378_s20, %s9031_s21  ;;  %p9037_p13 = scmp.lt.s32.totalorder %s9031_s21, %s9031_s21 }
 0x5b1   :  { %7127 = vmatprep.mubr.bf16.mxu0 %v6696_v61 }
 0x5b2   :  { %7128 = vmatmul.mubr.bf16.vlgmr.msra.gmra.mxu0 %v6695_v43  ;;  %p9038_p0 = por %p9037_p13, %p9036_p12 }
 0x5b3   :  { %8152 = vmatpush3.bf16.msra.mxu0 %v8911_v41 }
 0x5b4   :  { %8153 = vmatprep.subr.bf16.mxu0 %v8912_v3  ;;  %p9039_p1 = pnand %p9038_p0, %p9032_p11 }
 0x5b7   :  { %8154 = vmatpush3.bf16.msra.mxu0 %v8913_v56 }
 0x5b8   :  { %8155 = vmatprep.subr.bf16.mxu0 %v8914_v52 }
 0x5bb   :  { %8156 = vmatpush3.bf16.msra.mxu0 %v8915_v6 }
 0x5bc   :  { %8157 = vmatprep.subr.bf16.mxu0 %v8916_v40 }
 0x5bf   :  { %8158 = vmatpush3.bf16.msra.mxu0 %v8917_v29 }
 0x5c0   :  { %8159 = vmatprep.subr.bf16.mxu0 %v8918_v28 }
 0x5c3   :  { %8160 = vmatpush3.bf16.msra.mxu0 %v8919_v10 }
 0x5c4   :  { %8161 = vmatprep.subr.bf16.mxu0 %v8920_v57 }
 0x5c7   :  { %8162 = vmatpush3.bf16.msra.mxu0 %v8921_v45 }
 0x5c8   :  { %8163 = vmatprep.subr.bf16.mxu0 %v8922_v5 }
 0x5cb   :  { %8164 = vmatpush3.bf16.msra.mxu0 %v8923_v9 }
 0x5cc   :  { %8165 = vmatprep.subr.bf16.mxu0 %v8924_v55 }
 0x5cf   :  { %8166 = vmatpush3.bf16.msra.mxu0 %v8925_v30 }
 0x5e8   :  { %v6602_v21 = vpop.f32.mrf.mxu1  ;;  %v6643_v14 = vpop.f32.mrf.mxu0 }
 0x5e9   :  { %v6603_v19 = vadd.f32 %v6602_v21, %v6562_v32 }
 0x5ea   :  { %v6604_v31 = vpop.f32.mrf.mxu1  ;;  %v6645_v0 = vpop.f32.mrf.mxu0 }
 0x5eb   :  { %v6644_v15 = vadd.f32 %v6643_v14, %v6603_v19  ;;  %v6605_v16 = vadd.f32 %v6604_v31, %v6564_v58 }
 0x5ec   :  { %v6606_v2 = vpop.f32.mrf.mxu1  ;;  %v6647_v18 = vpop.f32.mrf.mxu0 }
 0x5ed   :  { %v6646_v51 = vadd.f32 %v6645_v0, %v6605_v16 }
 0x5ee   :  { %v6607_v12 = vpop.f32.mrf.mxu1  ;;  %v6648_v33 = vpop.f32.mrf.mxu0 }
 0x628   :  { %v6684_v13 = vpop.f32.mrf.mxu1 }
 0x629   :  { %v6685_v39 = vadd.f32 %v6684_v13, %v6644_v15 }
 0x62a   :  { %v6686_v35 = vpop.f32.mrf.mxu1 }
 0x62b   :  { %v6687_v37 = vadd.f32 %v6686_v35, %v6646_v51  ;;  %v6693_v20 = vmax.f32 %v6685_v39, 0.0 }
 0x62c   :  { %v6688_v24 = vpop.f32.mrf.mxu1 }
 0x62d   :  { %v6694_v7 = vmax.f32 %v6687_v37, 0.0  ;;  %v6697_v42 = vpack.c.bf16 %v6693_v20, %v6693_v20 }
 0x62e   :  { %v6689_v54 = vpop.f32.mrf.mxu1 }
 0x62f   :  { %v6698_v27 = vpack.c.bf16 %v6694_v7, %v6694_v7 }
 0x631   :  { %7168 = vmatprep.mubr.bf16.mxu1 %v6698_v27 }
 0x632   :  { %7169 = vmatmul.mubr.bf16.vlgmr.msra.gmra.mxu1 %v6697_v42 }
 0x672   :  { %v7129_v62 = vpop.f32.mrf.mxu0 }
 0x673   :  { %v7130_v59 = vadd.f32 %v7129_v62, %v6768_v47 }
 0x674   :  { %v7131_v1 = vpop.f32.mrf.mxu0 }
 0x675   :  { %v7132_v38 = vadd.f32 %v7131_v1, %v6772_v17 }
 0x676   :  { %v7133_v44 = vpop.f32.mrf.mxu0 }
 0x678   :  { %v7134_v60 = vpop.f32.mrf.mxu0 }
 0x6f2   :  { %v7170_v48 = vpop.f32.mrf.mxu1 }
 0x6f3   :  { %v7171_v25 = vadd.f32 %v7170_v48, %v7130_v59 }
 0x6f4   :  { %v7172_v26 = vpop.f32.mrf.mxu1 }
 0x6f5   :  { %v7173_v23 = vadd.f32 %v7172_v26, %v7132_v38  ;;  %v7177_v11 = vmax.f32 %v7171_v25, 0.0 }
 0x6f6   :  { %v7174_v61 = vpop.f32.mrf.mxu1 }
 0x6f7   :  { %v7178_v36 = vmax.f32 %v7173_v23, 0.0  ;;  %v7179_v50 = vpack.c.bf16 %v7177_v11, %v7177_v11 }
 0x6f8   :  { %v7175_v63 = vpop.f32.mrf.mxu1 }
 0x6f9   :  { %v7180_v43 = vpack.c.bf16 %v7178_v36, %v7178_v36 }
 0x6fb   :  { %7348 = vmatprep.mubr.bf16.mxu0 %v7180_v43 }
 0x6fc   :  { %7349 = vmatmul.mubr.bf16.vlgmr.msra.gmra.mxu0 %v7179_v50 }
 0x7bc   :  { %v8167_v53 = vpop.f32.mrf.mxu0 }
 0x7be   :  { %v8168_v8 = vpop.f32.mrf.mxu0 }
 0x7bf   :  { %v8169_v49 = vadd.f32 %v8168_v8, %v8167_v53 }
 0x7c0   :  { %v8170_v32 = vpop.f32.mrf.mxu0 }
 0x7c1   :  { %v7351_v21 = vadd.f32 %v8169_v49, %v8125_v4 }
 0x7c2   :  { %v8171_v14 = vpop.f32.mrf.mxu0 }
 0x7c3   :  { %v7357_v19 = vsel %vm7356_vm3, %v7351_v21, -inf }
 0x7c4   :  { %7358 = vmax.xlane.f32.xlu0 %v7357_v19 }
 0x84d   :  { %v7359_v31 = vpop.xlane.xlu0 %7358 }
 0x84e   :  { %v7360_v0 = vsub.f32 %v7351_v21, %v7359_v31 }
 0x850   :  { %v7361_v15 = vmul.f32 1.442695, %v7360_v0 }
 0x852   :  { %8926 = vpow2.f32 %v7361_v15 }
 0x85f   :  { %v8927_v2 = vpop.eup %8926 }
 0x860   :  { %v7363_v18 = vsel %vm7356_vm3, %v8927_v2, 0.0 }
 0x861   :  { %7364 = vadd.xlane.f32.xlu0 %v7363_v18 }
 0x8ea   :  { %v7365_v12 = vpop.xlane.xlu0 %7364 }
 0x8eb   :  { %8928 = vlog2.f32 %v7365_v12 }
 0x8f8   :  { %v8929_v33 = vpop.eup %8928 }
 0x8f9   :  { %v7367_v46 = vmul.f32 0.6931472, %v8929_v33 }
 0x8fb   :  { %v7368_v41 = vadd.f32 %v7367_v46, %v7359_v31 }
 0x8fd   :  { %v7369_v3 = vsub.f32 %v7351_v21, %v7368_v41 }
 0x8ff   :  { %7370 = vst.msk [vmem:[#allocation11] sm:$0x3] %vm7356_vm3, %v7369_v3 }
 0x900   :  { %9042 = shalt.err (!%p9039_p1)
}
 0x901   :  { %7380 = dma.vmem_to_hbm [thread:$0]  %s7378_s20, 32, %s10981_s16, [#allocation4]  }
 0x902   :  { %9057 = dma.done.wait [#allocation4], 32  }
 0x903   :  { %9058 = vsyncadd [#allocation4], 4294967264 }
 0x904   :  { %7384 = vsyncpa [#allocation3], 1 }
 0x905   :  { %7385 = vsyncpa [#allocation6], 1 }
 0x906   :  { %7386 = vsyncpa [#allocation9], 1 }
 0x907   :  { %7387 = vsyncpa [#allocation4], 1 }

</bundles_post_ra>
